<compile_context>
chip_gen: v5e
topology: v5e:2x2
jax: 0.10.0
libtpu: 0.0.40
codegen_flags: <defaults>
</compile_context>

<pallas_src>
import jax
import jax.numpy as jnp
from jax.experimental import pallas as pl
from jax.experimental.pallas import tpu as pltpu

_SEG = 128  # one lane tile


def _round_up(x, m):
    return ((x + m - 1) // m) * m


# ----------------------------------------------------------------------------
# Kernel
# ----------------------------------------------------------------------------
def _make_kernel(P, SEG):
    """Kernel closure over static dims.

    Refs:
      x_ref:   [TB, 2*SEG]  packed input: lanes [0,SEG)=u (padded), [SEG,2SEG)=eps
      w_ref:   [8, P, P]    zero-padded weights, layer order:
                            enc1, enc2, enc3, (mu|logvar) head, dec1, dec2, dec3, dec4
      b_ref:   [8, 1, P]    zero-padded f32 biases (same order)
      out_ref: [TB, 4*SEG]  packed output: out | z | mu | logvar at lane
                            offsets 0 / SEG / 2*SEG / 3*SEG
    """

    def lrelu(v):
        return jnp.where(v > 0, v, 0.2 * v)

    def kernel(x_ref, w_ref, b_ref, out_ref):
        wdt = w_ref.dtype

        def widen(a):
            # Zero-extend lanes up to P at a 128-lane tile boundary (exact:
            # the corresponding weight rows are zero-padded).
            pad = P - a.shape[1]
            if pad == 0:
                return a
            return jnp.concatenate(
                [a, jnp.zeros((a.shape[0], pad), a.dtype)], axis=1)

        def layer(a, i):
            # One lane-dense MXU push per layer; bf16 operands, f32 accumulate.
            return (jnp.dot(a.astype(wdt), w_ref[i],
                            preferred_element_type=jnp.float32) + b_ref[i])

        x = x_ref[...]                        # [TB, 2*SEG] f32
        eps = x[:, SEG:2 * SEG]               # lane-tile-aligned slice

        # --- Encoder.net: 3 x (Linear -> LeakyReLU(0.2)) ---
        # eps / pad lanes of x hit zero-padded rows of W[0] -> exact no-op.
        h = lrelu(layer(widen(x), 0))
        h = lrelu(layer(h, 1))
        h = lrelu(layer(h, 2))

        # --- fused (mu | logvar) head: one matmul, 128-lane-aligned split ---
        ml = layer(h, 3)
        mu = ml[:, :SEG]                      # real values in lanes [0, z)
        logvar = ml[:, SEG:2 * SEG]           # real values in lanes [0, z)

        # --- reparametrize: z = mu + exp(0.5*logvar) * eps ---
        # (forward() re-samples z; encode()'s internal z is discarded,
        #  matching the PyTorch module.)  Padded lanes stay exactly 0
        # (mu=0, logvar=0 -> exp(0)=1, eps=0).
        z = mu + jnp.exp(0.5 * logvar) * eps

        # --- Decoder.net: 3 x (Linear -> LeakyReLU(0.2)) + final Linear ---
        # Full padded W[4] against a zero-extended z segment (no weight slice).
        d = lrelu(layer(widen(z), 4))
        d = lrelu(layer(d, 5))
        d = lrelu(layer(d, 6))
        out = layer(d, 7)                     # padded output lanes are exactly 0

        # Four 128-lane-aligned, unmasked stores (no cross-lane concat).
        out_ref[:, 0 * SEG:1 * SEG] = out[:, :SEG]
        out_ref[:, 1 * SEG:2 * SEG] = z
        out_ref[:, 2 * SEG:3 * SEG] = mu
        out_ref[:, 3 * SEG:4 * SEG] = logvar

    return kernel


# ----------------------------------------------------------------------------
# Host-side packing + pallas_call wrapper
# ----------------------------------------------------------------------------
def pack_params(params, u_dim, hidden_dim, z_dim, param_dtype=jnp.bfloat16):
    """Stack all layer params into one weight tensor and one bias tensor."""
    SEG = _SEG
    assert u_dim <= SEG and z_dim <= SEG, "u_dim/z_dim must fit one lane tile"
    P = max(_round_up(hidden_dim, SEG), 2 * SEG)

    def place(w_list, b_list):
        wp = jnp.zeros((P, P), jnp.float32)
        bp = jnp.zeros((1, P), jnp.float32)
        for w, r0, c0 in w_list:
            fi, fo = w.shape
            wp = wp.at[r0:r0 + fi, c0:c0 + fo].set(w)
        for b, c0 in b_list:
            bp = bp.at[0, c0:c0 + b.shape[0]].set(b.reshape(-1))
        return wp, bp

    layers = [
        place([(params["ew1"], 0, 0)], [(params["eb1"], 0)]),
        place([(params["ew2"], 0, 0)], [(params["eb2"], 0)]),
        place([(params["ew3"], 0, 0)], [(params["eb3"], 0)]),
        # fused head: mu at lane 0, logvar at lane SEG
        place([(params["wmu"], 0, 0), (params["wlv"], 0, SEG)],
              [(params["bmu"], 0), (params["blv"], SEG)]),
        place([(params["dw1"], 0, 0)], [(params["db1"], 0)]),
        place([(params["dw2"], 0, 0)], [(params["db2"], 0)]),
        place([(params["dw3"], 0, 0)], [(params["db3"], 0)]),
        place([(params["dw4"], 0, 0)], [(params["db4"], 0)]),
    ]
    W = jnp.stack([w for w, _ in layers]).astype(param_dtype)
    Bv = jnp.stack([b for _, b in layers])        # biases stay f32 (tiny)
    return W, Bv, P


def conditional_prior_forward(u, eps, params, *, u_dim, hidden_dim, z_dim,
                              param_dtype=jnp.bfloat16, batch_tile=256):
    """u: [B, u_dim] f32, eps: [B, z_dim] f32 (the torch.randn noise)."""
    SEG = _SEG
    B = u.shape[0]
    W, Bv, P = pack_params(params, u_dim, hidden_dim, z_dim, param_dtype)
    L = W.shape[0]
    OUT_W = 4 * SEG

    # Batch tiling: bounded tile, cdiv grid (host pads B to a tile multiple).
    TILE_B = min(_round_up(B, 8), batch_tile)
    B_pad = _round_up(B, TILE_B)
    grid = (B_pad // TILE_B,)

    # Packed 128-lane-aligned input slab: u at lane 0, eps at lane SEG.
    # TODO(synk): for large B fuse this padding upstream (it costs one extra
    # HBM write+read of the activation slab outside the kernel).
    x = jnp.zeros((B_pad, 2 * SEG), jnp.float32)
    x = x.at[:B, :u_dim].set(u).at[:B, SEG:SEG + z_dim].set(eps)

    kernel = _make_kernel(P, SEG)

    # Explicit scoped-VMEM budget from actual tile + weight sizes + headroom.
    w_bytes = L * P * P * jnp.dtype(param_dtype).itemsize
    b_bytes = L * P * 4
    io_bytes = TILE_B * (2 * SEG + OUT_W) * 4 * 2      # double-buffered I/O
    live_bytes = 6 * TILE_B * P * 4                    # in-flight intermediates
    needed = 2 * (w_bytes + b_bytes) + io_bytes + live_bytes
    vmem_limit = int(min(64 * 2 ** 20, max(1.5 * needed, 16 * 2 ** 20)))

    def call(single_buffer_params):
        pm = dict(pipeline_mode=pl.Buffered(1)) if single_buffer_params else {}
        return pl.pallas_call(
            kernel,
            out_shape=jax.ShapeDtypeStruct((B_pad, OUT_W), jnp.float32),
            grid=grid,
            in_specs=[
                pl.BlockSpec((TILE_B, 2 * SEG), lambda i: (i, 0)),    # activations
                pl.BlockSpec((L, P, P), lambda i: (0, 0, 0), **pm),   # weights
                pl.BlockSpec((L, 1, P), lambda i: (0, 0, 0), **pm),   # biases
            ],
            out_specs=pl.BlockSpec((TILE_B, OUT_W), lambda i: (i, 0)),
            compiler_params=pltpu.CompilerParams(
                dimension_semantics=("parallel",),
                vmem_limit_bytes=vmem_limit),
        )(x, W, Bv)

    try:
        # Grid-invariant params single-buffered: halves their VMEM residency
        # (needed to fit production hidden sizes on v7x's 64 MiB VMEM).
        packed = call(True)
    except Exception:
        # Fallback for JAX builds that reject Buffered(1) on a top-level
        # pallas_call BlockSpec; correctness is unaffected.
        packed = call(False)

    out = packed[:B, 0 * SEG:0 * SEG + u_dim]
    z = packed[:B, 1 * SEG:1 * SEG + z_dim]
    mu = packed[:B, 2 * SEG:2 * SEG + z_dim]
    logvar = packed[:B, 3 * SEG:3 * SEG + z_dim]
    return out, z, mu, logvar


# ----------------------------------------------------------------------------
# Synthetic params + pure-JAX reference
# ----------------------------------------------------------------------------
def init_params(key, u_dim, hidden_dim, z_dim):
    """Weights stored as [in, out], biases as [out]."""
    keys = jax.random.split(key, 20)
    k = iter(keys)

    def lin(kw, kb, fan_in, fan_out):
        scale = 1.0 / jnp.sqrt(fan_in)
        w = jax.random.uniform(kw, (fan_in, fan_out), jnp.float32, -scale, scale)
        b = jax.random.uniform(kb, (fan_out,), jnp.float32, -scale, scale)
        return w, b

    p = {}
    p["ew1"], p["eb1"] = lin(next(k), next(k), u_dim, hidden_dim)
    p["ew2"], p["eb2"] = lin(next(k), next(k), hidden_dim, hidden_dim)
    p["ew3"], p["eb3"] = lin(next(k), next(k), hidden_dim, hidden_dim)
    p["wmu"], p["bmu"] = lin(next(k), next(k), hidden_dim, z_dim)
    p["wlv"], p["blv"] = lin(next(k), next(k), hidden_dim, z_dim)
    p["dw1"], p["db1"] = lin(next(k), next(k), z_dim, hidden_dim)
    p["dw2"], p["db2"] = lin(next(k), next(k), hidden_dim, hidden_dim)
    p["dw3"], p["db3"] = lin(next(k), next(k), hidden_dim, hidden_dim)
    p["dw4"], p["db4"] = lin(next(k), next(k), hidden_dim, u_dim)
    return p


def reference_forward(u, eps, p):
    """Pure-JAX f32 reference of the PyTorch forward pass."""
    lrelu = lambda x: jnp.where(x > 0, x, 0.2 * x)
    h = lrelu(u @ p["ew1"] + p["eb1"])
    h = lrelu(h @ p["ew2"] + p["eb2"])
    h = lrelu(h @ p["ew3"] + p["eb3"])
    mu = h @ p["wmu"] + p["bmu"]
    logvar = h @ p["wlv"] + p["blv"]
    z = mu + jnp.exp(0.5 * logvar) * eps
    d = lrelu(z @ p["dw1"] + p["db1"])
    d = lrelu(d @ p["dw2"] + p["db2"])
    d = lrelu(d @ p["dw3"] + p["db3"])
    out = d @ p["dw4"] + p["db4"]
    return out, z, mu, logvar


if __name__ == "__main__":
    # Small shapes consistent with the module (u_dim, hidden_dim, z_dim).
    B, U_DIM, HIDDEN_DIM, Z_DIM = 8, 8, 32, 8

    key = jax.random.PRNGKey(0)
    k_params, k_u, k_eps = jax.random.split(key, 3)

    params = init_params(k_params, U_DIM, HIDDEN_DIM, Z_DIM)
    u = jax.random.normal(k_u, (B, U_DIM), jnp.float32)
    eps = jax.random.normal(k_eps, (B, Z_DIM), jnp.float32)

    ref_out, ref_z, ref_mu, ref_lv = reference_forward(u, eps, params)

    # --- exact check: f32 parameter path (padding is an exact no-op) ---
    out, z, mu, logvar = jax.block_until_ready(
        conditional_prior_forward(
            u, eps, params, u_dim=U_DIM, hidden_dim=HIDDEN_DIM, z_dim=Z_DIM,
            param_dtype=jnp.float32))
    assert jnp.allclose(out, ref_out, atol=1e-5, rtol=1e-5)
    assert jnp.allclose(z, ref_z, atol=1e-5, rtol=1e-5)
    assert jnp.allclose(mu, ref_mu, atol=1e-5, rtol=1e-5)
    assert jnp.allclose(logvar, ref_lv, atol=1e-5, rtol=1e-5)

    # --- optimized production path: bf16 weights, f32 accumulation ---
    out_b, z_b, mu_b, lv_b = jax.block_until_ready(
        conditional_prior_forward(
            u, eps, params, u_dim=U_DIM, hidden_dim=HIDDEN_DIM, z_dim=Z_DIM,
            param_dtype=jnp.bfloat16))
    assert jnp.allclose(out_b, ref_out, atol=5e-2, rtol=5e-2)
    assert jnp.allclose(z_b, ref_z, atol=5e-2, rtol=5e-2)
    assert jnp.allclose(mu_b, ref_mu, atol=5e-2, rtol=5e-2)
    assert jnp.allclose(lv_b, ref_lv, atol=5e-2, rtol=5e-2)

    print("KERNEL_OK")
</pallas_src>

<mosaic_0001>
module attributes {stable_mosaic.version = 11 : i64} {
  func.func @kernel(%arg0: i32, %arg1: memref<8x256xf32, #tpu.memory_space<vmem>>, %arg2: memref<8x256x256xf32, #tpu.memory_space<vmem>>, %arg3: memref<8x1x256xf32, #tpu.memory_space<vmem>>, %arg4: memref<8x512xf32, #tpu.memory_space<vmem>>) attributes {dimension_semantics = [#tpu.dimension_semantics<parallel>], iteration_bounds = array<i64: 1>, scalar_prefetch = 0 : i64, scratch_operands = 0 : i64, tpu.core_type = #tpu.core_type<tc>, window_params = [{transform_indices = @transform_0, window_bounds = array<i64: 8, 256>}, {pipeline_mode = #tpu.pipeline_mode<synchronous>, transform_indices = @transform_1, window_bounds = array<i64: 8, 256, 256>}, {pipeline_mode = #tpu.pipeline_mode<synchronous>, transform_indices = @transform_2, window_bounds = array<i64: 8, 1, 256>}, {transform_indices = @transform_3, window_bounds = array<i64: 8, 512>}]} {
    %c0 = arith.constant 0 : index
    %c0_0 = arith.constant 0 : index
    %0 = vector.load %arg1[%c0, %c0_0] : memref<8x256xf32, #tpu.memory_space<vmem>>, vector<8x256xf32>
    %1 = vector.extract_strided_slice %0 {offsets = [0, 128], sizes = [8, 128], strides = [1, 1]} : vector<8x256xf32> to vector<8x128xf32>
    %c0_1 = arith.constant 0 : index
    %c0_2 = arith.constant 0 : index
    %c0_3 = arith.constant 0 : index
    %2 = vector.load %arg2[%c0_1, %c0_2, %c0_3] : memref<8x256x256xf32, #tpu.memory_space<vmem>>, vector<1x256x256xf32>
    %3 = vector.shape_cast %2 : vector<1x256x256xf32> to vector<256x256xf32>
    %cst = arith.constant dense<0.000000e+00> : vector<8x256xf32>
    %4 = tpu.matmul %0, %3, %cst {dimension_numbers = #tpu.dot_dimension_numbers<[1], [0], [0], [1], [0, 0, 1, 1], [], []>} : vector<8x256xf32>, vector<256x256xf32>, vector<8x256xf32> -> vector<8x256xf32>
    %c0_4 = arith.constant 0 : index
    %c0_5 = arith.constant 0 : index
    %c0_6 = arith.constant 0 : index
    %5 = vector.load %arg3[%c0_4, %c0_5, %c0_6] : memref<8x1x256xf32, #tpu.memory_space<vmem>>, vector<1x1x256xf32>
    %6 = vector.shape_cast %5 : vector<1x1x256xf32> to vector<1x256xf32>
    %7 = vector.broadcast %6 : vector<1x256xf32> to vector<8x256xf32>
    %8 = arith.addf %4, %7 : vector<8x256xf32>
    %cst_7 = arith.constant 0.000000e+00 : f32
    %9 = vector.broadcast %cst_7 : f32 to vector<8x256xf32>
    %10 = arith.cmpf ogt, %8, %9 : vector<8x256xf32>
    %cst_8 = arith.constant 2.000000e-01 : f32
    %11 = vector.broadcast %cst_8 : f32 to vector<8x256xf32>
    %12 = arith.mulf %11, %8 : vector<8x256xf32>
    %13 = arith.select %10, %8, %12 : vector<8x256xi1>, vector<8x256xf32>
    %c1 = arith.constant 1 : index
    %c0_9 = arith.constant 0 : index
    %c0_10 = arith.constant 0 : index
    %14 = vector.load %arg2[%c1, %c0_9, %c0_10] : memref<8x256x256xf32, #tpu.memory_space<vmem>>, vector<1x256x256xf32>
    %15 = vector.shape_cast %14 : vector<1x256x256xf32> to vector<256x256xf32>
    %cst_11 = arith.constant dense<0.000000e+00> : vector<8x256xf32>
    %16 = tpu.matmul %13, %15, %cst_11 {dimension_numbers = #tpu.dot_dimension_numbers<[1], [0], [0], [1], [0, 0, 1, 1], [], []>} : vector<8x256xf32>, vector<256x256xf32>, vector<8x256xf32> -> vector<8x256xf32>
    %c1_12 = arith.constant 1 : index
    %c0_13 = arith.constant 0 : index
    %c0_14 = arith.constant 0 : index
    %17 = vector.load %arg3[%c1_12, %c0_13, %c0_14] : memref<8x1x256xf32, #tpu.memory_space<vmem>>, vector<1x1x256xf32>
    %18 = vector.shape_cast %17 : vector<1x1x256xf32> to vector<1x256xf32>
    %19 = vector.broadcast %18 : vector<1x256xf32> to vector<8x256xf32>
    %20 = arith.addf %16, %19 : vector<8x256xf32>
    %cst_15 = arith.constant 0.000000e+00 : f32
    %21 = vector.broadcast %cst_15 : f32 to vector<8x256xf32>
    %22 = arith.cmpf ogt, %20, %21 : vector<8x256xf32>
    %cst_16 = arith.constant 2.000000e-01 : f32
    %23 = vector.broadcast %cst_16 : f32 to vector<8x256xf32>
    %24 = arith.mulf %23, %20 : vector<8x256xf32>
    %25 = arith.select %22, %20, %24 : vector<8x256xi1>, vector<8x256xf32>
    %c2 = arith.constant 2 : index
    %c0_17 = arith.constant 0 : index
    %c0_18 = arith.constant 0 : index
    %26 = vector.load %arg2[%c2, %c0_17, %c0_18] : memref<8x256x256xf32, #tpu.memory_space<vmem>>, vector<1x256x256xf32>
    %27 = vector.shape_cast %26 : vector<1x256x256xf32> to vector<256x256xf32>
    %cst_19 = arith.constant dense<0.000000e+00> : vector<8x256xf32>
    %28 = tpu.matmul %25, %27, %cst_19 {dimension_numbers = #tpu.dot_dimension_numbers<[1], [0], [0], [1], [0, 0, 1, 1], [], []>} : vector<8x256xf32>, vector<256x256xf32>, vector<8x256xf32> -> vector<8x256xf32>
    %c2_20 = arith.constant 2 : index
    %c0_21 = arith.constant 0 : index
    %c0_22 = arith.constant 0 : index
    %29 = vector.load %arg3[%c2_20, %c0_21, %c0_22] : memref<8x1x256xf32, #tpu.memory_space<vmem>>, vector<1x1x256xf32>
    %30 = vector.shape_cast %29 : vector<1x1x256xf32> to vector<1x256xf32>
    %31 = vector.broadcast %30 : vector<1x256xf32> to vector<8x256xf32>
    %32 = arith.addf %28, %31 : vector<8x256xf32>
    %cst_23 = arith.constant 0.000000e+00 : f32
    %33 = vector.broadcast %cst_23 : f32 to vector<8x256xf32>
    %34 = arith.cmpf ogt, %32, %33 : vector<8x256xf32>
    %cst_24 = arith.constant 2.000000e-01 : f32
    %35 = vector.broadcast %cst_24 : f32 to vector<8x256xf32>
    %36 = arith.mulf %35, %32 : vector<8x256xf32>
    %37 = arith.select %34, %32, %36 : vector<8x256xi1>, vector<8x256xf32>
    %c3 = arith.constant 3 : index
    %c0_25 = arith.constant 0 : index
    %c0_26 = arith.constant 0 : index
    %38 = vector.load %arg2[%c3, %c0_25, %c0_26] : memref<8x256x256xf32, #tpu.memory_space<vmem>>, vector<1x256x256xf32>
    %39 = vector.shape_cast %38 : vector<1x256x256xf32> to vector<256x256xf32>
    %cst_27 = arith.constant dense<0.000000e+00> : vector<8x256xf32>
    %40 = tpu.matmul %37, %39, %cst_27 {dimension_numbers = #tpu.dot_dimension_numbers<[1], [0], [0], [1], [0, 0, 1, 1], [], []>} : vector<8x256xf32>, vector<256x256xf32>, vector<8x256xf32> -> vector<8x256xf32>
    %c3_28 = arith.constant 3 : index
    %c0_29 = arith.constant 0 : index
    %c0_30 = arith.constant 0 : index
    %41 = vector.load %arg3[%c3_28, %c0_29, %c0_30] : memref<8x1x256xf32, #tpu.memory_space<vmem>>, vector<1x1x256xf32>
    %42 = vector.shape_cast %41 : vector<1x1x256xf32> to vector<1x256xf32>
    %43 = vector.broadcast %42 : vector<1x256xf32> to vector<8x256xf32>
    %44 = arith.addf %40, %43 : vector<8x256xf32>
    %45 = vector.extract_strided_slice %44 {offsets = [0, 0], sizes = [8, 128], strides = [1, 1]} : vector<8x256xf32> to vector<8x128xf32>
    %46 = vector.extract_strided_slice %44 {offsets = [0, 128], sizes = [8, 128], strides = [1, 1]} : vector<8x256xf32> to vector<8x128xf32>
    %cst_31 = arith.constant 5.000000e-01 : f32
    %47 = vector.broadcast %cst_31 : f32 to vector<8x128xf32>
    %48 = arith.mulf %47, %46 : vector<8x128xf32>
    %49 = math.exp %48 : vector<8x128xf32>
    %50 = arith.mulf %49, %1 : vector<8x128xf32>
    %51 = arith.addf %45, %50 : vector<8x128xf32>
    %cst_32 = arith.constant 0.000000e+00 : f32
    %52 = vector.broadcast %cst_32 : f32 to vector<8x128xf32>
    %53 = tpu.concatenate %51, %52 in 1 : vector<8x128xf32>, vector<8x128xf32> -> vector<8x256xf32>
    %c4 = arith.constant 4 : index
    %c0_33 = arith.constant 0 : index
    %c0_34 = arith.constant 0 : index
    %54 = vector.load %arg2[%c4, %c0_33, %c0_34] : memref<8x256x256xf32, #tpu.memory_space<vmem>>, vector<1x256x256xf32>
    %55 = vector.shape_cast %54 : vector<1x256x256xf32> to vector<256x256xf32>
    %cst_35 = arith.constant dense<0.000000e+00> : vector<8x256xf32>
    %56 = tpu.matmul %53, %55, %cst_35 {dimension_numbers = #tpu.dot_dimension_numbers<[1], [0], [0], [1], [0, 0, 1, 1], [], []>} : vector<8x256xf32>, vector<256x256xf32>, vector<8x256xf32> -> vector<8x256xf32>
    %c4_36 = arith.constant 4 : index
    %c0_37 = arith.constant 0 : index
    %c0_38 = arith.constant 0 : index
    %57 = vector.load %arg3[%c4_36, %c0_37, %c0_38] : memref<8x1x256xf32, #tpu.memory_space<vmem>>, vector<1x1x256xf32>
    %58 = vector.shape_cast %57 : vector<1x1x256xf32> to vector<1x256xf32>
    %59 = vector.broadcast %58 : vector<1x256xf32> to vector<8x256xf32>
    %60 = arith.addf %56, %59 : vector<8x256xf32>
    %cst_39 = arith.constant 0.000000e+00 : f32
    %61 = vector.broadcast %cst_39 : f32 to vector<8x256xf32>
    %62 = arith.cmpf ogt, %60, %61 : vector<8x256xf32>
    %cst_40 = arith.constant 2.000000e-01 : f32
    %63 = vector.broadcast %cst_40 : f32 to vector<8x256xf32>
    %64 = arith.mulf %63, %60 : vector<8x256xf32>
    %65 = arith.select %62, %60, %64 : vector<8x256xi1>, vector<8x256xf32>
    %c5 = arith.constant 5 : index
    %c0_41 = arith.constant 0 : index
    %c0_42 = arith.constant 0 : index
    %66 = vector.load %arg2[%c5, %c0_41, %c0_42] : memref<8x256x256xf32, #tpu.memory_space<vmem>>, vector<1x256x256xf32>
    %67 = vector.shape_cast %66 : vector<1x256x256xf32> to vector<256x256xf32>
    %cst_43 = arith.constant dense<0.000000e+00> : vector<8x256xf32>
    %68 = tpu.matmul %65, %67, %cst_43 {dimension_numbers = #tpu.dot_dimension_numbers<[1], [0], [0], [1], [0, 0, 1, 1], [], []>} : vector<8x256xf32>, vector<256x256xf32>, vector<8x256xf32> -> vector<8x256xf32>
    %c5_44 = arith.constant 5 : index
    %c0_45 = arith.constant 0 : index
    %c0_46 = arith.constant 0 : index
    %69 = vector.load %arg3[%c5_44, %c0_45, %c0_46] : memref<8x1x256xf32, #tpu.memory_space<vmem>>, vector<1x1x256xf32>
    %70 = vector.shape_cast %69 : vector<1x1x256xf32> to vector<1x256xf32>
    %71 = vector.broadcast %70 : vector<1x256xf32> to vector<8x256xf32>
    %72 = arith.addf %68, %71 : vector<8x256xf32>
    %cst_47 = arith.constant 0.000000e+00 : f32
    %73 = vector.broadcast %cst_47 : f32 to vector<8x256xf32>
    %74 = arith.cmpf ogt, %72, %73 : vector<8x256xf32>
    %cst_48 = arith.constant 2.000000e-01 : f32
    %75 = vector.broadcast %cst_48 : f32 to vector<8x256xf32>
    %76 = arith.mulf %75, %72 : vector<8x256xf32>
    %77 = arith.select %74, %72, %76 : vector<8x256xi1>, vector<8x256xf32>
    %c6 = arith.constant 6 : index
    %c0_49 = arith.constant 0 : index
    %c0_50 = arith.constant 0 : index
    %78 = vector.load %arg2[%c6, %c0_49, %c0_50] : memref<8x256x256xf32, #tpu.memory_space<vmem>>, vector<1x256x256xf32>
    %79 = vector.shape_cast %78 : vector<1x256x256xf32> to vector<256x256xf32>
    %cst_51 = arith.constant dense<0.000000e+00> : vector<8x256xf32>
    %80 = tpu.matmul %77, %79, %cst_51 {dimension_numbers = #tpu.dot_dimension_numbers<[1], [0], [0], [1], [0, 0, 1, 1], [], []>} : vector<8x256xf32>, vector<256x256xf32>, vector<8x256xf32> -> vector<8x256xf32>
    %c6_52 = arith.constant 6 : index
    %c0_53 = arith.constant 0 : index
    %c0_54 = arith.constant 0 : index
    %81 = vector.load %arg3[%c6_52, %c0_53, %c0_54] : memref<8x1x256xf32, #tpu.memory_space<vmem>>, vector<1x1x256xf32>
    %82 = vector.shape_cast %81 : vector<1x1x256xf32> to vector<1x256xf32>
    %83 = vector.broadcast %82 : vector<1x256xf32> to vector<8x256xf32>
    %84 = arith.addf %80, %83 : vector<8x256xf32>
    %cst_55 = arith.constant 0.000000e+00 : f32
    %85 = vector.broadcast %cst_55 : f32 to vector<8x256xf32>
    %86 = arith.cmpf ogt, %84, %85 : vector<8x256xf32>
    %cst_56 = arith.constant 2.000000e-01 : f32
    %87 = vector.broadcast %cst_56 : f32 to vector<8x256xf32>
    %88 = arith.mulf %87, %84 : vector<8x256xf32>
    %89 = arith.select %86, %84, %88 : vector<8x256xi1>, vector<8x256xf32>
    %c7 = arith.constant 7 : index
    %c0_57 = arith.constant 0 : index
    %c0_58 = arith.constant 0 : index
    %90 = vector.load %arg2[%c7, %c0_57, %c0_58] : memref<8x256x256xf32, #tpu.memory_space<vmem>>, vector<1x256x256xf32>
    %91 = vector.shape_cast %90 : vector<1x256x256xf32> to vector<256x256xf32>
    %cst_59 = arith.constant dense<0.000000e+00> : vector<8x256xf32>
    %92 = tpu.matmul %89, %91, %cst_59 {dimension_numbers = #tpu.dot_dimension_numbers<[1], [0], [0], [1], [0, 0, 1, 1], [], []>} : vector<8x256xf32>, vector<256x256xf32>, vector<8x256xf32> -> vector<8x256xf32>
    %c7_60 = arith.constant 7 : index
    %c0_61 = arith.constant 0 : index
    %c0_62 = arith.constant 0 : index
    %93 = vector.load %arg3[%c7_60, %c0_61, %c0_62] : memref<8x1x256xf32, #tpu.memory_space<vmem>>, vector<1x1x256xf32>
    %94 = vector.shape_cast %93 : vector<1x1x256xf32> to vector<1x256xf32>
    %95 = vector.broadcast %94 : vector<1x256xf32> to vector<8x256xf32>
    %96 = arith.addf %92, %95 : vector<8x256xf32>
    %97 = vector.extract_strided_slice %96 {offsets = [0, 0], sizes = [8, 128], strides = [1, 1]} : vector<8x256xf32> to vector<8x128xf32>
    %c0_63 = arith.constant 0 : index
    %c0_64 = arith.constant 0 : index
    %98 = vector.load %arg4[%c0_63, %c0_64] : memref<8x512xf32, #tpu.memory_space<vmem>>, vector<8x128xf32>
    tpu.vector_store %arg4[%c0_63, %c0_64], %97 {strides = array<i32>} : memref<8x512xf32, #tpu.memory_space<vmem>>, vector<8x128xf32>,
    %c0_65 = arith.constant 0 : index
    %c128 = arith.constant 128 : index
    %99 = vector.load %arg4[%c0_65, %c128] : memref<8x512xf32, #tpu.memory_space<vmem>>, vector<8x128xf32>
    tpu.vector_store %arg4[%c0_65, %c128], %51 {strides = array<i32>} : memref<8x512xf32, #tpu.memory_space<vmem>>, vector<8x128xf32>,
    %c0_66 = arith.constant 0 : index
    %c256 = arith.constant 256 : index
    %100 = vector.load %arg4[%c0_66, %c256] : memref<8x512xf32, #tpu.memory_space<vmem>>, vector<8x128xf32>
    tpu.vector_store %arg4[%c0_66, %c256], %45 {strides = array<i32>} : memref<8x512xf32, #tpu.memory_space<vmem>>, vector<8x128xf32>,
    %c0_67 = arith.constant 0 : index
    %c384 = arith.constant 384 : index
    %101 = vector.load %arg4[%c0_67, %c384] : memref<8x512xf32, #tpu.memory_space<vmem>>, vector<8x128xf32>
    tpu.vector_store %arg4[%c0_67, %c384], %46 {strides = array<i32>} : memref<8x512xf32, #tpu.memory_space<vmem>>, vector<8x128xf32>,
    return
  }
  func.func @transform_0(%arg0: i32) -> (i32, i32) {
    %c0_i32 = arith.constant 0 : i32
    %c0_i32_0 = arith.constant 0 : i32
    return %arg0, %c0_i32 : i32, i32
  }
  func.func @transform_1(%arg0: i32) -> (i32, i32, i32) {
    %c0_i32 = arith.constant 0 : i32
    %c0_i32_0 = arith.constant 0 : i32
    %c0_i32_1 = arith.constant 0 : i32
    %c0_i32_2 = arith.constant 0 : i32
    return %c0_i32, %c0_i32_0, %c0_i32_1 : i32, i32, i32
  }
  func.func @transform_2(%arg0: i32) -> (i32, i32, i32) {
    %c0_i32 = arith.constant 0 : i32
    %c0_i32_0 = arith.constant 0 : i32
    %c0_i32_1 = arith.constant 0 : i32
    %c0_i32_2 = arith.constant 0 : i32
    return %c0_i32, %c0_i32_0, %c0_i32_1 : i32, i32, i32
  }
  func.func @transform_3(%arg0: i32) -> (i32, i32) {
    %c0_i32 = arith.constant 0 : i32
    %c0_i32_0 = arith.constant 0 : i32
    return %arg0, %c0_i32 : i32, i32
  }
}

module attributes {stable_mosaic.version = 11 : i64} {
  func.func @kernel(%arg0: i32, %arg1: memref<8x256xf32, #tpu.memory_space<vmem>>, %arg2: memref<8x256x256xf32, #tpu.memory_space<vmem>>, %arg3: memref<8x1x256xf32, #tpu.memory_space<vmem>>, %arg4: memref<8x512xf32, #tpu.memory_space<vmem>>) attributes {dimension_semantics = [#tpu.dimension_semantics<parallel>], iteration_bounds = array<i64: 1>, scalar_prefetch = 0 : i64, scratch_operands = 0 : i64, tpu.core_type = #tpu.core_type<tc>, window_params = [{transform_indices = @transform_0, window_bounds = array<i64: 8, 256>}, {pipeline_mode = #tpu.pipeline_mode<synchronous>, transform_indices = @transform_1, window_bounds = array<i64: 8, 256, 256>}, {pipeline_mode = #tpu.pipeline_mode<synchronous>, transform_indices = @transform_2, window_bounds = array<i64: 8, 1, 256>}, {transform_indices = @transform_3, window_bounds = array<i64: 8, 512>}]} {
    %c0 = arith.constant 0 : index
    %c0_0 = arith.constant 0 : index
    %0 = vector.load %arg1[%c0, %c0_0] : memref<8x256xf32, #tpu.memory_space<vmem>>, vector<8x256xf32>
    %1 = vector.extract_strided_slice %0 {offsets = [0, 128], sizes = [8, 128], strides = [1, 1]} : vector<8x256xf32> to vector<8x128xf32>
    %c0_1 = arith.constant 0 : index
    %c0_2 = arith.constant 0 : index
    %c0_3 = arith.constant 0 : index
    %2 = vector.load %arg2[%c0_1, %c0_2, %c0_3] : memref<8x256x256xf32, #tpu.memory_space<vmem>>, vector<1x256x256xf32>
    %3 = vector.shape_cast %2 : vector<1x256x256xf32> to vector<256x256xf32>
    %cst = arith.constant dense<0.000000e+00> : vector<8x256xf32>
    %4 = tpu.matmul %0, %3, %cst {dimension_numbers = #tpu.dot_dimension_numbers<[1], [0], [0], [1], [0, 0, 1, 1], [], []>} : vector<8x256xf32>, vector<256x256xf32>, vector<8x256xf32> -> vector<8x256xf32>
    %c0_4 = arith.constant 0 : index
    %c0_5 = arith.constant 0 : index
    %c0_6 = arith.constant 0 : index
    %5 = vector.load %arg3[%c0_4, %c0_5, %c0_6] : memref<8x1x256xf32, #tpu.memory_space<vmem>>, vector<1x1x256xf32>
    %6 = vector.shape_cast %5 : vector<1x1x256xf32> to vector<1x256xf32>
    %7 = vector.broadcast %6 : vector<1x256xf32> to vector<8x256xf32>
    %8 = arith.addf %4, %7 : vector<8x256xf32>
    %cst_7 = arith.constant 0.000000e+00 : f32
    %9 = vector.broadcast %cst_7 : f32 to vector<8x256xf32>
    %10 = arith.cmpf ogt, %8, %9 : vector<8x256xf32>
    %cst_8 = arith.constant 2.000000e-01 : f32
    %11 = vector.broadcast %cst_8 : f32 to vector<8x256xf32>
    %12 = arith.mulf %11, %8 : vector<8x256xf32>
    %13 = arith.select %10, %8, %12 : vector<8x256xi1>, vector<8x256xf32>
    %c1 = arith.constant 1 : index
    %c0_9 = arith.constant 0 : index
    %c0_10 = arith.constant 0 : index
    %14 = vector.load %arg2[%c1, %c0_9, %c0_10] : memref<8x256x256xf32, #tpu.memory_space<vmem>>, vector<1x256x256xf32>
    %15 = vector.shape_cast %14 : vector<1x256x256xf32> to vector<256x256xf32>
    %cst_11 = arith.constant dense<0.000000e+00> : vector<8x256xf32>
    %16 = tpu.matmul %13, %15, %cst_11 {dimension_numbers = #tpu.dot_dimension_numbers<[1], [0], [0], [1], [0, 0, 1, 1], [], []>} : vector<8x256xf32>, vector<256x256xf32>, vector<8x256xf32> -> vector<8x256xf32>
    %c1_12 = arith.constant 1 : index
    %c0_13 = arith.constant 0 : index
    %c0_14 = arith.constant 0 : index
    %17 = vector.load %arg3[%c1_12, %c0_13, %c0_14] : memref<8x1x256xf32, #tpu.memory_space<vmem>>, vector<1x1x256xf32>
    %18 = vector.shape_cast %17 : vector<1x1x256xf32> to vector<1x256xf32>
    %19 = vector.broadcast %18 : vector<1x256xf32> to vector<8x256xf32>
    %20 = arith.addf %16, %19 : vector<8x256xf32>
    %cst_15 = arith.constant 0.000000e+00 : f32
    %21 = vector.broadcast %cst_15 : f32 to vector<8x256xf32>
    %22 = arith.cmpf ogt, %20, %21 : vector<8x256xf32>
    %cst_16 = arith.constant 2.000000e-01 : f32
    %23 = vector.broadcast %cst_16 : f32 to vector<8x256xf32>
    %24 = arith.mulf %23, %20 : vector<8x256xf32>
    %25 = arith.select %22, %20, %24 : vector<8x256xi1>, vector<8x256xf32>
    %c2 = arith.constant 2 : index
    %c0_17 = arith.constant 0 : index
    %c0_18 = arith.constant 0 : index
    %26 = vector.load %arg2[%c2, %c0_17, %c0_18] : memref<8x256x256xf32, #tpu.memory_space<vmem>>, vector<1x256x256xf32>
    %27 = vector.shape_cast %26 : vector<1x256x256xf32> to vector<256x256xf32>
    %cst_19 = arith.constant dense<0.000000e+00> : vector<8x256xf32>
    %28 = tpu.matmul %25, %27, %cst_19 {dimension_numbers = #tpu.dot_dimension_numbers<[1], [0], [0], [1], [0, 0, 1, 1], [], []>} : vector<8x256xf32>, vector<256x256xf32>, vector<8x256xf32> -> vector<8x256xf32>
    %c2_20 = arith.constant 2 : index
    %c0_21 = arith.constant 0 : index
    %c0_22 = arith.constant 0 : index
    %29 = vector.load %arg3[%c2_20, %c0_21, %c0_22] : memref<8x1x256xf32, #tpu.memory_space<vmem>>, vector<1x1x256xf32>
    %30 = vector.shape_cast %29 : vector<1x1x256xf32> to vector<1x256xf32>
    %31 = vector.broadcast %30 : vector<1x256xf32> to vector<8x256xf32>
    %32 = arith.addf %28, %31 : vector<8x256xf32>
    %cst_23 = arith.constant 0.000000e+00 : f32
    %33 = vector.broadcast %cst_23 : f32 to vector<8x256xf32>
    %34 = arith.cmpf ogt, %32, %33 : vector<8x256xf32>
    %cst_24 = arith.constant 2.000000e-01 : f32
    %35 = vector.broadcast %cst_24 : f32 to vector<8x256xf32>
    %36 = arith.mulf %35, %32 : vector<8x256xf32>
    %37 = arith.select %34, %32, %36 : vector<8x256xi1>, vector<8x256xf32>
    %c3 = arith.constant 3 : index
    %c0_25 = arith.constant 0 : index
    %c0_26 = arith.constant 0 : index
    %38 = vector.load %arg2[%c3, %c0_25, %c0_26] : memref<8x256x256xf32, #tpu.memory_space<vmem>>, vector<1x256x256xf32>
    %39 = vector.shape_cast %38 : vector<1x256x256xf32> to vector<256x256xf32>
    %cst_27 = arith.constant dense<0.000000e+00> : vector<8x256xf32>
    %40 = tpu.matmul %37, %39, %cst_27 {dimension_numbers = #tpu.dot_dimension_numbers<[1], [0], [0], [1], [0, 0, 1, 1], [], []>} : vector<8x256xf32>, vector<256x256xf32>, vector<8x256xf32> -> vector<8x256xf32>
    %c3_28 = arith.constant 3 : index
    %c0_29 = arith.constant 0 : index
    %c0_30 = arith.constant 0 : index
    %41 = vector.load %arg3[%c3_28, %c0_29, %c0_30] : memref<8x1x256xf32, #tpu.memory_space<vmem>>, vector<1x1x256xf32>
    %42 = vector.shape_cast %41 : vector<1x1x256xf32> to vector<1x256xf32>
    %43 = vector.broadcast %42 : vector<1x256xf32> to vector<8x256xf32>
    %44 = arith.addf %40, %43 : vector<8x256xf32>
    %45 = vector.extract_strided_slice %44 {offsets = [0, 0], sizes = [8, 128], strides = [1, 1]} : vector<8x256xf32> to vector<8x128xf32>
    %46 = vector.extract_strided_slice %44 {offsets = [0, 128], sizes = [8, 128], strides = [1, 1]} : vector<8x256xf32> to vector<8x128xf32>
    %cst_31 = arith.constant 5.000000e-01 : f32
    %47 = vector.broadcast %cst_31 : f32 to vector<8x128xf32>
    %48 = arith.mulf %47, %46 : vector<8x128xf32>
    %49 = math.exp %48 : vector<8x128xf32>
    %50 = arith.mulf %49, %1 : vector<8x128xf32>
    %51 = arith.addf %45, %50 : vector<8x128xf32>
    %cst_32 = arith.constant 0.000000e+00 : f32
    %52 = vector.broadcast %cst_32 : f32 to vector<8x128xf32>
    %53 = tpu.concatenate %51, %52 in 1 : vector<8x128xf32>, vector<8x128xf32> -> vector<8x256xf32>
    %c4 = arith.constant 4 : index
    %c0_33 = arith.constant 0 : index
    %c0_34 = arith.constant 0 : index
    %54 = vector.load %arg2[%c4, %c0_33, %c0_34] : memref<8x256x256xf32, #tpu.memory_space<vmem>>, vector<1x256x256xf32>
    %55 = vector.shape_cast %54 : vector<1x256x256xf32> to vector<256x256xf32>
    %cst_35 = arith.constant dense<0.000000e+00> : vector<8x256xf32>
    %56 = tpu.matmul %53, %55, %cst_35 {dimension_numbers = #tpu.dot_dimension_numbers<[1], [0], [0], [1], [0, 0, 1, 1], [], []>} : vector<8x256xf32>, vector<256x256xf32>, vector<8x256xf32> -> vector<8x256xf32>
    %c4_36 = arith.constant 4 : index
    %c0_37 = arith.constant 0 : index
    %c0_38 = arith.constant 0 : index
    %57 = vector.load %arg3[%c4_36, %c0_37, %c0_38] : memref<8x1x256xf32, #tpu.memory_space<vmem>>, vector<1x1x256xf32>
    %58 = vector.shape_cast %57 : vector<1x1x256xf32> to vector<1x256xf32>
    %59 = vector.broadcast %58 : vector<1x256xf32> to vector<8x256xf32>
    %60 = arith.addf %56, %59 : vector<8x256xf32>
    %cst_39 = arith.constant 0.000000e+00 : f32
    %61 = vector.broadcast %cst_39 : f32 to vector<8x256xf32>
    %62 = arith.cmpf ogt, %60, %61 : vector<8x256xf32>
    %cst_40 = arith.constant 2.000000e-01 : f32
    %63 = vector.broadcast %cst_40 : f32 to vector<8x256xf32>
    %64 = arith.mulf %63, %60 : vector<8x256xf32>
    %65 = arith.select %62, %60, %64 : vector<8x256xi1>, vector<8x256xf32>
    %c5 = arith.constant 5 : index
    %c0_41 = arith.constant 0 : index
    %c0_42 = arith.constant 0 : index
    %66 = vector.load %arg2[%c5, %c0_41, %c0_42] : memref<8x256x256xf32, #tpu.memory_space<vmem>>, vector<1x256x256xf32>
    %67 = vector.shape_cast %66 : vector<1x256x256xf32> to vector<256x256xf32>
    %cst_43 = arith.constant dense<0.000000e+00> : vector<8x256xf32>
    %68 = tpu.matmul %65, %67, %cst_43 {dimension_numbers = #tpu.dot_dimension_numbers<[1], [0], [0], [1], [0, 0, 1, 1], [], []>} : vector<8x256xf32>, vector<256x256xf32>, vector<8x256xf32> -> vector<8x256xf32>
    %c5_44 = arith.constant 5 : index
    %c0_45 = arith.constant 0 : index
    %c0_46 = arith.constant 0 : index
    %69 = vector.load %arg3[%c5_44, %c0_45, %c0_46] : memref<8x1x256xf32, #tpu.memory_space<vmem>>, vector<1x1x256xf32>
    %70 = vector.shape_cast %69 : vector<1x1x256xf32> to vector<1x256xf32>
    %71 = vector.broadcast %70 : vector<1x256xf32> to vector<8x256xf32>
    %72 = arith.addf %68, %71 : vector<8x256xf32>
    %cst_47 = arith.constant 0.000000e+00 : f32
    %73 = vector.broadcast %cst_47 : f32 to vector<8x256xf32>
    %74 = arith.cmpf ogt, %72, %73 : vector<8x256xf32>
    %cst_48 = arith.constant 2.000000e-01 : f32
    %75 = vector.broadcast %cst_48 : f32 to vector<8x256xf32>
    %76 = arith.mulf %75, %72 : vector<8x256xf32>
    %77 = arith.select %74, %72, %76 : vector<8x256xi1>, vector<8x256xf32>
    %c6 = arith.constant 6 : index
    %c0_49 = arith.constant 0 : index
    %c0_50 = arith.constant 0 : index
    %78 = vector.load %arg2[%c6, %c0_49, %c0_50] : memref<8x256x256xf32, #tpu.memory_space<vmem>>, vector<1x256x256xf32>
    %79 = vector.shape_cast %78 : vector<1x256x256xf32> to vector<256x256xf32>
    %cst_51 = arith.constant dense<0.000000e+00> : vector<8x256xf32>
    %80 = tpu.matmul %77, %79, %cst_51 {dimension_numbers = #tpu.dot_dimension_numbers<[1], [0], [0], [1], [0, 0, 1, 1], [], []>} : vector<8x256xf32>, vector<256x256xf32>, vector<8x256xf32> -> vector<8x256xf32>
    %c6_52 = arith.constant 6 : index
    %c0_53 = arith.constant 0 : index
    %c0_54 = arith.constant 0 : index
    %81 = vector.load %arg3[%c6_52, %c0_53, %c0_54] : memref<8x1x256xf32, #tpu.memory_space<vmem>>, vector<1x1x256xf32>
    %82 = vector.shape_cast %81 : vector<1x1x256xf32> to vector<1x256xf32>
    %83 = vector.broadcast %82 : vector<1x256xf32> to vector<8x256xf32>
    %84 = arith.addf %80, %83 : vector<8x256xf32>
    %cst_55 = arith.constant 0.000000e+00 : f32
    %85 = vector.broadcast %cst_55 : f32 to vector<8x256xf32>
    %86 = arith.cmpf ogt, %84, %85 : vector<8x256xf32>
    %cst_56 = arith.constant 2.000000e-01 : f32
    %87 = vector.broadcast %cst_56 : f32 to vector<8x256xf32>
    %88 = arith.mulf %87, %84 : vector<8x256xf32>
    %89 = arith.select %86, %84, %88 : vector<8x256xi1>, vector<8x256xf32>
    %c7 = arith.constant 7 : index
    %c0_57 = arith.constant 0 : index
    %c0_58 = arith.constant 0 : index
    %90 = vector.load %arg2[%c7, %c0_57, %c0_58] : memref<8x256x256xf32, #tpu.memory_space<vmem>>, vector<1x256x256xf32>
    %91 = vector.shape_cast %90 : vector<1x256x256xf32> to vector<256x256xf32>
    %cst_59 = arith.constant dense<0.000000e+00> : vector<8x256xf32>
    %92 = tpu.matmul %89, %91, %cst_59 {dimension_numbers = #tpu.dot_dimension_numbers<[1], [0], [0], [1], [0, 0, 1, 1], [], []>} : vector<8x256xf32>, vector<256x256xf32>, vector<8x256xf32> -> vector<8x256xf32>
    %c7_60 = arith.constant 7 : index
    %c0_61 = arith.constant 0 : index
    %c0_62 = arith.constant 0 : index
    %93 = vector.load %arg3[%c7_60, %c0_61, %c0_62] : memref<8x1x256xf32, #tpu.memory_space<vmem>>, vector<1x1x256xf32>
    %94 = vector.shape_cast %93 : vector<1x1x256xf32> to vector<1x256xf32>
    %95 = vector.broadcast %94 : vector<1x256xf32> to vector<8x256xf32>
    %96 = arith.addf %92, %95 : vector<8x256xf32>
    %97 = vector.extract_strided_slice %96 {offsets = [0, 0], sizes = [8, 128], strides = [1, 1]} : vector<8x256xf32> to vector<8x128xf32>
    %c0_63 = arith.constant 0 : index
    %c0_64 = arith.constant 0 : index
    %98 = vector.load %arg4[%c0_63, %c0_64] : memref<8x512xf32, #tpu.memory_space<vmem>>, vector<8x128xf32>
    tpu.vector_store %arg4[%c0_63, %c0_64], %97 {strides = array<i32>} : memref<8x512xf32, #tpu.memory_space<vmem>>, vector<8x128xf32>,
    %c0_65 = arith.constant 0 : index
    %c128 = arith.constant 128 : index
    %99 = vector.load %arg4[%c0_65, %c128] : memref<8x512xf32, #tpu.memory_space<vmem>>, vector<8x128xf32>
    tpu.vector_store %arg4[%c0_65, %c128], %51 {strides = array<i32>} : memref<8x512xf32, #tpu.memory_space<vmem>>, vector<8x128xf32>,
    %c0_66 = arith.constant 0 : index
    %c256 = arith.constant 256 : index
    %100 = vector.load %arg4[%c0_66, %c256] : memref<8x512xf32, #tpu.memory_space<vmem>>, vector<8x128xf32>
    tpu.vector_store %arg4[%c0_66, %c256], %45 {strides = array<i32>} : memref<8x512xf32, #tpu.memory_space<vmem>>, vector<8x128xf32>,
    %c0_67 = arith.constant 0 : index
    %c384 = arith.constant 384 : index
    %101 = vector.load %arg4[%c0_67, %c384] : memref<8x512xf32, #tpu.memory_space<vmem>>, vector<8x128xf32>
    tpu.vector_store %arg4[%c0_67, %c384], %46 {strides = array<i32>} : memref<8x512xf32, #tpu.memory_space<vmem>>, vector<8x128xf32>,
    return
  }
  func.func @transform_0(%arg0: i32) -> (i32, i32) {
    %c0_i32 = arith.constant 0 : i32
    %c0_i32_0 = arith.constant 0 : i32
    return %arg0, %c0_i32 : i32, i32
  }
  func.func @transform_1(%arg0: i32) -> (i32, i32, i32) {
    %c0_i32 = arith.constant 0 : i32
    %c0_i32_0 = arith.constant 0 : i32
    %c0_i32_1 = arith.constant 0 : i32
    %c0_i32_2 = arith.constant 0 : i32
    return %c0_i32, %c0_i32_0, %c0_i32_1 : i32, i32, i32
  }
  func.func @transform_2(%arg0: i32) -> (i32, i32, i32) {
    %c0_i32 = arith.constant 0 : i32
    %c0_i32_0 = arith.constant 0 : i32
    %c0_i32_1 = arith.constant 0 : i32
    %c0_i32_2 = arith.constant 0 : i32
    return %c0_i32, %c0_i32_0, %c0_i32_1 : i32, i32, i32
  }
  func.func @transform_3(%arg0: i32) -> (i32, i32) {
    %c0_i32 = arith.constant 0 : i32
    %c0_i32_0 = arith.constant 0 : i32
    return %arg0, %c0_i32 : i32, i32
  }
}

</mosaic_0001>

<bundles_post_ra>
// kernel: tpu_custom_call.1
= control target key start
LH: loop header
LB: loop body
LE: loop exit
PB: predicated region body
PF: predicated region fallthrough
CT: control target
= control target key end

     0   :  { %8 = vsyncpa [#allocation3], 0  ;;  %s1428_s0 = inlined_call_operand.hbm [shape: f32[8,256], index: 0, kind: input, shape index: {}]   ;;  %s1429_s1 = inlined_call_operand.hbm [shape: f32[8,256,256], index: 1, kind: input, shape index: {}]   ;;  %s1430_s2 = inlined_call_operand.hbm [shape: f32[8,1,256], index: 2, kind: input, shape index: {}]   ;;  %s1431_s3 = inlined_call_operand.hbm [shape: f32[8,512], index: 3, kind: output, shape index: {}]  }
   0x1   :  { %9 = vsyncpa [#allocation6], 0  ;;  %s26_s14 = sshll.u32 %s1429_s1, 4  ;;  %s27_s14 = int_to_ptr.hbm [resolvable:$true] %s26_s14 }
   0x2   :  { %10 = vsyncpa [#allocation4], 0  ;;  %s1379_s15 = smov [#allocation5]   ;;  %s16_s19 = sshll.u32 %s1428_s0, 4  ;;  %s17_s19 = int_to_ptr.hbm [resolvable:$true] %s16_s19 }
   0x3   :  { %s28_s16 = sshll.u32 %s1379_s15, 4  ;;  %s1380_s20 = smov 256   ;;  %s29_s16 = int_to_ptr.vmem [resolvable:$true] %s28_s16 }
   0x4   :  { %s1381_s21 = smov 16   ;;  %s1382_s22 = smov [#allocation2]  }
   0x5   :  { %34 = dma.hbm_to_vmem [thread:$0]  %s27_s14, 65536, %s29_s16, [#allocation6], %s1380_s20, %s1380_s20, %s1381_s21  }
   0x6   :  { %s18_s23 = sshll.u32 %s1382_s22, 4  ;;  %s39_s26 = sshll.u32 %s1430_s2, 4  ;;  %s19_s23 = int_to_ptr.vmem [resolvable:$true] %s18_s23  ;;  %s40_s26 = int_to_ptr.hbm [resolvable:$true] %s39_s26 }
   0x7   :  { %21 = dma.hbm_to_vmem [thread:$0]  %s17_s19, 256, %s19_s23, [#allocation3]  }
   0x8   :  { %s1383_s1 = smov [#allocation7]   ;;  %s1384_s28 = smov 32  }
   0x9   :  { %s41_s27 = sshll.u32 %s1383_s1, 4  ;;  %s1385_s29 = smov 2   ;;  %s42_s27 = int_to_ptr.vmem [resolvable:$true] %s41_s27 }
   0xa   :  { %47 = dma.hbm_to_vmem [thread:$0]  %s40_s26, 256, %s42_s27, [#allocation6], %s1384_s28, %s1384_s28, %s1385_s29  }
   0xb   :  { %1373 = dma.done.wait [#allocation3], 256  }
   0xc   :  { %1374 = vsyncadd [#allocation3], 4294967040 }
   0xd   :  { %1375 = dma.done.wait [#allocation6], 65792  }
   0xe   :  { %1376 = vsyncadd [#allocation6], 4294901504  ;;  %v93_v0 = vld [vmem:[#allocation5 + $0xf8] sm:$0xff]  ;;  %v92_v1 = vld [vmem:[#allocation5 + $0xf0] sm:$0xff]  ;;  %s1387_s0 = smov [#allocation8]   ;;  %s1254_s5 = sshll.u32 %s1431_s3, 4  ;;  %s1255_s5 = int_to_ptr.hbm [resolvable:$true] %s1254_s5 }
   0xf   :  { %v91_v2 = vld [vmem:[#allocation5 + $0xe8] sm:$0xff]  ;;  %172 = vmatpush.msra.mxu2 %v93_v0  ;;  %132 = vmatpush.msra.mxu0 %v92_v1  ;;  %v125_v3 = vld [vmem:[#allocation5 + $0x1f8] sm:$0xff]  ;;  %v90_v4 = vld [vmem:[#allocation5 + $0xe0] sm:$0xff]  ;;  %s1252_s2 = sshll.u32 %s1387_s0, 4  ;;  %s1253_s2 = int_to_ptr.vmem [resolvable:$true] %s1252_s2 }
  0x10   :  { %v124_v5 = vld [vmem:[#allocation5 + $0x1f0] sm:$0xff]  ;;  %192 = vmatpush.msra.mxu3 %v125_v3  ;;  %v89_v6 = vld [vmem:[#allocation5 + $0xd8] sm:$0xff]  ;;  %v123_v7 = vld [vmem:[#allocation5 + $0x1e8] sm:$0xff] }
  0x11   :  { %152 = vmatpush.msra.mxu1 %v124_v5  ;;  %v88_v8 = vld [vmem:[#allocation5 + $0xd0] sm:$0xff]  ;;  %173 = vmatpush.msra.mxu2 %v91_v2  ;;  %v122_v9 = vld [vmem:[#allocation5 + $0x1e0] sm:$0xff]  ;;  %v121_v10 = vld [vmem:[#allocation5 + $0x1d8] sm:$0xff] }
  0x12   :  { %133 = vmatpush.msra.mxu0 %v90_v4  ;;  %193 = vmatpush.msra.mxu3 %v123_v7  ;;  %v87_v11 = vld [vmem:[#allocation5 + $0xc8] sm:$0xff]  ;;  %v86_v12 = vld [vmem:[#allocation5 + $0xc0] sm:$0xff]  ;;  %v120_v13 = vld [vmem:[#allocation5 + $0x1d0] sm:$0xff] }
  0x13   :  { %153 = vmatpush.msra.mxu1 %v122_v9  ;;  %174 = vmatpush.msra.mxu2 %v89_v6  ;;  %v119_v14 = vld [vmem:[#allocation5 + $0x1c8] sm:$0xff]  ;;  %v118_v15 = vld [vmem:[#allocation5 + $0x1c0] sm:$0xff]  ;;  %v85_v16 = vld [vmem:[#allocation5 + $0xb8] sm:$0xff] }
  0x14   :  { %134 = vmatpush.msra.mxu0 %v88_v8  ;;  %194 = vmatpush.msra.mxu3 %v121_v10  ;;  %v84_v17 = vld [vmem:[#allocation5 + $0xb0] sm:$0xff]  ;;  %v117_v18 = vld [vmem:[#allocation5 + $0x1b8] sm:$0xff]  ;;  %v83_v20 = vld [vmem:[#allocation5 + $0xa8] sm:$0xff] }
  0x15   :  { %154 = vmatpush.msra.mxu1 %v120_v13  ;;  %175 = vmatpush.msra.mxu2 %v87_v11  ;;  %v116_v19 = vld [vmem:[#allocation5 + $0x1b0] sm:$0xff]  ;;  %v82_v21 = vld [vmem:[#allocation5 + $0xa0] sm:$0xff]  ;;  %v115_v22 = vld [vmem:[#allocation5 + $0x1a8] sm:$0xff] }
  0x16   :  { %135 = vmatpush.msra.mxu0 %v86_v12  ;;  %195 = vmatpush.msra.mxu3 %v119_v14  ;;  %v114_v23 = vld [vmem:[#allocation5 + $0x1a0] sm:$0xff]  ;;  %v81_v24 = vld [vmem:[#allocation5 + $0x98] sm:$0xff]  ;;  %v80_v25 = vld [vmem:[#allocation5 + $0x90] sm:$0xff] }
  0x17   :  { %155 = vmatpush.msra.mxu1 %v118_v15  ;;  %176 = vmatpush.msra.mxu2 %v85_v16  ;;  %v113_v26 = vld [vmem:[#allocation5 + $0x198] sm:$0xff]  ;;  %v112_v27 = vld [vmem:[#allocation5 + $0x190] sm:$0xff]  ;;  %v79_v28 = vld [vmem:[#allocation5 + $0x88] sm:$0xff] }
  0x18   :  { %136 = vmatpush.msra.mxu0 %v84_v17  ;;  %196 = vmatpush.msra.mxu3 %v117_v18  ;;  %v78_v29 = vld [vmem:[#allocation5 + $0x80] sm:$0xff]  ;;  %v111_v30 = vld [vmem:[#allocation5 + $0x188] sm:$0xff]  ;;  %v77_v32 = vld [vmem:[#allocation5 + $0x78] sm:$0xff] }
  0x19   :  { %156 = vmatpush.msra.mxu1 %v116_v19  ;;  %177 = vmatpush.msra.mxu2 %v83_v20  ;;  %v110_v31 = vld [vmem:[#allocation5 + $0x180] sm:$0xff]  ;;  %v76_v33 = vld [vmem:[#allocation5 + $0x70] sm:$0xff]  ;;  %v109_v34 = vld [vmem:[#allocation5 + $0x178] sm:$0xff] }
  0x1a   :  { %137 = vmatpush.msra.mxu0 %v82_v21  ;;  %197 = vmatpush.msra.mxu3 %v115_v22  ;;  %v108_v35 = vld [vmem:[#allocation5 + $0x170] sm:$0xff]  ;;  %v75_v36 = vld [vmem:[#allocation5 + $0x68] sm:$0xff]  ;;  %v74_v37 = vld [vmem:[#allocation5 + $0x60] sm:$0xff] }
  0x1b   :  { %157 = vmatpush.msra.mxu1 %v114_v23  ;;  %178 = vmatpush.msra.mxu2 %v81_v24  ;;  %v107_v38 = vld [vmem:[#allocation5 + $0x168] sm:$0xff]  ;;  %v106_v39 = vld [vmem:[#allocation5 + $0x160] sm:$0xff]  ;;  %v73_v40 = vld [vmem:[#allocation5 + $0x58] sm:$0xff] }
  0x1c   :  { %138 = vmatpush.msra.mxu0 %v80_v25  ;;  %198 = vmatpush.msra.mxu3 %v113_v26  ;;  %v72_v41 = vld [vmem:[#allocation5 + $0x50] sm:$0xff]  ;;  %v105_v42 = vld [vmem:[#allocation5 + $0x158] sm:$0xff]  ;;  %v71_v44 = vld [vmem:[#allocation5 + $0x48] sm:$0xff] }
  0x1d   :  { %158 = vmatpush.msra.mxu1 %v112_v27  ;;  %179 = vmatpush.msra.mxu2 %v79_v28  ;;  %v104_v43 = vld [vmem:[#allocation5 + $0x150] sm:$0xff]  ;;  %v70_v45 = vld [vmem:[#allocation5 + $0x40] sm:$0xff]  ;;  %v103_v46 = vld [vmem:[#allocation5 + $0x148] sm:$0xff] }
  0x1e   :  { %139 = vmatpush.msra.mxu0 %v78_v29  ;;  %199 = vmatpush.msra.mxu3 %v111_v30  ;;  %v102_v47 = vld [vmem:[#allocation5 + $0x140] sm:$0xff]  ;;  %v69_v48 = vld [vmem:[#allocation5 + $0x38] sm:$0xff]  ;;  %v68_v49 = vld [vmem:[#allocation5 + $0x30] sm:$0xff] }
  0x1f   :  { %159 = vmatpush.msra.mxu1 %v110_v31  ;;  %180 = vmatpush.msra.mxu2 %v77_v32  ;;  %v101_v50 = vld [vmem:[#allocation5 + $0x138] sm:$0xff]  ;;  %v100_v51 = vld [vmem:[#allocation5 + $0x130] sm:$0xff]  ;;  %v67_v52 = vld [vmem:[#allocation5 + $0x28] sm:$0xff] }
  0x20   :  { %140 = vmatpush.msra.mxu0 %v76_v33  ;;  %200 = vmatpush.msra.mxu3 %v109_v34  ;;  %v66_v53 = vld [vmem:[#allocation5 + $0x20] sm:$0xff]  ;;  %v99_v54 = vld [vmem:[#allocation5 + $0x128] sm:$0xff]  ;;  %v65_v56 = vld [vmem:[#allocation5 + $0x18] sm:$0xff] }
  0x21   :  { %160 = vmatpush.msra.mxu1 %v108_v35  ;;  %181 = vmatpush.msra.mxu2 %v75_v36  ;;  %v98_v55 = vld [vmem:[#allocation5 + $0x120] sm:$0xff]  ;;  %v64_v57 = vld [vmem:[#allocation5 + $0x10] sm:$0xff]  ;;  %v97_v58 = vld [vmem:[#allocation5 + $0x118] sm:$0xff] }
  0x22   :  { %141 = vmatpush.msra.mxu0 %v74_v37  ;;  %201 = vmatpush.msra.mxu3 %v107_v38  ;;  %v96_v59 = vld [vmem:[#allocation5 + $0x110] sm:$0xff]  ;;  %v63_v60 = vld [vmem:[#allocation5 + $0x8] sm:$0xff]  ;;  %v62_v61 = vld [vmem:[#allocation5] sm:$0xff] }
  0x23   :  { %161 = vmatpush.msra.mxu1 %v106_v39  ;;  %182 = vmatpush.msra.mxu2 %v73_v40  ;;  %v60_v62 = vld [vmem:[#allocation2] sm:$0xff]  ;;  %v95_v63 = vld [vmem:[#allocation5 + $0x108] sm:$0xff]  ;;  %v61_v0 = vld [vmem:[#allocation2 + $0x8] sm:$0xff] }
  0x24   :  { %142 = vmatpush.msra.mxu0 %v72_v41  ;;  %202 = vmatpush.msra.mxu3 %v105_v42  ;;  %v94_v1 = vld [vmem:[#allocation5 + $0x100] sm:$0xff]  ;;  %v249_v2 = vld [vmem:[#allocation5 + $0x2f0] sm:$0xff]  ;;  %v250_v3 = vld [vmem:[#allocation5 + $0x2f8] sm:$0xff] }
  0x25   :  { %162 = vmatpush.msra.mxu1 %v104_v43  ;;  %183 = vmatpush.msra.mxu2 %v71_v44  ;;  %v247_v4 = vld [vmem:[#allocation5 + $0x2e0] sm:$0xff]  ;;  %v281_v5 = vld [vmem:[#allocation5 + $0x3f0] sm:$0xff]  ;;  %v248_v6 = vld [vmem:[#allocation5 + $0x2e8] sm:$0xff] }
  0x26   :  { %143 = vmatpush.msra.mxu0 %v70_v45  ;;  %203 = vmatpush.msra.mxu3 %v103_v46  ;;  %v282_v7 = vld [vmem:[#allocation5 + $0x3f8] sm:$0xff]  ;;  %v245_v8 = vld [vmem:[#allocation5 + $0x2d0] sm:$0xff]  ;;  %v279_v9 = vld [vmem:[#allocation5 + $0x3e0] sm:$0xff] }
  0x27   :  { %163 = vmatpush.msra.mxu1 %v102_v47  ;;  %184 = vmatpush.msra.mxu2 %v69_v48  ;;  %v246_v10 = vld [vmem:[#allocation5 + $0x2d8] sm:$0xff]  ;;  %v280_v11 = vld [vmem:[#allocation5 + $0x3e8] sm:$0xff]  ;;  %v243_v12 = vld [vmem:[#allocation5 + $0x2c0] sm:$0xff] }
  0x28   :  { %144 = vmatpush.msra.mxu0 %v68_v49  ;;  %204 = vmatpush.msra.mxu3 %v101_v50  ;;  %v277_v13 = vld [vmem:[#allocation5 + $0x3d0] sm:$0xff]  ;;  %v244_v14 = vld [vmem:[#allocation5 + $0x2c8] sm:$0xff]  ;;  %v278_v15 = vld [vmem:[#allocation5 + $0x3d8] sm:$0xff] }
  0x29   :  { %164 = vmatpush.msra.mxu1 %v100_v51  ;;  %185 = vmatpush.msra.mxu2 %v67_v52  ;;  %v241_v16 = vld [vmem:[#allocation5 + $0x2b0] sm:$0xff]  ;;  %v275_v17 = vld [vmem:[#allocation5 + $0x3c0] sm:$0xff]  ;;  %v242_v18 = vld [vmem:[#allocation5 + $0x2b8] sm:$0xff] }
  0x2a   :  { %145 = vmatpush.msra.mxu0 %v66_v53  ;;  %205 = vmatpush.msra.mxu3 %v99_v54  ;;  %v276_v19 = vld [vmem:[#allocation5 + $0x3c8] sm:$0xff]  ;;  %v239_v20 = vld [vmem:[#allocation5 + $0x2a0] sm:$0xff]  ;;  %v273_v21 = vld [vmem:[#allocation5 + $0x3b0] sm:$0xff] }
  0x2b   :  { %165 = vmatpush.msra.mxu1 %v98_v55  ;;  %186 = vmatpush.msra.mxu2 %v65_v56  ;;  %v240_v22 = vld [vmem:[#allocation5 + $0x2a8] sm:$0xff]  ;;  %v274_v23 = vld [vmem:[#allocation5 + $0x3b8] sm:$0xff]  ;;  %v237_v24 = vld [vmem:[#allocation5 + $0x290] sm:$0xff] }
  0x2c   :  { %146 = vmatpush.msra.mxu0 %v64_v57  ;;  %206 = vmatpush.msra.mxu3 %v97_v58  ;;  %v271_v25 = vld [vmem:[#allocation5 + $0x3a0] sm:$0xff]  ;;  %v238_v26 = vld [vmem:[#allocation5 + $0x298] sm:$0xff]  ;;  %v272_v27 = vld [vmem:[#allocation5 + $0x3a8] sm:$0xff] }
  0x2d   :  { %166 = vmatpush.msra.mxu1 %v96_v59  ;;  %187 = vmatpush.msra.mxu2 %v63_v60  ;;  %v235_v28 = vld [vmem:[#allocation5 + $0x280] sm:$0xff]  ;;  %v269_v29 = vld [vmem:[#allocation5 + $0x390] sm:$0xff]  ;;  %v236_v30 = vld [vmem:[#allocation5 + $0x288] sm:$0xff] }
  0x2e   :  { %147 = vmatpush.msra.mxu0 %v62_v61  ;;  %188 = vmatmul.f32.vlgmr.msra.gmra.mxu2 %v60_v62  ;;  %v270_v31 = vld [vmem:[#allocation5 + $0x398] sm:$0xff]  ;;  %v233_v32 = vld [vmem:[#allocation5 + $0x270] sm:$0xff]  ;;  %v267_v33 = vld [vmem:[#allocation5 + $0x380] sm:$0xff] }
  0x2f   :  { %207 = vmatpush.msra.mxu3 %v95_v63  ;;  %148 = vmatmul.f32.vlgmr.msra.gmra.mxu0 %v60_v62  ;;  %v234_v34 = vld [vmem:[#allocation5 + $0x278] sm:$0xff]  ;;  %v268_v35 = vld [vmem:[#allocation5 + $0x388] sm:$0xff]  ;;  %v231_v36 = vld [vmem:[#allocation5 + $0x260] sm:$0xff] }
  0x30   :  { %208 = vmatmul.f32.vlgmr.msra.gmra.mxu3 %v61_v0  ;;  %167 = vmatpush.msra.mxu1 %v94_v1  ;;  %v265_v37 = vld [vmem:[#allocation5 + $0x370] sm:$0xff]  ;;  %v232_v38 = vld [vmem:[#allocation5 + $0x268] sm:$0xff]  ;;  %v266_v39 = vld [vmem:[#allocation5 + $0x378] sm:$0xff] }
  0x31   :  { %290 = vmatpush.msrb.mxu0 %v249_v2  ;;  %168 = vmatmul.f32.vlgmr.msra.gmra.mxu1 %v61_v0  ;;  %v229_v40 = vld [vmem:[#allocation5 + $0x250] sm:$0xff]  ;;  %v263_v41 = vld [vmem:[#allocation5 + $0x360] sm:$0xff]  ;;  %v230_v42 = vld [vmem:[#allocation5 + $0x258] sm:$0xff] }
  0x32   :  { %330 = vmatpush.msrb.mxu2 %v250_v3  ;;  %310 = vmatpush.msrb.mxu1 %v281_v5  ;;  %v264_v43 = vld [vmem:[#allocation5 + $0x368] sm:$0xff]  ;;  %v227_v44 = vld [vmem:[#allocation5 + $0x240] sm:$0xff]  ;;  %v225_v46 = vld [vmem:[#allocation5 + $0x230] sm:$0xff] }
  0x33   :  { %291 = vmatpush.msrb.mxu0 %v247_v4  ;;  %350 = vmatpush.msrb.mxu3 %v282_v7  ;;  %v228_v45 = vld [vmem:[#allocation5 + $0x248] sm:$0xff]  ;;  %v261_v47 = vld [vmem:[#allocation5 + $0x350] sm:$0xff]  ;;  %v226_v48 = vld [vmem:[#allocation5 + $0x238] sm:$0xff] }
  0x34   :  { %331 = vmatpush.msrb.mxu2 %v248_v6  ;;  %311 = vmatpush.msrb.mxu1 %v279_v9  ;;  %v262_v49 = vld [vmem:[#allocation5 + $0x358] sm:$0xff]  ;;  %v223_v50 = vld [vmem:[#allocation5 + $0x220] sm:$0xff]  ;;  %v224_v52 = vld [vmem:[#allocation5 + $0x228] sm:$0xff] }
  0x35   :  { %292 = vmatpush.msrb.mxu0 %v245_v8  ;;  %351 = vmatpush.msrb.mxu3 %v280_v11  ;;  %v259_v51 = vld [vmem:[#allocation5 + $0x340] sm:$0xff]  ;;  %v260_v53 = vld [vmem:[#allocation5 + $0x348] sm:$0xff]  ;;  %v221_v54 = vld [vmem:[#allocation5 + $0x210] sm:$0xff] }
  0x36   :  { %332 = vmatpush.msrb.mxu2 %v246_v10  ;;  %312 = vmatpush.msrb.mxu1 %v277_v13  ;;  %v257_v55 = vld [vmem:[#allocation5 + $0x330] sm:$0xff]  ;;  %v222_v56 = vld [vmem:[#allocation5 + $0x218] sm:$0xff]  ;;  %v219_v58 = vld [vmem:[#allocation5 + $0x200] sm:$0xff] }
  0x37   :  { %293 = vmatpush.msrb.mxu0 %v243_v12  ;;  %352 = vmatpush.msrb.mxu3 %v278_v15  ;;  %v258_v57 = vld [vmem:[#allocation5 + $0x338] sm:$0xff]  ;;  %v255_v59 = vld [vmem:[#allocation5 + $0x320] sm:$0xff]  ;;  %v220_v60 = vld [vmem:[#allocation5 + $0x208] sm:$0xff] }
  0x38   :  { %333 = vmatpush.msrb.mxu2 %v244_v14  ;;  %313 = vmatpush.msrb.mxu1 %v275_v17  ;;  %v256_v61 = vld [vmem:[#allocation5 + $0x328] sm:$0xff]  ;;  %v253_v62 = vld [vmem:[#allocation5 + $0x310] sm:$0xff]  ;;  %v254_v63 = vld [vmem:[#allocation5 + $0x318] sm:$0xff] }
  0x39   :  { %294 = vmatpush.msrb.mxu0 %v241_v16  ;;  %353 = vmatpush.msrb.mxu3 %v276_v19  ;;  %v251_v0 = vld [vmem:[#allocation5 + $0x300] sm:$0xff]  ;;  %v252_v1 = vld [vmem:[#allocation5 + $0x308] sm:$0xff]  ;;  %v407_v2 = vld [vmem:[#allocation5 + $0x4f0] sm:$0xff] }
  0x3a   :  { %334 = vmatpush.msrb.mxu2 %v242_v18  ;;  %314 = vmatpush.msrb.mxu1 %v273_v21  ;;  %v408_v3 = vld [vmem:[#allocation5 + $0x4f8] sm:$0xff]  ;;  %v405_v4 = vld [vmem:[#allocation5 + $0x4e0] sm:$0xff]  ;;  %v406_v5 = vld [vmem:[#allocation5 + $0x4e8] sm:$0xff] }
  0x3b   :  { %295 = vmatpush.msrb.mxu0 %v239_v20  ;;  %354 = vmatpush.msrb.mxu3 %v274_v23  ;;  %v403_v6 = vld [vmem:[#allocation5 + $0x4d0] sm:$0xff]  ;;  %v404_v7 = vld [vmem:[#allocation5 + $0x4d8] sm:$0xff]  ;;  %v437_v10 = vld [vmem:[#allocation5 + $0x5e0] sm:$0xff] }
  0x3c   :  { %335 = vmatpush.msrb.mxu2 %v240_v22  ;;  %315 = vmatpush.msrb.mxu1 %v271_v25  ;;  %v439_v8 = vld [vmem:[#allocation5 + $0x5f0] sm:$0xff]  ;;  %v440_v9 = vld [vmem:[#allocation5 + $0x5f8] sm:$0xff]  ;;  %v401_v11 = vld [vmem:[#allocation5 + $0x4c0] sm:$0xff] }
  0x3d   :  { %296 = vmatpush.msrb.mxu0 %v237_v24  ;;  %355 = vmatpush.msrb.mxu3 %v272_v27  ;;  %v402_v12 = vld [vmem:[#allocation5 + $0x4c8] sm:$0xff]  ;;  %v435_v14 = vld [vmem:[#allocation5 + $0x5d0] sm:$0xff]  ;;  %v436_v15 = vld [vmem:[#allocation5 + $0x5d8] sm:$0xff] }
  0x3e   :  { %336 = vmatpush.msrb.mxu2 %v238_v26  ;;  %316 = vmatpush.msrb.mxu1 %v269_v29  ;;  %v438_v13 = vld [vmem:[#allocation5 + $0x5e8] sm:$0xff]  ;;  %v399_v16 = vld [vmem:[#allocation5 + $0x4b0] sm:$0xff]  ;;  %v400_v17 = vld [vmem:[#allocation5 + $0x4b8] sm:$0xff] }
  0x3f   :  { %297 = vmatpush.msrb.mxu0 %v235_v28  ;;  %356 = vmatpush.msrb.mxu3 %v270_v31  ;;  %v433_v18 = vld [vmem:[#allocation5 + $0x5c0] sm:$0xff]  ;;  %v434_v19 = vld [vmem:[#allocation5 + $0x5c8] sm:$0xff]  ;;  %v431_v22 = vld [vmem:[#allocation5 + $0x5b0] sm:$0xff] }
  0x40   :  { %337 = vmatpush.msrb.mxu2 %v236_v30  ;;  %317 = vmatpush.msrb.mxu1 %v267_v33  ;;  %v397_v20 = vld [vmem:[#allocation5 + $0x4a0] sm:$0xff]  ;;  %v398_v21 = vld [vmem:[#allocation5 + $0x4a8] sm:$0xff]  ;;  %v432_v23 = vld [vmem:[#allocation5 + $0x5b8] sm:$0xff] }
  0x41   :  { %298 = vmatpush.msrb.mxu0 %v233_v32  ;;  %357 = vmatpush.msrb.mxu3 %v268_v35  ;;  %v395_v24 = vld [vmem:[#allocation5 + $0x490] sm:$0xff]  ;;  %v396_v25 = vld [vmem:[#allocation5 + $0x498] sm:$0xff]  ;;  %v429_v26 = vld [vmem:[#allocation5 + $0x5a0] sm:$0xff] }
  0x42   :  { %338 = vmatpush.msrb.mxu2 %v234_v34  ;;  %318 = vmatpush.msrb.mxu1 %v265_v37  ;;  %v430_v27 = vld [vmem:[#allocation5 + $0x5a8] sm:$0xff]  ;;  %v393_v28 = vld [vmem:[#allocation5 + $0x480] sm:$0xff]  ;;  %v427_v31 = vld [vmem:[#allocation5 + $0x590] sm:$0xff] }
  0x43   :  { %299 = vmatpush.msrb.mxu0 %v231_v36  ;;  %358 = vmatpush.msrb.mxu3 %v266_v39  ;;  %v394_v29 = vld [vmem:[#allocation5 + $0x488] sm:$0xff]  ;;  %v126_v30 = vld [vmem:[#allocation7] sm:$0x3]  ;;  %v428_v32 = vld [vmem:[#allocation5 + $0x598] sm:$0xff] }
  0x44   :  { %339 = vmatpush.msrb.mxu2 %v232_v38  ;;  %319 = vmatpush.msrb.mxu1 %v263_v41  ;;  %v391_v33 = vld [vmem:[#allocation5 + $0x470] sm:$0xff]  ;;  %v392_v34 = vld [vmem:[#allocation5 + $0x478] sm:$0xff]  ;;  %v425_v35 = vld [vmem:[#allocation5 + $0x580] sm:$0xff]  ;;  %v128_v37 = vperm.slane %v126_v30, 0 }
  0x45   :  { %300 = vmatpush.msrb.mxu0 %v229_v40  ;;  %359 = vmatpush.msrb.mxu3 %v264_v43  ;;  %v426_v36 = vld [vmem:[#allocation5 + $0x588] sm:$0xff]  ;;  %v389_v38 = vld [vmem:[#allocation5 + $0x460] sm:$0xff]  ;;  %v387_v40 = vld [vmem:[#allocation5 + $0x450] sm:$0xff] }
  0x46   :  { %340 = vmatpush.msrb.mxu2 %v230_v42  ;;  %320 = vmatpush.msrb.mxu1 %v261_v47  ;;  %v390_v39 = vld [vmem:[#allocation5 + $0x468] sm:$0xff]  ;;  %v388_v41 = vld [vmem:[#allocation5 + $0x458] sm:$0xff] }
  0x47   :  { %301 = vmatpush.msrb.mxu0 %v227_v44  ;;  %360 = vmatpush.msrb.mxu3 %v262_v49 }
  0x48   :  { %341 = vmatpush.msrb.mxu2 %v228_v45  ;;  %321 = vmatpush.msrb.mxu1 %v259_v51  ;;  %v129_v45 = vperm.slane %v126_v30, 1  ;;  %v594_v30 = vld [vmem:[#allocation5 + $0x7d8] sm:$0xff] }
  0x49   :  { %302 = vmatpush.msrb.mxu0 %v225_v46  ;;  %361 = vmatpush.msrb.mxu3 %v260_v53 }
  0x4a   :  { %342 = vmatpush.msrb.mxu2 %v226_v48  ;;  %322 = vmatpush.msrb.mxu1 %v257_v55  ;;  %v385_v55 = vld [vmem:[#allocation5 + $0x440] sm:$0xff] }
  0x4b   :  { %303 = vmatpush.msrb.mxu0 %v223_v50  ;;  %362 = vmatpush.msrb.mxu3 %v258_v57  ;;  %v386_v57 = vld [vmem:[#allocation5 + $0x448] sm:$0xff] }
  0x4c   :  { %343 = vmatpush.msrb.mxu2 %v224_v52  ;;  %323 = vmatpush.msrb.mxu1 %v255_v59  ;;  %v383_v59 = vld [vmem:[#allocation5 + $0x430] sm:$0xff] }
  0x4d   :  { %304 = vmatpush.msrb.mxu0 %v221_v54  ;;  %363 = vmatpush.msrb.mxu3 %v256_v61  ;;  %v384_v61 = vld [vmem:[#allocation5 + $0x438] sm:$0xff] }
  0x4e   :  { %344 = vmatpush.msrb.mxu2 %v222_v56  ;;  %324 = vmatpush.msrb.mxu1 %v253_v62  ;;  %v423_v56 = vld [vmem:[#allocation5 + $0x570] sm:$0xff]  ;;  %v422_v62 = vld [vmem:[#allocation5 + $0x568] sm:$0xff] }
  0x4f   :  { %305 = vmatpush.msrb.mxu0 %v219_v58  ;;  %364 = vmatpush.msrb.mxu3 %v254_v63  ;;  %v424_v58 = vld [vmem:[#allocation5 + $0x578] sm:$0xff]  ;;  %v381_v63 = vld [vmem:[#allocation5 + $0x420] sm:$0xff] }
  0x50   :  { %345 = vmatpush.msrb.mxu2 %v220_v60  ;;  %325 = vmatpush.msrb.mxu1 %v251_v0  ;;  %v421_v60 = vld [vmem:[#allocation5 + $0x560] sm:$0xff]  ;;  %v419_v0 = vld [vmem:[#allocation5 + $0x550] sm:$0xff] }
  0x51   :  { %365 = vmatpush.msrb.mxu3 %v252_v1  ;;  %448 = vmatpush.msra.mxu0 %v407_v2  ;;  %v382_v1 = vld [vmem:[#allocation5 + $0x428] sm:$0xff]  ;;  %v420_v2 = vld [vmem:[#allocation5 + $0x558] sm:$0xff] }
  0x52   :  { %488 = vmatpush.msra.mxu2 %v408_v3  ;;  %468 = vmatpush.msra.mxu1 %v439_v8  ;;  %v379_v3 = vld [vmem:[#allocation5 + $0x410] sm:$0xff] }
  0x53   :  { %449 = vmatpush.msra.mxu0 %v405_v4  ;;  %508 = vmatpush.msra.mxu3 %v440_v9  ;;  %v417_v4 = vld [vmem:[#allocation5 + $0x540] sm:$0xff]  ;;  %v415_v8 = vld [vmem:[#allocation5 + $0x530] sm:$0xff]  ;;  %v378_v9 = vld [vmem:[#allocation5 + $0x408] sm:$0xff] }
  0x54   :  { %489 = vmatpush.msra.mxu2 %v406_v5  ;;  %469 = vmatpush.msra.mxu1 %v437_v10  ;;  %v380_v5 = vld [vmem:[#allocation5 + $0x418] sm:$0xff] }
  0x55   :  { %450 = vmatpush.msra.mxu0 %v403_v6  ;;  %509 = vmatpush.msra.mxu3 %v438_v13  ;;  %v418_v6 = vld [vmem:[#allocation5 + $0x548] sm:$0xff]  ;;  %v416_v10 = vld [vmem:[#allocation5 + $0x538] sm:$0xff]  ;;  %v411_v13 = vld [vmem:[#allocation5 + $0x510] sm:$0xff] }
  0x56   :  { %490 = vmatpush.msra.mxu2 %v404_v7  ;;  %470 = vmatpush.msra.mxu1 %v435_v14  ;;  %v377_v7 = vld [vmem:[#allocation5 + $0x400] sm:$0xff]  ;;  %v412_v14 = vld [vmem:[#allocation5 + $0x518] sm:$0xff] }
  0x57   :  { %451 = vmatpush.msra.mxu0 %v401_v11  ;;  %510 = vmatpush.msra.mxu3 %v436_v15  ;;  %v413_v11 = vld [vmem:[#allocation5 + $0x520] sm:$0xff] }
  0x58   :  { %491 = vmatpush.msra.mxu2 %v402_v12  ;;  %471 = vmatpush.msra.mxu1 %v433_v18  ;;  %v414_v12 = vld [vmem:[#allocation5 + $0x528] sm:$0xff]  ;;  %v409_v15 = vld [vmem:[#allocation5 + $0x500] sm:$0xff]  ;;  %v566_v18 = vld [vmem:[#allocation5 + $0x6f8] sm:$0xff] }
  0x59   :  { %452 = vmatpush.msra.mxu0 %v399_v16  ;;  %511 = vmatpush.msra.mxu3 %v434_v19  ;;  %v410_v16 = vld [vmem:[#allocation5 + $0x508] sm:$0xff]  ;;  %v563_v19 = vld [vmem:[#allocation5 + $0x6e0] sm:$0xff] }
  0x5a   :  { %492 = vmatpush.msra.mxu2 %v400_v17  ;;  %472 = vmatpush.msra.mxu1 %v431_v22  ;;  %v565_v17 = vld [vmem:[#allocation5 + $0x6f0] sm:$0xff]  ;;  %v562_v22 = vld [vmem:[#allocation5 + $0x6d8] sm:$0xff] }
  0x5b   :  { %453 = vmatpush.msra.mxu0 %v397_v20  ;;  %512 = vmatpush.msra.mxu3 %v432_v23  ;;  %v564_v20 = vld [vmem:[#allocation5 + $0x6e8] sm:$0xff]  ;;  %v597_v23 = vld [vmem:[#allocation5 + $0x7f0] sm:$0xff] }
  0x5c   :  { %493 = vmatpush.msra.mxu2 %v398_v21  ;;  %473 = vmatpush.msra.mxu1 %v429_v26  ;;  %v561_v21 = vld [vmem:[#allocation5 + $0x6d0] sm:$0xff]  ;;  %v559_v26 = vld [vmem:[#allocation5 + $0x6c0] sm:$0xff] }
  0x5d   :  { %454 = vmatpush.msra.mxu0 %v395_v24  ;;  %513 = vmatpush.msra.mxu3 %v430_v27  ;;  %v598_v24 = vld [vmem:[#allocation5 + $0x7f8] sm:$0xff]  ;;  %v560_v27 = vld [vmem:[#allocation5 + $0x6c8] sm:$0xff] }
  0x5e   :  { %494 = vmatpush.msra.mxu2 %v396_v25  ;;  %474 = vmatpush.msra.mxu1 %v427_v31  ;;  %v595_v25 = vld [vmem:[#allocation5 + $0x7e0] sm:$0xff]  ;;  %v557_v31 = vld [vmem:[#allocation5 + $0x6b0] sm:$0xff] }
  0x5f   :  { %455 = vmatpush.msra.mxu0 %v393_v28  ;;  %514 = vmatpush.msra.mxu3 %v428_v32  ;;  %v596_v28 = vld [vmem:[#allocation5 + $0x7e8] sm:$0xff]  ;;  %v558_v32 = vld [vmem:[#allocation5 + $0x6b8] sm:$0xff] }
  0x60   :  { %495 = vmatpush.msra.mxu2 %v394_v29  ;;  %475 = vmatpush.msra.mxu1 %v425_v35  ;;  %v593_v29 = vld [vmem:[#allocation5 + $0x7d0] sm:$0xff]  ;;  %v555_v35 = vld [vmem:[#allocation5 + $0x6a0] sm:$0xff] }
  0x61   :  { %456 = vmatpush.msra.mxu0 %v391_v33  ;;  %515 = vmatpush.msra.mxu3 %v426_v36  ;;  %v591_v33 = vld [vmem:[#allocation5 + $0x7c0] sm:$0xff]  ;;  %v556_v36 = vld [vmem:[#allocation5 + $0x6a8] sm:$0xff] }
  0x62   :  { %496 = vmatpush.msra.mxu2 %v392_v34  ;;  %476 = vmatpush.msra.mxu1 %v423_v56  ;;  %v592_v34 = vld [vmem:[#allocation5 + $0x7c8] sm:$0xff] }
  0x63   :  { %457 = vmatpush.msra.mxu0 %v389_v38  ;;  %516 = vmatpush.msra.mxu3 %v424_v58  ;;  %v590_v38 = vld [vmem:[#allocation5 + $0x7b8] sm:$0xff] }
  0x64   :  { %497 = vmatpush.msra.mxu2 %v390_v39  ;;  %477 = vmatpush.msra.mxu1 %v421_v60  ;;  %v553_v39 = vld [vmem:[#allocation5 + $0x690] sm:$0xff] }
  0x65   :  { %458 = vmatpush.msra.mxu0 %v387_v40  ;;  %517 = vmatpush.msra.mxu3 %v422_v62  ;;  %v554_v40 = vld [vmem:[#allocation5 + $0x698] sm:$0xff] }
  0x66   :  { %498 = vmatpush.msra.mxu2 %v388_v41  ;;  %478 = vmatpush.msra.mxu1 %v419_v0  ;;  %v587_v41 = vld [vmem:[#allocation5 + $0x7a0] sm:$0xff] }
  0x67   :  { %459 = vmatpush.msra.mxu0 %v385_v55  ;;  %518 = vmatpush.msra.mxu3 %v420_v2  ;;  %v545_v2 = vld [vmem:[#allocation5 + $0x650] sm:$0xff] }
  0x68   :  { %499 = vmatpush.msra.mxu2 %v386_v57  ;;  %479 = vmatpush.msra.mxu1 %v417_v4  ;;  %v546_v4 = vld [vmem:[#allocation5 + $0x658] sm:$0xff] }
  0x69   :  { %460 = vmatpush.msra.mxu0 %v383_v59  ;;  %519 = vmatpush.msra.mxu3 %v418_v6  ;;  %v543_v6 = vld [vmem:[#allocation5 + $0x640] sm:$0xff] }
  0x6a   :  { %500 = vmatpush.msra.mxu2 %v384_v61  ;;  %480 = vmatpush.msra.mxu1 %v415_v8  ;;  %v544_v8 = vld [vmem:[#allocation5 + $0x648] sm:$0xff] }
  0x6b   :  { %461 = vmatpush.msra.mxu0 %v381_v63  ;;  %520 = vmatpush.msra.mxu3 %v416_v10  ;;  %v541_v10 = vld [vmem:[#allocation5 + $0x630] sm:$0xff] }
  0x6c   :  { %501 = vmatpush.msra.mxu2 %v382_v1  ;;  %481 = vmatpush.msra.mxu1 %v413_v11  ;;  %v579_v11 = vld [vmem:[#allocation5 + $0x760] sm:$0xff] }
  0x6d   :  { %462 = vmatpush.msra.mxu0 %v379_v3  ;;  %521 = vmatpush.msra.mxu3 %v414_v12  ;;  %v583_v3 = vld [vmem:[#allocation5 + $0x780] sm:$0xff]  ;;  %v542_v12 = vld [vmem:[#allocation5 + $0x638] sm:$0xff] }
  0x6e   :  { %502 = vmatpush.msra.mxu2 %v380_v5  ;;  %482 = vmatpush.msra.mxu1 %v411_v13  ;;  %v584_v5 = vld [vmem:[#allocation5 + $0x788] sm:$0xff] }
  0x6f   :  { %463 = vmatpush.msra.mxu0 %v377_v7  ;;  %522 = vmatpush.msra.mxu3 %v412_v14  ;;  %v581_v7 = vld [vmem:[#allocation5 + $0x770] sm:$0xff]  ;;  %v580_v13 = vld [vmem:[#allocation5 + $0x768] sm:$0xff]  ;;  %v539_v14 = vld [vmem:[#allocation5 + $0x620] sm:$0xff] }
  0x70   :  { %503 = vmatpush.msra.mxu2 %v378_v9  ;;  %483 = vmatpush.msra.mxu1 %v409_v15  ;;  %v582_v9 = vld [vmem:[#allocation5 + $0x778] sm:$0xff]  ;;  %v577_v15 = vld [vmem:[#allocation5 + $0x750] sm:$0xff] }
  0x71   :  { %523 = vmatpush.msra.mxu3 %v410_v16  ;;  %v540_v16 = vld [vmem:[#allocation5 + $0x628] sm:$0xff] }
  0xac   :  { %v149_v42 = vpop.f32.mrf.mxu0 }
  0xad   :  { %v150_v43 = vadd.f32 %v149_v42, %v128_v37  ;;  %v589_v37 = vld [vmem:[#allocation5 + $0x7b0] sm:$0xff]  ;;  %v588_v42 = vld [vmem:[#allocation5 + $0x7a8] sm:$0xff] }
  0xae   :  { %v169_v44 = vpop.f32.mrf.mxu1 }
  0xaf   :  { %v170_v46 = vadd.f32 %v169_v44, %v150_v43  ;;  %v284_v43 = vld [vmem:[#allocation7 + $0x2] sm:$0x3] }
  0xb0   :  { %v551_v44 = vld [vmem:[#allocation5 + $0x680] sm:$0xff]  ;;  %v287_v57 = vperm.slane %v284_v43, 1 }
  0xb1   :  { %v214_v47 = vmul.f32 0.2, %v170_v46  ;;  %v189_v48 = vpop.f32.mrf.mxu2  ;;  %vm212_vm0 = vcmp.gt.f32.partialorder %v170_v46, 0.0 }
  0xb2   :  { %v190_v49 = vadd.f32 %v189_v48, %v129_v45  ;;  %v552_v45 = vld [vmem:[#allocation5 + $0x688] sm:$0xff]  ;;  %v549_v48 = vld [vmem:[#allocation5 + $0x670] sm:$0xff] }
  0xb3   :  { %v209_v50 = vpop.f32.mrf.mxu3  ;;  %v216_v51 = vsel %vm212_vm0, %v170_v46, %v214_v47  ;;  %v585_v46 = vld [vmem:[#allocation5 + $0x790] sm:$0xff]  ;;  %v586_v47 = vld [vmem:[#allocation5 + $0x798] sm:$0xff] }
  0xb4   :  { %v210_v52 = vadd.f32 %v209_v50, %v190_v49  ;;  %306 = vmatmul.f32.vlgmr.msrb.gmra.mxu0 %v216_v51  ;;  %346 = vmatmul.f32.vlgmr.msrb.gmra.mxu2 %v216_v51  ;;  %v550_v49 = vld [vmem:[#allocation5 + $0x678] sm:$0xff]  ;;  %v286_v50 = vperm.slane %v284_v43, 0 }
  0xb5   :  { %606 = vmatpush.msrb.mxu0 %v565_v17  ;;  %646 = vmatpush.msrb.mxu2 %v566_v18  ;;  %v578_v17 = vld [vmem:[#allocation5 + $0x758] sm:$0xff]  ;;  %v537_v18 = vld [vmem:[#allocation5 + $0x610] sm:$0xff] }
  0xb6   :  { %v215_v53 = vmul.f32 0.2, %v210_v52  ;;  %vm213_vm1 = vcmp.gt.f32.partialorder %v210_v52, 0.0 }
  0xb7   :  { %607 = vmatpush.msrb.mxu0 %v563_v19  ;;  %647 = vmatpush.msrb.mxu2 %v564_v20  ;;  %v575_v19 = vld [vmem:[#allocation5 + $0x740] sm:$0xff]  ;;  %v538_v20 = vld [vmem:[#allocation5 + $0x618] sm:$0xff] }
  0xb8   :  { %v217_v54 = vsel %vm213_vm1, %v210_v52, %v215_v53  ;;  %v547_v52 = vld [vmem:[#allocation5 + $0x660] sm:$0xff]  ;;  %v548_v53 = vld [vmem:[#allocation5 + $0x668] sm:$0xff] }
  0xb9   :  { %326 = vmatmul.f32.vlgmr.msrb.gmra.mxu1 %v217_v54  ;;  %366 = vmatmul.f32.vlgmr.msrb.gmra.mxu3 %v217_v54 }
  0xba   :  { %626 = vmatpush.msrb.mxu1 %v597_v23  ;;  %666 = vmatpush.msrb.mxu3 %v598_v24  ;;  %v573_v23 = vld [vmem:[#allocation5 + $0x730] sm:$0xff]  ;;  %v536_v24 = vld [vmem:[#allocation5 + $0x608] sm:$0xff] }
  0xbb   :  { %608 = vmatpush.msrb.mxu0 %v561_v21  ;;  %648 = vmatpush.msrb.mxu2 %v562_v22  ;;  %v576_v21 = vld [vmem:[#allocation5 + $0x748] sm:$0xff]  ;;  %v535_v22 = vld [vmem:[#allocation5 + $0x600] sm:$0xff] }
  0xbc   :  { %627 = vmatpush.msrb.mxu1 %v595_v25  ;;  %667 = vmatpush.msrb.mxu3 %v596_v28  ;;  %v574_v25 = vld [vmem:[#allocation5 + $0x738] sm:$0xff]  ;;  %v569_v28 = vld [vmem:[#allocation5 + $0x710] sm:$0xff] }
  0xbd   :  { %609 = vmatpush.msrb.mxu0 %v559_v26  ;;  %649 = vmatpush.msrb.mxu2 %v560_v27  ;;  %v571_v26 = vld [vmem:[#allocation5 + $0x720] sm:$0xff]  ;;  %v572_v27 = vld [vmem:[#allocation5 + $0x728] sm:$0xff] }
  0xbe   :  { %628 = vmatpush.msrb.mxu1 %v593_v29  ;;  %668 = vmatpush.msrb.mxu3 %v594_v30  ;;  %v570_v29 = vld [vmem:[#allocation5 + $0x718] sm:$0xff]  ;;  %v567_v30 = vld [vmem:[#allocation5 + $0x700] sm:$0xff] }
  0xbf   :  { %610 = vmatpush.msrb.mxu0 %v557_v31  ;;  %650 = vmatpush.msrb.mxu2 %v558_v32  ;;  %v568_v31 = vld [vmem:[#allocation5 + $0x708] sm:$0xff]  ;;  %v722_v32 = vld [vmem:[#allocation5 + $0x8f0] sm:$0xff] }
  0xc0   :  { %629 = vmatpush.msrb.mxu1 %v591_v33  ;;  %669 = vmatpush.msrb.mxu3 %v592_v34  ;;  %v723_v33 = vld [vmem:[#allocation5 + $0x8f8] sm:$0xff]  ;;  %v442_v34 = vld [vmem:[#allocation7 + $0x4] sm:$0x3] }
  0xc1   :  { %611 = vmatpush.msrb.mxu0 %v555_v35  ;;  %651 = vmatpush.msrb.mxu2 %v556_v36  ;;  %v444_v35 = vperm.slane %v442_v34, 0 }
  0xc2   :  { %630 = vmatpush.msrb.mxu1 %v589_v37  ;;  %670 = vmatpush.msrb.mxu3 %v590_v38 }
  0xc3   :  { %612 = vmatpush.msrb.mxu0 %v553_v39  ;;  %652 = vmatpush.msrb.mxu2 %v554_v40  ;;  %v445_v40 = vperm.slane %v442_v34, 1  ;;  %v730_v34 = vld [vmem:[#allocation5 + $0x930] sm:$0xff] }
  0xc4   :  { %631 = vmatpush.msrb.mxu1 %v587_v41  ;;  %671 = vmatpush.msrb.mxu3 %v588_v42 }
  0xc5   :  { %613 = vmatpush.msrb.mxu0 %v551_v44  ;;  %653 = vmatpush.msrb.mxu2 %v552_v45 }
  0xc6   :  { %632 = vmatpush.msrb.mxu1 %v585_v46  ;;  %672 = vmatpush.msrb.mxu3 %v586_v47 }
  0xc7   :  { %614 = vmatpush.msrb.mxu0 %v549_v48  ;;  %654 = vmatpush.msrb.mxu2 %v550_v49  ;;  %v720_v49 = vld [vmem:[#allocation5 + $0x8e0] sm:$0xff] }
  0xc8   :  { %633 = vmatpush.msrb.mxu1 %v583_v3  ;;  %673 = vmatpush.msrb.mxu3 %v584_v5  ;;  %v713_v3 = vld [vmem:[#allocation5 + $0x8a8] sm:$0xff]  ;;  %v710_v5 = vld [vmem:[#allocation5 + $0x890] sm:$0xff] }
  0xc9   :  { %615 = vmatpush.msrb.mxu0 %v547_v52  ;;  %655 = vmatpush.msrb.mxu2 %v548_v53  ;;  %v755_v52 = vld [vmem:[#allocation5 + $0x9f8] sm:$0xff]  ;;  %v718_v53 = vld [vmem:[#allocation5 + $0x8d0] sm:$0xff] }
  0xca   :  { %634 = vmatpush.msrb.mxu1 %v581_v7  ;;  %674 = vmatpush.msrb.mxu3 %v582_v9  ;;  %v711_v7 = vld [vmem:[#allocation5 + $0x898] sm:$0xff]  ;;  %v708_v9 = vld [vmem:[#allocation5 + $0x880] sm:$0xff] }
  0xcb   :  { %616 = vmatpush.msrb.mxu0 %v545_v2  ;;  %656 = vmatpush.msrb.mxu2 %v546_v4  ;;  %v746_v2 = vld [vmem:[#allocation5 + $0x9b0] sm:$0xff]  ;;  %v747_v4 = vld [vmem:[#allocation5 + $0x9b8] sm:$0xff] }
  0xcc   :  { %635 = vmatpush.msrb.mxu1 %v579_v11  ;;  %675 = vmatpush.msrb.mxu3 %v580_v13  ;;  %v709_v11 = vld [vmem:[#allocation5 + $0x888] sm:$0xff]  ;;  %v706_v13 = vld [vmem:[#allocation5 + $0x870] sm:$0xff] }
  0xcd   :  { %617 = vmatpush.msrb.mxu0 %v543_v6  ;;  %657 = vmatpush.msrb.mxu2 %v544_v8  ;;  %v744_v6 = vld [vmem:[#allocation5 + $0x9a0] sm:$0xff]  ;;  %v745_v8 = vld [vmem:[#allocation5 + $0x9a8] sm:$0xff] }
  0xce   :  { %636 = vmatpush.msrb.mxu1 %v577_v15  ;;  %676 = vmatpush.msrb.mxu3 %v578_v17  ;;  %v707_v15 = vld [vmem:[#allocation5 + $0x878] sm:$0xff]  ;;  %v704_v17 = vld [vmem:[#allocation5 + $0x860] sm:$0xff] }
  0xcf   :  { %618 = vmatpush.msrb.mxu0 %v541_v10  ;;  %658 = vmatpush.msrb.mxu2 %v542_v12  ;;  %v742_v10 = vld [vmem:[#allocation5 + $0x990] sm:$0xff]  ;;  %v743_v12 = vld [vmem:[#allocation5 + $0x998] sm:$0xff] }
  0xd0   :  { %637 = vmatpush.msrb.mxu1 %v575_v19  ;;  %677 = vmatpush.msrb.mxu3 %v576_v21  ;;  %v705_v19 = vld [vmem:[#allocation5 + $0x868] sm:$0xff]  ;;  %v702_v21 = vld [vmem:[#allocation5 + $0x850] sm:$0xff] }
  0xd1   :  { %619 = vmatpush.msrb.mxu0 %v539_v14  ;;  %659 = vmatpush.msrb.mxu2 %v540_v16  ;;  %v740_v14 = vld [vmem:[#allocation5 + $0x980] sm:$0xff]  ;;  %v741_v16 = vld [vmem:[#allocation5 + $0x988] sm:$0xff] }
  0xd2   :  { %638 = vmatpush.msrb.mxu1 %v573_v23  ;;  %678 = vmatpush.msrb.mxu3 %v574_v25  ;;  %v703_v23 = vld [vmem:[#allocation5 + $0x858] sm:$0xff]  ;;  %v700_v25 = vld [vmem:[#allocation5 + $0x840] sm:$0xff] }
  0xd3   :  { %620 = vmatpush.msrb.mxu0 %v537_v18  ;;  %660 = vmatpush.msrb.mxu2 %v538_v20  ;;  %v738_v18 = vld [vmem:[#allocation5 + $0x970] sm:$0xff]  ;;  %v739_v20 = vld [vmem:[#allocation5 + $0x978] sm:$0xff] }
  0xd4   :  { %639 = vmatpush.msrb.mxu1 %v571_v26  ;;  %679 = vmatpush.msrb.mxu3 %v572_v27  ;;  %v734_v26 = vld [vmem:[#allocation5 + $0x950] sm:$0xff]  ;;  %v701_v27 = vld [vmem:[#allocation5 + $0x848] sm:$0xff] }
  0xd5   :  { %621 = vmatpush.msrb.mxu0 %v535_v22  ;;  %661 = vmatpush.msrb.mxu2 %v536_v24  ;;  %v736_v22 = vld [vmem:[#allocation5 + $0x960] sm:$0xff]  ;;  %v737_v24 = vld [vmem:[#allocation5 + $0x968] sm:$0xff] }
  0xd6   :  { %640 = vmatpush.msrb.mxu1 %v569_v28  ;;  %680 = vmatpush.msrb.mxu3 %v570_v29  ;;  %v735_v28 = vld [vmem:[#allocation5 + $0x958] sm:$0xff]  ;;  %v698_v29 = vld [vmem:[#allocation5 + $0x830] sm:$0xff] }
  0xd8   :  { %641 = vmatpush.msrb.mxu1 %v567_v30  ;;  %681 = vmatpush.msrb.mxu3 %v568_v31  ;;  %v732_v30 = vld [vmem:[#allocation5 + $0x940] sm:$0xff]  ;;  %v699_v31 = vld [vmem:[#allocation5 + $0x838] sm:$0xff] }
 0x131   :  { %v307_v51 = vpop.f32.mrf.mxu0 }
 0x132   :  { %v308_v54 = vadd.f32 %v307_v51, %v286_v50  ;;  %v754_v50 = vld [vmem:[#allocation5 + $0x9f0] sm:$0xff]  ;;  %v721_v51 = vld [vmem:[#allocation5 + $0x8e8] sm:$0xff] }
 0x136   :  { %v327_v55 = vpop.f32.mrf.mxu1 }
 0x137   :  { %v328_v56 = vadd.f32 %v327_v55, %v308_v54  ;;  %v347_v58 = vpop.f32.mrf.mxu2  ;;  %v752_v54 = vld [vmem:[#allocation5 + $0x9e0] sm:$0xff]  ;;  %v719_v55 = vld [vmem:[#allocation5 + $0x8d8] sm:$0xff] }
 0x138   :  { %v348_v60 = vadd.f32 %v347_v58, %v287_v57  ;;  %v716_v57 = vld [vmem:[#allocation5 + $0x8c0] sm:$0xff]  ;;  %v750_v58 = vld [vmem:[#allocation5 + $0x9d0] sm:$0xff] }
 0x139   :  { %vm370_vm2 = vcmp.gt.f32.partialorder %v328_v56, 0.0  ;;  %v372_v59 = vmul.f32 0.2, %v328_v56 }
 0x13b   :  { %v374_v61 = vsel %vm370_vm2, %v328_v56, %v372_v59  ;;  %v753_v56 = vld [vmem:[#allocation5 + $0x9e8] sm:$0xff] }
 0x13c   :  { %v367_v62 = vpop.f32.mrf.mxu3  ;;  %464 = vmatmul.f32.vlgmr.msra.gmra.mxu0 %v374_v61  ;;  %504 = vmatmul.f32.vlgmr.msra.gmra.mxu2 %v374_v61  ;;  %v717_v59 = vld [vmem:[#allocation5 + $0x8c8] sm:$0xff]  ;;  %v714_v61 = vld [vmem:[#allocation5 + $0x8b0] sm:$0xff] }
 0x13d   :  { %v368_v63 = vadd.f32 %v367_v62, %v348_v60  ;;  %763 = vmatpush.msra.mxu0 %v722_v32  ;;  %803 = vmatpush.msra.mxu2 %v723_v33  ;;  %v751_v60 = vld [vmem:[#allocation5 + $0x9d8] sm:$0xff]  ;;  %v748_v62 = vld [vmem:[#allocation5 + $0x9c0] sm:$0xff]  ;;  %v733_v32 = vld [vmem:[#allocation5 + $0x948] sm:$0xff] }
 0x13e   :  { %v696_v33 = vld [vmem:[#allocation5 + $0x820] sm:$0xff] }
 0x13f   :  { %vm371_vm3 = vcmp.gt.f32.partialorder %v368_v63, 0.0  ;;  %v373_v0 = vmul.f32 0.2, %v368_v63  ;;  %764 = vmatpush.msra.mxu0 %v720_v49  ;;  %804 = vmatpush.msra.mxu2 %v721_v51  ;;  %v881_v49 = vld [vmem:[#allocation5 + $0xaf8] sm:$0xff]  ;;  %v1386_v51 = vmov 0.0  }
 0x141   :  { %v375_v1 = vsel %vm371_vm3, %v368_v63, %v373_v0  ;;  %765 = vmatpush.msra.mxu0 %v718_v53  ;;  %805 = vmatpush.msra.mxu2 %v719_v55  ;;  %v715_v63 = vld [vmem:[#allocation5 + $0x8b8] sm:$0xff]  ;;  %v749_v0 = vld [vmem:[#allocation5 + $0x9c8] sm:$0xff]  ;;  %v912_v55 = vld [vmem:[#allocation5 + $0xbf0] sm:$0xff] }
 0x142   :  { %484 = vmatmul.f32.vlgmr.msra.gmra.mxu1 %v375_v1  ;;  %524 = vmatmul.f32.vlgmr.msra.gmra.mxu3 %v375_v1  ;;  %v712_v1 = vld [vmem:[#allocation5 + $0x8a0] sm:$0xff] }
 0x143   :  { %783 = vmatpush.msra.mxu1 %v754_v50  ;;  %823 = vmatpush.msra.mxu3 %v755_v52  ;;  %v878_v50 = vld [vmem:[#allocation5 + $0xae0] sm:$0xff]  ;;  %v879_v52 = vld [vmem:[#allocation5 + $0xae8] sm:$0xff] }
 0x144   :  { %766 = vmatpush.msra.mxu0 %v716_v57  ;;  %806 = vmatpush.msra.mxu2 %v717_v59  ;;  %v910_v59 = vld [vmem:[#allocation5 + $0xbe0] sm:$0xff] }
 0x145   :  { %784 = vmatpush.msra.mxu1 %v752_v54  ;;  %824 = vmatpush.msra.mxu3 %v753_v56  ;;  %v876_v54 = vld [vmem:[#allocation5 + $0xad0] sm:$0xff]  ;;  %v913_v56 = vld [vmem:[#allocation5 + $0xbf8] sm:$0xff] }
 0x146   :  { %767 = vmatpush.msra.mxu0 %v714_v61  ;;  %807 = vmatpush.msra.mxu2 %v715_v63  ;;  %v911_v61 = vld [vmem:[#allocation5 + $0xbe8] sm:$0xff] }
 0x147   :  { %785 = vmatpush.msra.mxu1 %v750_v58  ;;  %825 = vmatpush.msra.mxu3 %v751_v60  ;;  %v877_v58 = vld [vmem:[#allocation5 + $0xad8] sm:$0xff]  ;;  %v874_v60 = vld [vmem:[#allocation5 + $0xac0] sm:$0xff]  ;;  %v875_v63 = vld [vmem:[#allocation5 + $0xac8] sm:$0xff] }
 0x148   :  { %768 = vmatpush.msra.mxu0 %v712_v1  ;;  %808 = vmatpush.msra.mxu2 %v713_v3  ;;  %v906_v3 = vld [vmem:[#allocation5 + $0xbc0] sm:$0xff] }
 0x149   :  { %786 = vmatpush.msra.mxu1 %v748_v62  ;;  %826 = vmatpush.msra.mxu3 %v749_v0  ;;  %v908_v62 = vld [vmem:[#allocation5 + $0xbd0] sm:$0xff]  ;;  %v909_v0 = vld [vmem:[#allocation5 + $0xbd8] sm:$0xff] }
 0x14a   :  { %769 = vmatpush.msra.mxu0 %v710_v5  ;;  %809 = vmatpush.msra.mxu2 %v711_v7  ;;  %v873_v5 = vld [vmem:[#allocation5 + $0xab8] sm:$0xff] }
 0x14b   :  { %787 = vmatpush.msra.mxu1 %v746_v2  ;;  %827 = vmatpush.msra.mxu3 %v747_v4  ;;  %v872_v2 = vld [vmem:[#allocation5 + $0xab0] sm:$0xff] }
 0x14c   :  { %770 = vmatpush.msra.mxu0 %v708_v9  ;;  %810 = vmatpush.msra.mxu2 %v709_v11  ;;  %v870_v9 = vld [vmem:[#allocation5 + $0xaa0] sm:$0xff] }
 0x14d   :  { %788 = vmatpush.msra.mxu1 %v744_v6  ;;  %828 = vmatpush.msra.mxu3 %v745_v8  ;;  %v907_v6 = vld [vmem:[#allocation5 + $0xbc8] sm:$0xff] }
 0x14e   :  { %771 = vmatpush.msra.mxu0 %v706_v13  ;;  %811 = vmatpush.msra.mxu2 %v707_v15  ;;  %v905_v13 = vld [vmem:[#allocation5 + $0xbb8] sm:$0xff]  ;;  %v902_v15 = vld [vmem:[#allocation5 + $0xba0] sm:$0xff] }
 0x14f   :  { %789 = vmatpush.msra.mxu1 %v742_v10  ;;  %829 = vmatpush.msra.mxu3 %v743_v12  ;;  %v904_v10 = vld [vmem:[#allocation5 + $0xbb0] sm:$0xff]  ;;  %v871_v12 = vld [vmem:[#allocation5 + $0xaa8] sm:$0xff] }
 0x150   :  { %772 = vmatpush.msra.mxu0 %v704_v17  ;;  %812 = vmatpush.msra.mxu2 %v705_v19  ;;  %v903_v17 = vld [vmem:[#allocation5 + $0xba8] sm:$0xff]  ;;  %v866_v19 = vld [vmem:[#allocation5 + $0xa80] sm:$0xff] }
 0x151   :  { %790 = vmatpush.msra.mxu1 %v740_v14  ;;  %830 = vmatpush.msra.mxu3 %v741_v16  ;;  %v868_v14 = vld [vmem:[#allocation5 + $0xa90] sm:$0xff]  ;;  %v869_v16 = vld [vmem:[#allocation5 + $0xa98] sm:$0xff] }
 0x152   :  { %773 = vmatpush.msra.mxu0 %v702_v21  ;;  %813 = vmatpush.msra.mxu2 %v703_v23  ;;  %v901_v23 = vld [vmem:[#allocation5 + $0xb98] sm:$0xff] }
 0x153   :  { %791 = vmatpush.msra.mxu1 %v738_v18  ;;  %831 = vmatpush.msra.mxu3 %v739_v20  ;;  %v900_v20 = vld [vmem:[#allocation5 + $0xb90] sm:$0xff] }
 0x154   :  { %774 = vmatpush.msra.mxu0 %v700_v25  ;;  %814 = vmatpush.msra.mxu2 %v701_v27  ;;  %v864_v25 = vld [vmem:[#allocation5 + $0xa70] sm:$0xff]  ;;  %v865_v27 = vld [vmem:[#allocation5 + $0xa78] sm:$0xff] }
 0x155   :  { %792 = vmatpush.msra.mxu1 %v736_v22  ;;  %832 = vmatpush.msra.mxu3 %v737_v24  ;;  %v867_v22 = vld [vmem:[#allocation5 + $0xa88] sm:$0xff] }
 0x156   :  { %775 = vmatpush.msra.mxu0 %v698_v29  ;;  %815 = vmatpush.msra.mxu2 %v699_v31  ;;  %v896_v31 = vld [vmem:[#allocation5 + $0xb70] sm:$0xff] }
 0x157   :  { %793 = vmatpush.msra.mxu1 %v734_v26  ;;  %833 = vmatpush.msra.mxu3 %v735_v28  ;;  %v898_v26 = vld [vmem:[#allocation5 + $0xb80] sm:$0xff]  ;;  %v899_v28 = vld [vmem:[#allocation5 + $0xb88] sm:$0xff] }
 0x158   :  { %776 = vmatpush.msra.mxu0 %v696_v33  ;;  %v897_v33 = vld [vmem:[#allocation5 + $0xb78] sm:$0xff] }
 0x159   :  { %794 = vmatpush.msra.mxu1 %v732_v30  ;;  %834 = vmatpush.msra.mxu3 %v733_v32  ;;  %v862_v30 = vld [vmem:[#allocation5 + $0xa60] sm:$0xff]  ;;  %v863_v32 = vld [vmem:[#allocation5 + $0xa68] sm:$0xff] }
 0x15b   :  { %795 = vmatpush.msra.mxu1 %v730_v34 }
 0x1b9   :  { %v465_v36 = vpop.f32.mrf.mxu0 }
 0x1ba   :  { %v466_v37 = vadd.f32 %v465_v36, %v444_v35  ;;  %v697_v35 = vld [vmem:[#allocation5 + $0x828] sm:$0xff]  ;;  %v731_v36 = vld [vmem:[#allocation5 + $0x938] sm:$0xff] }
 0x1bb   :  { %816 = vmatpush.msra.mxu2 %v697_v35  ;;  %835 = vmatpush.msra.mxu3 %v731_v36  ;;  %v860_v35 = vld [vmem:[#allocation5 + $0xa50] sm:$0xff]  ;;  %v861_v36 = vld [vmem:[#allocation5 + $0xa58] sm:$0xff] }
 0x1bf   :  { %v485_v38 = vpop.f32.mrf.mxu1  ;;  %v505_v41 = vpop.f32.mrf.mxu2 }
 0x1c0   :  { %v486_v39 = vadd.f32 %v485_v38, %v466_v37  ;;  %v506_v43 = vadd.f32 %v505_v41, %v445_v40  ;;  %v694_v37 = vld [vmem:[#allocation5 + $0x810] sm:$0xff]  ;;  %v728_v38 = vld [vmem:[#allocation5 + $0x920] sm:$0xff]  ;;  %v729_v40 = vld [vmem:[#allocation5 + $0x928] sm:$0xff] }
 0x1c1   :  { %v692_v41 = vld [vmem:[#allocation5 + $0x800] sm:$0xff]  ;;  %777 = vmatpush.msra.mxu0 %v694_v37  ;;  %796 = vmatpush.msra.mxu1 %v728_v38  ;;  %v859_v38 = vld [vmem:[#allocation5 + $0xa48] sm:$0xff] }
 0x1c2   :  { %vm528_vm4 = vcmp.gt.f32.partialorder %v486_v39, 0.0  ;;  %v530_v42 = vmul.f32 0.2, %v486_v39  ;;  %836 = vmatpush.msra.mxu3 %v729_v40  ;;  %v858_v37 = vld [vmem:[#allocation5 + $0xa40] sm:$0xff]  ;;  %v1276_v40 = vld [vmem:[#allocation2 + $0x8] sm:$0xff] }
 0x1c3   :  { %778 = vmatpush.msra.mxu0 %v692_v41 }
 0x1c4   :  { %v532_v44 = vsel %vm528_vm4, %v486_v39, %v530_v42  ;;  %v695_v39 = vld [vmem:[#allocation5 + $0x818] sm:$0xff]  ;;  %v726_v42 = vld [vmem:[#allocation5 + $0x910] sm:$0xff] }
 0x1c5   :  { %v525_v45 = vpop.f32.mrf.mxu3  ;;  %622 = vmatmul.f32.vlgmr.msrb.gmra.mxu0 %v532_v44  ;;  %662 = vmatmul.f32.vlgmr.msrb.gmra.mxu2 %v532_v44  ;;  %v727_v44 = vld [vmem:[#allocation5 + $0x918] sm:$0xff] }
 0x1c6   :  { %v526_v46 = vadd.f32 %v525_v45, %v506_v43  ;;  %v693_v43 = vld [vmem:[#allocation5 + $0x808] sm:$0xff]  ;;  %817 = vmatpush.msra.mxu2 %v695_v39  ;;  %v1417_v45 = vld [vmem:[#allocation7 + $0x6] sm:$0x3]  ;;  %797 = vmatpush.msra.mxu1 %v726_v42 }
 0x1c7   :  { %837 = vmatpush.msra.mxu3 %v727_v44  ;;  %v602_v53 = vperm.slane %v1417_v45, 0  ;;  %v603_v8 = vperm.slane %v1417_v45, 1  ;;  %v894_v44 = vld [vmem:[#allocation5 + $0xb60] sm:$0xff]  ;;  %v857_v45 = vld [vmem:[#allocation5 + $0xa38] sm:$0xff] }
 0x1c8   :  { %vm529_vm5 = vcmp.gt.f32.partialorder %v526_v46, 0.0  ;;  %v531_v47 = vmul.f32 0.2, %v526_v46  ;;  %818 = vmatpush.msra.mxu2 %v693_v43  ;;  %v856_v43 = vld [vmem:[#allocation5 + $0xa30] sm:$0xff] }
 0x1ca   :  { %v533_v48 = vsel %vm529_vm5, %v526_v46, %v531_v47  ;;  %v724_v46 = vld [vmem:[#allocation5 + $0x900] sm:$0xff]  ;;  %v725_v47 = vld [vmem:[#allocation5 + $0x908] sm:$0xff]  ;;  %961 = vmatpush.msrb.mxu2 %v881_v49 }
 0x1cb   :  { %642 = vmatmul.f32.vlgmr.msrb.gmra.mxu1 %v533_v48  ;;  %682 = vmatmul.f32.vlgmr.msrb.gmra.mxu3 %v533_v48  ;;  %v880_v48 = vld [vmem:[#allocation5 + $0xaf0] sm:$0xff]  ;;  %v855_v49 = vld [vmem:[#allocation5 + $0xa28] sm:$0xff] }
 0x1cc   :  { %798 = vmatpush.msra.mxu1 %v724_v46  ;;  %921 = vmatpush.msrb.mxu0 %v880_v48  ;;  %v895_v46 = vld [vmem:[#allocation5 + $0xb68] sm:$0xff]  ;;  %v892_v48 = vld [vmem:[#allocation5 + $0xb50] sm:$0xff] }
 0x1cd   :  { %838 = vmatpush.msra.mxu3 %v725_v47  ;;  %962 = vmatpush.msrb.mxu2 %v879_v52  ;;  %v854_v47 = vld [vmem:[#allocation5 + $0xa20] sm:$0xff] }
 0x1ce   :  { %922 = vmatpush.msrb.mxu0 %v878_v50  ;;  %941 = vmatpush.msrb.mxu1 %v912_v55  ;;  %v893_v50 = vld [vmem:[#allocation5 + $0xb58] sm:$0xff]  ;;  %v890_v52 = vld [vmem:[#allocation5 + $0xb40] sm:$0xff] }
 0x1cf   :  { %981 = vmatpush.msrb.mxu3 %v913_v56  ;;  %963 = vmatpush.msrb.mxu2 %v877_v58  ;;  %v850_v55 = vld [vmem:[#allocation5 + $0xa00] sm:$0xff]  ;;  %v888_v56 = vld [vmem:[#allocation5 + $0xb30] sm:$0xff]  ;;  %v889_v58 = vld [vmem:[#allocation5 + $0xb38] sm:$0xff] }
 0x1d0   :  { %923 = vmatpush.msrb.mxu0 %v876_v54  ;;  %942 = vmatpush.msrb.mxu1 %v910_v59  ;;  %v891_v54 = vld [vmem:[#allocation5 + $0xb48] sm:$0xff]  ;;  %v886_v59 = vld [vmem:[#allocation5 + $0xb20] sm:$0xff] }
 0x1d1   :  { %982 = vmatpush.msrb.mxu3 %v911_v61  ;;  %964 = vmatpush.msrb.mxu2 %v875_v63  ;;  %v884_v61 = vld [vmem:[#allocation5 + $0xb10] sm:$0xff]  ;;  %v882_v63 = vld [vmem:[#allocation5 + $0xb00] sm:$0xff] }
 0x1d2   :  { %924 = vmatpush.msrb.mxu0 %v874_v60  ;;  %943 = vmatpush.msrb.mxu1 %v908_v62  ;;  %v887_v60 = vld [vmem:[#allocation5 + $0xb28] sm:$0xff]  ;;  %v885_v62 = vld [vmem:[#allocation5 + $0xb18] sm:$0xff] }
 0x1d3   :  { %799 = vmatmul.f32.vlgmr.msra.gmra.mxu1 %v1386_v51  ;;  %839 = vmatmul.f32.vlgmr.msra.gmra.mxu3 %v1386_v51  ;;  %v852_v51 = vld [vmem:[#allocation5 + $0xa10] sm:$0xff] }
 0x1d4   :  { %983 = vmatpush.msrb.mxu3 %v909_v0  ;;  %925 = vmatpush.msrb.mxu0 %v872_v2  ;;  %v883_v0 = vld [vmem:[#allocation5 + $0xb08] sm:$0xff]  ;;  %v1039_v2 = vld [vmem:[#allocation5 + $0xcf8] sm:$0xff] }
 0x1d5   :  { %944 = vmatpush.msrb.mxu1 %v906_v3  ;;  %965 = vmatpush.msrb.mxu2 %v873_v5  ;;  %v1036_v3 = vld [vmem:[#allocation5 + $0xce0] sm:$0xff]  ;;  %v1034_v5 = vld [vmem:[#allocation5 + $0xcd0] sm:$0xff] }
 0x1d6   :  { %984 = vmatpush.msrb.mxu3 %v907_v6  ;;  %926 = vmatpush.msrb.mxu0 %v870_v9  ;;  %v1035_v6 = vld [vmem:[#allocation5 + $0xcd8] sm:$0xff]  ;;  %v1068_v9 = vld [vmem:[#allocation5 + $0xde0] sm:$0xff] }
 0x1d7   :  { %945 = vmatpush.msrb.mxu1 %v904_v10  ;;  %966 = vmatpush.msrb.mxu2 %v871_v12  ;;  %v1032_v10 = vld [vmem:[#allocation5 + $0xcc0] sm:$0xff]  ;;  %v1069_v12 = vld [vmem:[#allocation5 + $0xde8] sm:$0xff] }
 0x1d8   :  { %985 = vmatpush.msrb.mxu3 %v905_v13  ;;  %927 = vmatpush.msrb.mxu0 %v868_v14  ;;  %v1066_v13 = vld [vmem:[#allocation5 + $0xdd0] sm:$0xff]  ;;  %v1067_v14 = vld [vmem:[#allocation5 + $0xdd8] sm:$0xff] }
 0x1d9   :  { %946 = vmatpush.msrb.mxu1 %v902_v15  ;;  %967 = vmatpush.msrb.mxu2 %v869_v16  ;;  %v1030_v15 = vld [vmem:[#allocation5 + $0xcb0] sm:$0xff]  ;;  %v1031_v16 = vld [vmem:[#allocation5 + $0xcb8] sm:$0xff] }
 0x1da   :  { %986 = vmatpush.msrb.mxu3 %v903_v17  ;;  %928 = vmatpush.msrb.mxu0 %v866_v19  ;;  %v1064_v17 = vld [vmem:[#allocation5 + $0xdc0] sm:$0xff] }
 0x1db   :  { %947 = vmatpush.msrb.mxu1 %v900_v20  ;;  %968 = vmatpush.msrb.mxu2 %v867_v22  ;;  %v1028_v19 = vld [vmem:[#allocation5 + $0xca0] sm:$0xff]  ;;  %v1029_v20 = vld [vmem:[#allocation5 + $0xca8] sm:$0xff]  ;;  %v1063_v22 = vld [vmem:[#allocation5 + $0xdb8] sm:$0xff] }
 0x1dc   :  { %987 = vmatpush.msrb.mxu3 %v901_v23  ;;  %929 = vmatpush.msrb.mxu0 %v864_v25  ;;  %v1026_v23 = vld [vmem:[#allocation5 + $0xc90] sm:$0xff]  ;;  %v1060_v25 = vld [vmem:[#allocation5 + $0xda0] sm:$0xff] }
 0x1dd   :  { %948 = vmatpush.msrb.mxu1 %v898_v26  ;;  %969 = vmatpush.msrb.mxu2 %v865_v27  ;;  %v1061_v26 = vld [vmem:[#allocation5 + $0xda8] sm:$0xff] }
 0x1de   :  { %988 = vmatpush.msrb.mxu3 %v899_v28  ;;  %930 = vmatpush.msrb.mxu0 %v862_v30  ;;  %v757_v27 = vld [vmem:[#allocation7 + $0x8] sm:$0x3]  ;;  %v1024_v28 = vld [vmem:[#allocation5 + $0xc80] sm:$0xff]  ;;  %v1058_v30 = vld [vmem:[#allocation5 + $0xd90] sm:$0xff] }
 0x1df   :  { %949 = vmatpush.msrb.mxu1 %v896_v31  ;;  %970 = vmatpush.msrb.mxu2 %v863_v32  ;;  %v1059_v31 = vld [vmem:[#allocation5 + $0xd98] sm:$0xff]  ;;  %v1022_v32 = vld [vmem:[#allocation5 + $0xc70] sm:$0xff] }
 0x1e0   :  { %989 = vmatpush.msrb.mxu3 %v897_v33  ;;  %931 = vmatpush.msrb.mxu0 %v860_v35  ;;  %v1023_v33 = vld [vmem:[#allocation5 + $0xc78] sm:$0xff]  ;;  %v1020_v35 = vld [vmem:[#allocation5 + $0xc60] sm:$0xff] }
 0x1e1   :  { %971 = vmatpush.msrb.mxu2 %v861_v36  ;;  %950 = vmatpush.msrb.mxu1 %v894_v44  ;;  %v1021_v36 = vld [vmem:[#allocation5 + $0xc68] sm:$0xff] }
 0x1e2   :  { %932 = vmatpush.msrb.mxu0 %v858_v37  ;;  %990 = vmatpush.msrb.mxu3 %v895_v46 }
 0x1e3   :  { %972 = vmatpush.msrb.mxu2 %v859_v38  ;;  %951 = vmatpush.msrb.mxu1 %v892_v48 }
 0x1e4   :  { %933 = vmatpush.msrb.mxu0 %v856_v43  ;;  %991 = vmatpush.msrb.mxu3 %v893_v50  ;;  %v1018_v50 = vld [vmem:[#allocation5 + $0xc50] sm:$0xff] }
 0x1e5   :  { %973 = vmatpush.msrb.mxu2 %v857_v45  ;;  %952 = vmatpush.msrb.mxu1 %v890_v52  ;;  %v1019_v52 = vld [vmem:[#allocation5 + $0xc58] sm:$0xff] }
 0x1e6   :  { %934 = vmatpush.msrb.mxu0 %v854_v47  ;;  %992 = vmatpush.msrb.mxu3 %v891_v54  ;;  %v1016_v54 = vld [vmem:[#allocation5 + $0xc40] sm:$0xff] }
 0x1e7   :  { %974 = vmatpush.msrb.mxu2 %v855_v49  ;;  %953 = vmatpush.msrb.mxu1 %v888_v56  ;;  %v1017_v56 = vld [vmem:[#allocation5 + $0xc48] sm:$0xff] }
 0x1e8   :  { %935 = vmatpush.msrb.mxu0 %v852_v51  ;;  %993 = vmatpush.msrb.mxu3 %v889_v58  ;;  %v1056_v51 = vld [vmem:[#allocation5 + $0xd80] sm:$0xff]  ;;  %v1014_v58 = vld [vmem:[#allocation5 + $0xc30] sm:$0xff] }
 0x1e9   :  { %954 = vmatpush.msrb.mxu1 %v886_v59  ;;  %v1052_v59 = vld [vmem:[#allocation5 + $0xd60] sm:$0xff] }
 0x1ea   :  { %936 = vmatpush.msrb.mxu0 %v850_v55  ;;  %994 = vmatpush.msrb.mxu3 %v887_v60  ;;  %v1054_v55 = vld [vmem:[#allocation5 + $0xd70] sm:$0xff]  ;;  %v1015_v60 = vld [vmem:[#allocation5 + $0xc38] sm:$0xff] }
 0x1eb   :  { %955 = vmatpush.msrb.mxu1 %v884_v61  ;;  %v1053_v61 = vld [vmem:[#allocation5 + $0xd68] sm:$0xff] }
 0x1ec   :  { %995 = vmatpush.msrb.mxu3 %v885_v62  ;;  %v1012_v62 = vld [vmem:[#allocation5 + $0xc20] sm:$0xff] }
 0x1ed   :  { %956 = vmatpush.msrb.mxu1 %v882_v63  ;;  %v1050_v63 = vld [vmem:[#allocation5 + $0xd50] sm:$0xff] }
 0x1ee   :  { %996 = vmatpush.msrb.mxu3 %v883_v0  ;;  %v1013_v0 = vld [vmem:[#allocation5 + $0xc28] sm:$0xff] }
 0x242   :  { %v623_v57 = vpop.f32.mrf.mxu0 }
 0x243   :  { %v624_v1 = vadd.f32 %v623_v57, %v602_v53  ;;  %v853_v53 = vld [vmem:[#allocation5 + $0xa18] sm:$0xff]  ;;  %v851_v57 = vld [vmem:[#allocation5 + $0xa08] sm:$0xff] }
 0x244   :  { %975 = vmatpush.msrb.mxu2 %v853_v53  ;;  %v1057_v53 = vld [vmem:[#allocation5 + $0xd88] sm:$0xff] }
 0x246   :  { %976 = vmatpush.msrb.mxu2 %v851_v57  ;;  %v1055_v57 = vld [vmem:[#allocation5 + $0xd78] sm:$0xff] }
 0x248   :  { %v643_v4 = vpop.f32.mrf.mxu1  ;;  %v663_v11 = vpop.f32.mrf.mxu2 }
 0x249   :  { %v1420_v7 = vadd.f32 %v643_v4, %v624_v1  ;;  %v664_v18 = vadd.f32 %v663_v11, %v603_v8  ;;  %v1038_v1 = vld [vmem:[#allocation5 + $0xcf0] sm:$0xff]  ;;  %v1037_v4 = vld [vmem:[#allocation5 + $0xce8] sm:$0xff]  ;;  %v1071_v8 = vld [vmem:[#allocation5 + $0xdf8] sm:$0xff] }
 0x24a   :  { %v1033_v11 = vld [vmem:[#allocation5 + $0xcc8] sm:$0xff]  ;;  %1139 = vmatpush.msra.mxu3 %v1071_v8 }
 0x24b   :  { %1245 = vst [vmem:[#allocation8 + $0x10] sm:$0xff] %v1420_v7  ;;  %v1009_v8 = vld [vmem:[#allocation5 + $0xc08] sm:$0xff] }
 0x24c   :  { %1140 = vmatpush.msra.mxu3 %v1069_v12  ;;  %v1042_v12 = vld [vmem:[#allocation5 + $0xd10] sm:$0xff] }
 0x24e   :  { %v683_v21 = vpop.f32.mrf.mxu3  ;;  %1141 = vmatpush.msra.mxu3 %v1067_v14  ;;  %v1040_v14 = vld [vmem:[#allocation5 + $0xd00] sm:$0xff] }
 0x24f   :  { %v684_v24 = vadd.f32 %v683_v21, %v664_v18  ;;  %v1065_v18 = vld [vmem:[#allocation5 + $0xdc8] sm:$0xff]  ;;  %v1062_v21 = vld [vmem:[#allocation5 + $0xdb0] sm:$0xff] }
 0x250   :  { %1142 = vmatpush.msra.mxu3 %v1065_v18  ;;  %v800_v38 = vpop.f32.mrf.mxu1  ;;  %v1197_v18 = vld [vmem:[#allocation5 + $0xff0] sm:$0xff] }
 0x251   :  { %v686_v29 = vmul.f32 0.5, %v684_v24  ;;  %1246 = vst [vmem:[#allocation8 + $0x18] sm:$0xff] %v684_v24  ;;  %v1027_v24 = vld [vmem:[#allocation5 + $0xc98] sm:$0xff] }
 0x252   :  { %1143 = vmatpush.msra.mxu3 %v1063_v22  ;;  %v1178_v22 = vld [vmem:[#allocation5 + $0xec0] sm:$0xff] }
 0x253   :  { %v687_v34 = vmul.f32 1.442695, %v686_v29  ;;  %v1025_v29 = vld [vmem:[#allocation5 + $0xc88] sm:$0xff] }
 0x254   :  { %1144 = vmatpush.msra.mxu3 %v1061_v26  ;;  %v1176_v26 = vld [vmem:[#allocation5 + $0xea0] sm:$0xff] }
 0x255   :  { %1274 = vpow2.f32 %v687_v34  ;;  %v759_v34 = vperm.slane %v757_v27, 0 }
 0x256   :  { %1145 = vmatpush.msra.mxu3 %v1059_v31  ;;  %v840_v44 = vpop.f32.mrf.mxu3  ;;  %v1174_v31 = vld [vmem:[#allocation5 + $0xe80] sm:$0xff] }
 0x258   :  { %1146 = vmatpush.msra.mxu3 %v1057_v53  ;;  %v1188_v53 = vld [vmem:[#allocation5 + $0xf60] sm:$0xff] }
 0x25a   :  { %1147 = vmatpush.msra.mxu3 %v1055_v57  ;;  %v1186_v57 = vld [vmem:[#allocation5 + $0xf40] sm:$0xff] }
 0x25b   :  { %v1275_v39 = vpop.eup %1274 }
 0x25c   :  { %v689_v41 = vmul.f32 %v1276_v40, %v1275_v39  ;;  %1148 = vmatpush.msra.mxu3 %v1053_v61  ;;  %v1183_v61 = vld [vmem:[#allocation5 + $0xf10] sm:$0xff] }
 0x25e   :  { %v690_v42 = vadd.f32 %v689_v41, %v1420_v7  ;;  %v1070_v7 = vld [vmem:[#allocation5 + $0xdf0] sm:$0xff]  ;;  %v760_v41 = vperm.slane %v757_v27, 1  ;;  %v1192_v27 = vld [vmem:[#allocation5 + $0xfa0] sm:$0xff] }
 0x25f   :  { %1099 = vmatpush.msra.mxu1 %v1070_v7  ;;  %v1046_v7 = vld [vmem:[#allocation5 + $0xd30] sm:$0xff] }
 0x260   :  { %779 = vmatmul.f32.vlgmr.msra.gmra.mxu0 %v690_v42  ;;  %1244 = vst [vmem:[#allocation8 + $0x8] sm:$0xff] %v690_v42  ;;  %819 = vmatmul.f32.vlgmr.msra.gmra.mxu2 %v690_v42 }
 0x261   :  { %1079 = vmatpush.msra.mxu0 %v1038_v1  ;;  %1119 = vmatpush.msra.mxu2 %v1039_v2  ;;  %v1051_v1 = vld [vmem:[#allocation5 + $0xd58] sm:$0xff]  ;;  %v1010_v2 = vld [vmem:[#allocation5 + $0xc10] sm:$0xff] }
 0x262   :  { %1100 = vmatpush.msra.mxu1 %v1068_v9  ;;  %1149 = vmatpush.msra.mxu3 %v1051_v1  ;;  %v1047_v9 = vld [vmem:[#allocation5 + $0xd38] sm:$0xff] }
 0x263   :  { %1080 = vmatpush.msra.mxu0 %v1036_v3  ;;  %1120 = vmatpush.msra.mxu2 %v1037_v4  ;;  %v1048_v3 = vld [vmem:[#allocation5 + $0xd40] sm:$0xff]  ;;  %v1011_v4 = vld [vmem:[#allocation5 + $0xc18] sm:$0xff] }
 0x264   :  { %1101 = vmatpush.msra.mxu1 %v1066_v13  ;;  %v1043_v13 = vld [vmem:[#allocation5 + $0xd18] sm:$0xff] }
 0x265   :  { %1081 = vmatpush.msra.mxu0 %v1034_v5  ;;  %1121 = vmatpush.msra.mxu2 %v1035_v6  ;;  %v1049_v5 = vld [vmem:[#allocation5 + $0xd48] sm:$0xff]  ;;  %v1008_v6 = vld [vmem:[#allocation5 + $0xc00] sm:$0xff] }
 0x266   :  { %1102 = vmatpush.msra.mxu1 %v1064_v17  ;;  %1150 = vmatpush.msra.mxu3 %v1049_v5  ;;  %v1180_v17 = vld [vmem:[#allocation5 + $0xee0] sm:$0xff] }
 0x267   :  { %1082 = vmatpush.msra.mxu0 %v1032_v10  ;;  %1122 = vmatpush.msra.mxu2 %v1033_v11  ;;  %v1044_v10 = vld [vmem:[#allocation5 + $0xd20] sm:$0xff]  ;;  %v1045_v11 = vld [vmem:[#allocation5 + $0xd28] sm:$0xff] }
 0x268   :  { %1103 = vmatpush.msra.mxu1 %v1062_v21  ;;  %1151 = vmatpush.msra.mxu3 %v1047_v9  ;;  %v1195_v21 = vld [vmem:[#allocation5 + $0xfd0] sm:$0xff] }
 0x269   :  { %1083 = vmatpush.msra.mxu0 %v1030_v15  ;;  %1123 = vmatpush.msra.mxu2 %v1031_v16  ;;  %v1041_v15 = vld [vmem:[#allocation5 + $0xd08] sm:$0xff]  ;;  %v1181_v16 = vld [vmem:[#allocation5 + $0xef0] sm:$0xff] }
 0x26a   :  { %1104 = vmatpush.msra.mxu1 %v1060_v25  ;;  %1152 = vmatpush.msra.mxu3 %v1045_v11  ;;  %v1193_v25 = vld [vmem:[#allocation5 + $0xfb0] sm:$0xff] }
 0x26b   :  { %1084 = vmatpush.msra.mxu0 %v1028_v19  ;;  %1124 = vmatpush.msra.mxu2 %v1029_v20  ;;  %v1179_v19 = vld [vmem:[#allocation5 + $0xed0] sm:$0xff]  ;;  %v1196_v20 = vld [vmem:[#allocation5 + $0xfe0] sm:$0xff] }
 0x26c   :  { %1105 = vmatpush.msra.mxu1 %v1058_v30  ;;  %1153 = vmatpush.msra.mxu3 %v1043_v13  ;;  %v915_v30 = vld [vmem:[#allocation7 + $0xa] sm:$0x3] }
 0x26d   :  { %1085 = vmatpush.msra.mxu0 %v1026_v23  ;;  %1125 = vmatpush.msra.mxu2 %v1027_v24  ;;  %v1194_v23 = vld [vmem:[#allocation5 + $0xfc0] sm:$0xff]  ;;  %v1177_v24 = vld [vmem:[#allocation5 + $0xeb0] sm:$0xff] }
 0x26e   :  { %1106 = vmatpush.msra.mxu1 %v1056_v51  ;;  %1154 = vmatpush.msra.mxu3 %v1041_v15  ;;  %v1189_v51 = vld [vmem:[#allocation5 + $0xf70] sm:$0xff] }
 0x26f   :  { %1086 = vmatpush.msra.mxu0 %v1024_v28  ;;  %1126 = vmatpush.msra.mxu2 %v1025_v29  ;;  %v1175_v28 = vld [vmem:[#allocation5 + $0xe90] sm:$0xff] }
 0x270   :  { %1107 = vmatpush.msra.mxu1 %v1054_v55  ;;  %v1191_v29 = vld [vmem:[#allocation5 + $0xf90] sm:$0xff] }
 0x271   :  { %1087 = vmatpush.msra.mxu0 %v1022_v32  ;;  %1127 = vmatpush.msra.mxu2 %v1023_v33  ;;  %v1173_v32 = vld [vmem:[#allocation5 + $0xe70] sm:$0xff]  ;;  %v917_v33 = vperm.slane %v915_v30, 0 }
 0x272   :  { %1108 = vmatpush.msra.mxu1 %v1052_v59  ;;  %v1187_v55 = vld [vmem:[#allocation5 + $0xf50] sm:$0xff] }
 0x273   :  { %1088 = vmatpush.msra.mxu0 %v1020_v35  ;;  %1128 = vmatpush.msra.mxu2 %v1021_v36  ;;  %v1172_v35 = vld [vmem:[#allocation5 + $0xe60] sm:$0xff]  ;;  %v1185_v59 = vld [vmem:[#allocation5 + $0xf30] sm:$0xff] }
 0x274   :  { %1109 = vmatpush.msra.mxu1 %v1050_v63  ;;  %v1073_v63 = vld [vmem:[#allocation7 + $0xc] sm:$0x3] }
 0x275   :  { %1089 = vmatpush.msra.mxu0 %v1018_v50  ;;  %1129 = vmatpush.msra.mxu2 %v1019_v52  ;;  %v1170_v50 = vld [vmem:[#allocation5 + $0xe40] sm:$0xff]  ;;  %v1169_v52 = vld [vmem:[#allocation5 + $0xe30] sm:$0xff]  ;;  %v1076_v5 = vperm.slane %v1073_v63, 1 }
 0x276   :  { %1110 = vmatpush.msra.mxu1 %v1048_v3 }
 0x277   :  { %1090 = vmatpush.msra.mxu0 %v1016_v54  ;;  %1130 = vmatpush.msra.mxu2 %v1017_v56  ;;  %v1168_v54 = vld [vmem:[#allocation5 + $0xe20] sm:$0xff]  ;;  %v1167_v56 = vld [vmem:[#allocation5 + $0xe10] sm:$0xff] }
 0x278   :  { %1111 = vmatpush.msra.mxu1 %v1046_v7 }
 0x279   :  { %1091 = vmatpush.msra.mxu0 %v1014_v58  ;;  %1131 = vmatpush.msra.mxu2 %v1015_v60  ;;  %v1166_v58 = vld [vmem:[#allocation5 + $0xe00] sm:$0xff] }
 0x27a   :  { %1112 = vmatpush.msra.mxu1 %v1044_v10  ;;  %v1184_v60 = vld [vmem:[#allocation5 + $0xf20] sm:$0xff] }
 0x27b   :  { %1092 = vmatpush.msra.mxu0 %v1012_v62  ;;  %1132 = vmatpush.msra.mxu2 %v1013_v0  ;;  %v1182_v62 = vld [vmem:[#allocation5 + $0xf00] sm:$0xff]  ;;  %v1075_v0 = vperm.slane %v1073_v63, 0 }
 0x27c   :  { %1113 = vmatpush.msra.mxu1 %v1042_v12 }
 0x27d   :  { %1093 = vmatpush.msra.mxu0 %v1010_v2  ;;  %1133 = vmatpush.msra.mxu2 %v1011_v4 }
 0x27e   :  { %1114 = vmatpush.msra.mxu1 %v1040_v14  ;;  %v1199_v14 = vld [vmem:[#allocation7 + $0xe] sm:$0x3] }
 0x27f   :  { %1094 = vmatpush.msra.mxu0 %v1008_v6  ;;  %1134 = vmatpush.msra.mxu2 %v1009_v8  ;;  %v1201_v15 = vperm.slane %v1199_v14, 0 }
 0x2dd   :  { %v780_v37 = vpop.f32.mrf.mxu0 }
 0x2de   :  { %v781_v39 = vadd.f32 %v780_v37, %v759_v34 }
 0x2e0   :  { %v801_v40 = vadd.f32 %v800_v38, %v781_v39  ;;  %v918_v39 = vperm.slane %v915_v30, 1 }
 0x2e2   :  { %vm843_vm6 = vcmp.gt.f32.partialorder %v801_v40, 0.0  ;;  %v845_v42 = vmul.f32 0.2, %v801_v40 }
 0x2e3   :  { %v820_v43 = vpop.f32.mrf.mxu2 }
 0x2e4   :  { %v821_v45 = vadd.f32 %v820_v43, %v760_v41  ;;  %v847_v46 = vsel %vm843_vm6, %v801_v40, %v845_v42 }
 0x2e5   :  { %937 = vmatmul.f32.vlgmr.msrb.gmra.mxu0 %v847_v46  ;;  %977 = vmatmul.f32.vlgmr.msrb.gmra.mxu2 %v847_v46 }
 0x2e6   :  { %v841_v47 = vadd.f32 %v840_v44, %v821_v45  ;;  %1203 = vmatpush.msrb.mxu0 %v1181_v16 }
 0x2e8   :  { %vm844_vm7 = vcmp.gt.f32.partialorder %v841_v47, 0.0  ;;  %v846_v48 = vmul.f32 0.2, %v841_v47  ;;  %1204 = vmatpush.msrb.mxu0 %v1180_v17 }
 0x2ea   :  { %v848_v49 = vsel %vm844_vm7, %v841_v47, %v846_v48  ;;  %1205 = vmatpush.msrb.mxu0 %v1179_v19  ;;  %v1171_v48 = vld [vmem:[#allocation5 + $0xe50] sm:$0xff] }
 0x2eb   :  { %957 = vmatmul.f32.vlgmr.msrb.gmra.mxu1 %v848_v49  ;;  %997 = vmatmul.f32.vlgmr.msrb.gmra.mxu3 %v848_v49  ;;  %v1190_v49 = vld [vmem:[#allocation5 + $0xf80] sm:$0xff] }
 0x2ec   :  { %1223 = vmatpush.msrb.mxu1 %v1197_v18  ;;  %1206 = vmatpush.msrb.mxu0 %v1178_v22 }
 0x2ee   :  { %1224 = vmatpush.msrb.mxu1 %v1196_v20  ;;  %1207 = vmatpush.msrb.mxu0 %v1177_v24 }
 0x2f0   :  { %1225 = vmatpush.msrb.mxu1 %v1195_v21  ;;  %1208 = vmatpush.msrb.mxu0 %v1176_v26 }
 0x2f2   :  { %1226 = vmatpush.msrb.mxu1 %v1194_v23  ;;  %1209 = vmatpush.msrb.mxu0 %v1175_v28 }
 0x2f4   :  { %1227 = vmatpush.msrb.mxu1 %v1193_v25  ;;  %1210 = vmatpush.msrb.mxu0 %v1174_v31 }
 0x2f6   :  { %1228 = vmatpush.msrb.mxu1 %v1192_v27  ;;  %1211 = vmatpush.msrb.mxu0 %v1173_v32 }
 0x2f8   :  { %1229 = vmatpush.msrb.mxu1 %v1191_v29  ;;  %1212 = vmatpush.msrb.mxu0 %v1172_v35 }
 0x2fa   :  { %1213 = vmatpush.msrb.mxu0 %v1171_v48  ;;  %1230 = vmatpush.msrb.mxu1 %v1190_v49 }
 0x2fc   :  { %1214 = vmatpush.msrb.mxu0 %v1170_v50  ;;  %1231 = vmatpush.msrb.mxu1 %v1189_v51 }
 0x2fe   :  { %1215 = vmatpush.msrb.mxu0 %v1169_v52  ;;  %1232 = vmatpush.msrb.mxu1 %v1188_v53 }
 0x300   :  { %1216 = vmatpush.msrb.mxu0 %v1168_v54  ;;  %1233 = vmatpush.msrb.mxu1 %v1187_v55 }
 0x302   :  { %1217 = vmatpush.msrb.mxu0 %v1167_v56  ;;  %1234 = vmatpush.msrb.mxu1 %v1186_v57 }
 0x304   :  { %1218 = vmatpush.msrb.mxu0 %v1166_v58  ;;  %1235 = vmatpush.msrb.mxu1 %v1185_v59 }
 0x306   :  { %1236 = vmatpush.msrb.mxu1 %v1184_v60 }
 0x308   :  { %1237 = vmatpush.msrb.mxu1 %v1183_v61 }
 0x30a   :  { %1238 = vmatpush.msrb.mxu1 %v1182_v62 }
 0x362   :  { %v938_v34 = vpop.f32.mrf.mxu0 }
 0x363   :  { %v939_v36 = vadd.f32 %v938_v34, %v917_v33 }
 0x368   :  { %v958_v37 = vpop.f32.mrf.mxu1  ;;  %v978_v40 = vpop.f32.mrf.mxu2 }
 0x369   :  { %v959_v38 = vadd.f32 %v958_v37, %v939_v36  ;;  %v979_v42 = vadd.f32 %v978_v40, %v918_v39 }
 0x36b   :  { %vm1001_vm8 = vcmp.gt.f32.partialorder %v959_v38, 0.0  ;;  %v1003_v41 = vmul.f32 0.2, %v959_v38 }
 0x36d   :  { %v1005_v43 = vsel %vm1001_vm8, %v959_v38, %v1003_v41 }
 0x36e   :  { %v998_v44 = vpop.f32.mrf.mxu3  ;;  %1095 = vmatmul.f32.vlgmr.msra.gmra.mxu0 %v1005_v43  ;;  %1135 = vmatmul.f32.vlgmr.msra.gmra.mxu2 %v1005_v43 }
 0x36f   :  { %v999_v45 = vadd.f32 %v998_v44, %v979_v42 }
 0x371   :  { %vm1002_vm9 = vcmp.gt.f32.partialorder %v999_v45, 0.0  ;;  %v1004_v46 = vmul.f32 0.2, %v999_v45 }
 0x373   :  { %v1006_v47 = vsel %vm1002_vm9, %v999_v45, %v1004_v46 }
 0x374   :  { %1115 = vmatmul.f32.vlgmr.msra.gmra.mxu1 %v1006_v47  ;;  %1155 = vmatmul.f32.vlgmr.msra.gmra.mxu3 %v1006_v47 }
 0x3eb   :  { %v1096_v1 = vpop.f32.mrf.mxu0 }
 0x3ec   :  { %v1097_v2 = vadd.f32 %v1096_v1, %v1075_v0 }
 0x3f1   :  { %v1116_v3 = vpop.f32.mrf.mxu1  ;;  %v1136_v6 = vpop.f32.mrf.mxu2 }
 0x3f2   :  { %v1117_v4 = vadd.f32 %v1116_v3, %v1097_v2  ;;  %v1137_v8 = vadd.f32 %v1136_v6, %v1076_v5 }
 0x3f4   :  { %vm1159_vm10 = vcmp.gt.f32.partialorder %v1117_v4, 0.0  ;;  %v1161_v7 = vmul.f32 0.2, %v1117_v4 }
 0x3f6   :  { %v1163_v9 = vsel %vm1159_vm10, %v1117_v4, %v1161_v7 }
 0x3f7   :  { %v1156_v10 = vpop.f32.mrf.mxu3  ;;  %1219 = vmatmul.f32.vlgmr.msrb.gmra.mxu0 %v1163_v9 }
 0x3f8   :  { %v1157_v11 = vadd.f32 %v1156_v10, %v1137_v8 }
 0x3fa   :  { %vm1160_vm11 = vcmp.gt.f32.partialorder %v1157_v11, 0.0  ;;  %v1162_v12 = vmul.f32 0.2, %v1157_v11 }
 0x3fc   :  { %v1164_v13 = vsel %vm1160_vm11, %v1157_v11, %v1162_v12 }
 0x3fd   :  { %1239 = vmatmul.f32.vlgmr.msrb.gmra.mxu1 %v1164_v13 }
 0x474   :  { %v1220_v16 = vpop.f32.mrf.mxu0 }
 0x475   :  { %v1221_v17 = vadd.f32 %v1220_v16, %v1201_v15 }
 0x47a   :  { %v1240_v18 = vpop.f32.mrf.mxu1 }
 0x47b   :  { %v1241_v19 = vadd.f32 %v1240_v18, %v1221_v17 }
 0x47d   :  { %1243 = vst [vmem:[#allocation8] sm:$0xff] %v1241_v19 }
 0x47e   :  { %1257 = dma.vmem_to_hbm [thread:$0]  %s1253_s2, 512, %s1255_s5, [#allocation4]  }
 0x47f   :  { %1377 = dma.done.wait [#allocation4], 512  }
 0x480   :  { %1378 = vsyncadd [#allocation4], 4294966784 }
 0x481   :  { %1262 = vsyncpa [#allocation3], 1 }
 0x482   :  { %1263 = vsyncpa [#allocation6], 1 }
 0x483   :  { %1264 = vsyncpa [#allocation4], 1 }

// kernel: tpu_custom_call.1
= control target key start
LH: loop header
LB: loop body
LE: loop exit
PB: predicated region body
PF: predicated region fallthrough
CT: control target
= control target key end

     0   :  { %8 = vsyncpa [#allocation3], 0  ;;  %s1428_s0 = inlined_call_operand.hbm [shape: f32[8,256], index: 0, kind: input, shape index: {}]   ;;  %s1429_s1 = inlined_call_operand.hbm [shape: f32[8,256,256], index: 1, kind: input, shape index: {}]   ;;  %s1430_s2 = inlined_call_operand.hbm [shape: f32[8,1,256], index: 2, kind: input, shape index: {}]   ;;  %s1431_s3 = inlined_call_operand.hbm [shape: f32[8,512], index: 3, kind: output, shape index: {}]  }
   0x1   :  { %9 = vsyncpa [#allocation6], 0  ;;  %s26_s14 = sshll.u32 %s1429_s1, 4  ;;  %s27_s14 = int_to_ptr.hbm [resolvable:$true] %s26_s14 }
   0x2   :  { %10 = vsyncpa [#allocation4], 0  ;;  %s1379_s15 = smov [#allocation5]   ;;  %s16_s19 = sshll.u32 %s1428_s0, 4  ;;  %s17_s19 = int_to_ptr.hbm [resolvable:$true] %s16_s19 }
   0x3   :  { %s28_s16 = sshll.u32 %s1379_s15, 4  ;;  %s1380_s20 = smov 256   ;;  %s29_s16 = int_to_ptr.vmem [resolvable:$true] %s28_s16 }
   0x4   :  { %s1381_s21 = smov 16   ;;  %s1382_s22 = smov [#allocation2]  }
   0x5   :  { %34 = dma.hbm_to_vmem [thread:$0]  %s27_s14, 65536, %s29_s16, [#allocation6], %s1380_s20, %s1380_s20, %s1381_s21  }
   0x6   :  { %s18_s23 = sshll.u32 %s1382_s22, 4  ;;  %s39_s26 = sshll.u32 %s1430_s2, 4  ;;  %s19_s23 = int_to_ptr.vmem [resolvable:$true] %s18_s23  ;;  %s40_s26 = int_to_ptr.hbm [resolvable:$true] %s39_s26 }
   0x7   :  { %21 = dma.hbm_to_vmem [thread:$0]  %s17_s19, 256, %s19_s23, [#allocation3]  }
   0x8   :  { %s1383_s1 = smov [#allocation7]   ;;  %s1384_s28 = smov 32  }
   0x9   :  { %s41_s27 = sshll.u32 %s1383_s1, 4  ;;  %s1385_s29 = smov 2   ;;  %s42_s27 = int_to_ptr.vmem [resolvable:$true] %s41_s27 }
   0xa   :  { %47 = dma.hbm_to_vmem [thread:$0]  %s40_s26, 256, %s42_s27, [#allocation6], %s1384_s28, %s1384_s28, %s1385_s29  }
   0xb   :  { %1373 = dma.done.wait [#allocation3], 256  }
   0xc   :  { %1374 = vsyncadd [#allocation3], 4294967040 }
   0xd   :  { %1375 = dma.done.wait [#allocation6], 65792  }
   0xe   :  { %1376 = vsyncadd [#allocation6], 4294901504  ;;  %v93_v0 = vld [vmem:[#allocation5 + $0xf8] sm:$0xff]  ;;  %v92_v1 = vld [vmem:[#allocation5 + $0xf0] sm:$0xff]  ;;  %s1387_s0 = smov [#allocation8]   ;;  %s1254_s5 = sshll.u32 %s1431_s3, 4  ;;  %s1255_s5 = int_to_ptr.hbm [resolvable:$true] %s1254_s5 }
   0xf   :  { %v91_v2 = vld [vmem:[#allocation5 + $0xe8] sm:$0xff]  ;;  %172 = vmatpush.msra.mxu2 %v93_v0  ;;  %132 = vmatpush.msra.mxu0 %v92_v1  ;;  %v125_v3 = vld [vmem:[#allocation5 + $0x1f8] sm:$0xff]  ;;  %v90_v4 = vld [vmem:[#allocation5 + $0xe0] sm:$0xff]  ;;  %s1252_s2 = sshll.u32 %s1387_s0, 4  ;;  %s1253_s2 = int_to_ptr.vmem [resolvable:$true] %s1252_s2 }
  0x10   :  { %v124_v5 = vld [vmem:[#allocation5 + $0x1f0] sm:$0xff]  ;;  %192 = vmatpush.msra.mxu3 %v125_v3  ;;  %v89_v6 = vld [vmem:[#allocation5 + $0xd8] sm:$0xff]  ;;  %v123_v7 = vld [vmem:[#allocation5 + $0x1e8] sm:$0xff] }
  0x11   :  { %152 = vmatpush.msra.mxu1 %v124_v5  ;;  %v88_v8 = vld [vmem:[#allocation5 + $0xd0] sm:$0xff]  ;;  %173 = vmatpush.msra.mxu2 %v91_v2  ;;  %v122_v9 = vld [vmem:[#allocation5 + $0x1e0] sm:$0xff]  ;;  %v121_v10 = vld [vmem:[#allocation5 + $0x1d8] sm:$0xff] }
  0x12   :  { %133 = vmatpush.msra.mxu0 %v90_v4  ;;  %193 = vmatpush.msra.mxu3 %v123_v7  ;;  %v87_v11 = vld [vmem:[#allocation5 + $0xc8] sm:$0xff]  ;;  %v86_v12 = vld [vmem:[#allocation5 + $0xc0] sm:$0xff]  ;;  %v120_v13 = vld [vmem:[#allocation5 + $0x1d0] sm:$0xff] }
  0x13   :  { %153 = vmatpush.msra.mxu1 %v122_v9  ;;  %174 = vmatpush.msra.mxu2 %v89_v6  ;;  %v119_v14 = vld [vmem:[#allocation5 + $0x1c8] sm:$0xff]  ;;  %v118_v15 = vld [vmem:[#allocation5 + $0x1c0] sm:$0xff]  ;;  %v85_v16 = vld [vmem:[#allocation5 + $0xb8] sm:$0xff] }
  0x14   :  { %134 = vmatpush.msra.mxu0 %v88_v8  ;;  %194 = vmatpush.msra.mxu3 %v121_v10  ;;  %v84_v17 = vld [vmem:[#allocation5 + $0xb0] sm:$0xff]  ;;  %v117_v18 = vld [vmem:[#allocation5 + $0x1b8] sm:$0xff]  ;;  %v83_v20 = vld [vmem:[#allocation5 + $0xa8] sm:$0xff] }
  0x15   :  { %154 = vmatpush.msra.mxu1 %v120_v13  ;;  %175 = vmatpush.msra.mxu2 %v87_v11  ;;  %v116_v19 = vld [vmem:[#allocation5 + $0x1b0] sm:$0xff]  ;;  %v82_v21 = vld [vmem:[#allocation5 + $0xa0] sm:$0xff]  ;;  %v115_v22 = vld [vmem:[#allocation5 + $0x1a8] sm:$0xff] }
  0x16   :  { %135 = vmatpush.msra.mxu0 %v86_v12  ;;  %195 = vmatpush.msra.mxu3 %v119_v14  ;;  %v114_v23 = vld [vmem:[#allocation5 + $0x1a0] sm:$0xff]  ;;  %v81_v24 = vld [vmem:[#allocation5 + $0x98] sm:$0xff]  ;;  %v80_v25 = vld [vmem:[#allocation5 + $0x90] sm:$0xff] }
  0x17   :  { %155 = vmatpush.msra.mxu1 %v118_v15  ;;  %176 = vmatpush.msra.mxu2 %v85_v16  ;;  %v113_v26 = vld [vmem:[#allocation5 + $0x198] sm:$0xff]  ;;  %v112_v27 = vld [vmem:[#allocation5 + $0x190] sm:$0xff]  ;;  %v79_v28 = vld [vmem:[#allocation5 + $0x88] sm:$0xff] }
  0x18   :  { %136 = vmatpush.msra.mxu0 %v84_v17  ;;  %196 = vmatpush.msra.mxu3 %v117_v18  ;;  %v78_v29 = vld [vmem:[#allocation5 + $0x80] sm:$0xff]  ;;  %v111_v30 = vld [vmem:[#allocation5 + $0x188] sm:$0xff]  ;;  %v77_v32 = vld [vmem:[#allocation5 + $0x78] sm:$0xff] }
  0x19   :  { %156 = vmatpush.msra.mxu1 %v116_v19  ;;  %177 = vmatpush.msra.mxu2 %v83_v20  ;;  %v110_v31 = vld [vmem:[#allocation5 + $0x180] sm:$0xff]  ;;  %v76_v33 = vld [vmem:[#allocation5 + $0x70] sm:$0xff]  ;;  %v109_v34 = vld [vmem:[#allocation5 + $0x178] sm:$0xff] }
  0x1a   :  { %137 = vmatpush.msra.mxu0 %v82_v21  ;;  %197 = vmatpush.msra.mxu3 %v115_v22  ;;  %v108_v35 = vld [vmem:[#allocation5 + $0x170] sm:$0xff]  ;;  %v75_v36 = vld [vmem:[#allocation5 + $0x68] sm:$0xff]  ;;  %v74_v37 = vld [vmem:[#allocation5 + $0x60] sm:$0xff] }
  0x1b   :  { %157 = vmatpush.msra.mxu1 %v114_v23  ;;  %178 = vmatpush.msra.mxu2 %v81_v24  ;;  %v107_v38 = vld [vmem:[#allocation5 + $0x168] sm:$0xff]  ;;  %v106_v39 = vld [vmem:[#allocation5 + $0x160] sm:$0xff]  ;;  %v73_v40 = vld [vmem:[#allocation5 + $0x58] sm:$0xff] }
  0x1c   :  { %138 = vmatpush.msra.mxu0 %v80_v25  ;;  %198 = vmatpush.msra.mxu3 %v113_v26  ;;  %v72_v41 = vld [vmem:[#allocation5 + $0x50] sm:$0xff]  ;;  %v105_v42 = vld [vmem:[#allocation5 + $0x158] sm:$0xff]  ;;  %v71_v44 = vld [vmem:[#allocation5 + $0x48] sm:$0xff] }
  0x1d   :  { %158 = vmatpush.msra.mxu1 %v112_v27  ;;  %179 = vmatpush.msra.mxu2 %v79_v28  ;;  %v104_v43 = vld [vmem:[#allocation5 + $0x150] sm:$0xff]  ;;  %v70_v45 = vld [vmem:[#allocation5 + $0x40] sm:$0xff]  ;;  %v103_v46 = vld [vmem:[#allocation5 + $0x148] sm:$0xff] }
  0x1e   :  { %139 = vmatpush.msra.mxu0 %v78_v29  ;;  %199 = vmatpush.msra.mxu3 %v111_v30  ;;  %v102_v47 = vld [vmem:[#allocation5 + $0x140] sm:$0xff]  ;;  %v69_v48 = vld [vmem:[#allocation5 + $0x38] sm:$0xff]  ;;  %v68_v49 = vld [vmem:[#allocation5 + $0x30] sm:$0xff] }
  0x1f   :  { %159 = vmatpush.msra.mxu1 %v110_v31  ;;  %180 = vmatpush.msra.mxu2 %v77_v32  ;;  %v101_v50 = vld [vmem:[#allocation5 + $0x138] sm:$0xff]  ;;  %v100_v51 = vld [vmem:[#allocation5 + $0x130] sm:$0xff]  ;;  %v67_v52 = vld [vmem:[#allocation5 + $0x28] sm:$0xff] }
  0x20   :  { %140 = vmatpush.msra.mxu0 %v76_v33  ;;  %200 = vmatpush.msra.mxu3 %v109_v34  ;;  %v66_v53 = vld [vmem:[#allocation5 + $0x20] sm:$0xff]  ;;  %v99_v54 = vld [vmem:[#allocation5 + $0x128] sm:$0xff]  ;;  %v65_v56 = vld [vmem:[#allocation5 + $0x18] sm:$0xff] }
  0x21   :  { %160 = vmatpush.msra.mxu1 %v108_v35  ;;  %181 = vmatpush.msra.mxu2 %v75_v36  ;;  %v98_v55 = vld [vmem:[#allocation5 + $0x120] sm:$0xff]  ;;  %v64_v57 = vld [vmem:[#allocation5 + $0x10] sm:$0xff]  ;;  %v97_v58 = vld [vmem:[#allocation5 + $0x118] sm:$0xff] }
  0x22   :  { %141 = vmatpush.msra.mxu0 %v74_v37  ;;  %201 = vmatpush.msra.mxu3 %v107_v38  ;;  %v96_v59 = vld [vmem:[#allocation5 + $0x110] sm:$0xff]  ;;  %v63_v60 = vld [vmem:[#allocation5 + $0x8] sm:$0xff]  ;;  %v62_v61 = vld [vmem:[#allocation5] sm:$0xff] }
  0x23   :  { %161 = vmatpush.msra.mxu1 %v106_v39  ;;  %182 = vmatpush.msra.mxu2 %v73_v40  ;;  %v60_v62 = vld [vmem:[#allocation2] sm:$0xff]  ;;  %v95_v63 = vld [vmem:[#allocation5 + $0x108] sm:$0xff]  ;;  %v61_v0 = vld [vmem:[#allocation2 + $0x8] sm:$0xff] }
  0x24   :  { %142 = vmatpush.msra.mxu0 %v72_v41  ;;  %202 = vmatpush.msra.mxu3 %v105_v42  ;;  %v94_v1 = vld [vmem:[#allocation5 + $0x100] sm:$0xff]  ;;  %v249_v2 = vld [vmem:[#allocation5 + $0x2f0] sm:$0xff]  ;;  %v250_v3 = vld [vmem:[#allocation5 + $0x2f8] sm:$0xff] }
  0x25   :  { %162 = vmatpush.msra.mxu1 %v104_v43  ;;  %183 = vmatpush.msra.mxu2 %v71_v44  ;;  %v247_v4 = vld [vmem:[#allocation5 + $0x2e0] sm:$0xff]  ;;  %v281_v5 = vld [vmem:[#allocation5 + $0x3f0] sm:$0xff]  ;;  %v248_v6 = vld [vmem:[#allocation5 + $0x2e8] sm:$0xff] }
  0x26   :  { %143 = vmatpush.msra.mxu0 %v70_v45  ;;  %203 = vmatpush.msra.mxu3 %v103_v46  ;;  %v282_v7 = vld [vmem:[#allocation5 + $0x3f8] sm:$0xff]  ;;  %v245_v8 = vld [vmem:[#allocation5 + $0x2d0] sm:$0xff]  ;;  %v279_v9 = vld [vmem:[#allocation5 + $0x3e0] sm:$0xff] }
  0x27   :  { %163 = vmatpush.msra.mxu1 %v102_v47  ;;  %184 = vmatpush.msra.mxu2 %v69_v48  ;;  %v246_v10 = vld [vmem:[#allocation5 + $0x2d8] sm:$0xff]  ;;  %v280_v11 = vld [vmem:[#allocation5 + $0x3e8] sm:$0xff]  ;;  %v243_v12 = vld [vmem:[#allocation5 + $0x2c0] sm:$0xff] }
  0x28   :  { %144 = vmatpush.msra.mxu0 %v68_v49  ;;  %204 = vmatpush.msra.mxu3 %v101_v50  ;;  %v277_v13 = vld [vmem:[#allocation5 + $0x3d0] sm:$0xff]  ;;  %v244_v14 = vld [vmem:[#allocation5 + $0x2c8] sm:$0xff]  ;;  %v278_v15 = vld [vmem:[#allocation5 + $0x3d8] sm:$0xff] }
  0x29   :  { %164 = vmatpush.msra.mxu1 %v100_v51  ;;  %185 = vmatpush.msra.mxu2 %v67_v52  ;;  %v241_v16 = vld [vmem:[#allocation5 + $0x2b0] sm:$0xff]  ;;  %v275_v17 = vld [vmem:[#allocation5 + $0x3c0] sm:$0xff]  ;;  %v242_v18 = vld [vmem:[#allocation5 + $0x2b8] sm:$0xff] }
  0x2a   :  { %145 = vmatpush.msra.mxu0 %v66_v53  ;;  %205 = vmatpush.msra.mxu3 %v99_v54  ;;  %v276_v19 = vld [vmem:[#allocation5 + $0x3c8] sm:$0xff]  ;;  %v239_v20 = vld [vmem:[#allocation5 + $0x2a0] sm:$0xff]  ;;  %v273_v21 = vld [vmem:[#allocation5 + $0x3b0] sm:$0xff] }
  0x2b   :  { %165 = vmatpush.msra.mxu1 %v98_v55  ;;  %186 = vmatpush.msra.mxu2 %v65_v56  ;;  %v240_v22 = vld [vmem:[#allocation5 + $0x2a8] sm:$0xff]  ;;  %v274_v23 = vld [vmem:[#allocation5 + $0x3b8] sm:$0xff]  ;;  %v237_v24 = vld [vmem:[#allocation5 + $0x290] sm:$0xff] }
  0x2c   :  { %146 = vmatpush.msra.mxu0 %v64_v57  ;;  %206 = vmatpush.msra.mxu3 %v97_v58  ;;  %v271_v25 = vld [vmem:[#allocation5 + $0x3a0] sm:$0xff]  ;;  %v238_v26 = vld [vmem:[#allocation5 + $0x298] sm:$0xff]  ;;  %v272_v27 = vld [vmem:[#allocation5 + $0x3a8] sm:$0xff] }
  0x2d   :  { %166 = vmatpush.msra.mxu1 %v96_v59  ;;  %187 = vmatpush.msra.mxu2 %v63_v60  ;;  %v235_v28 = vld [vmem:[#allocation5 + $0x280] sm:$0xff]  ;;  %v269_v29 = vld [vmem:[#allocation5 + $0x390] sm:$0xff]  ;;  %v236_v30 = vld [vmem:[#allocation5 + $0x288] sm:$0xff] }
  0x2e   :  { %147 = vmatpush.msra.mxu0 %v62_v61  ;;  %188 = vmatmul.f32.vlgmr.msra.gmra.mxu2 %v60_v62  ;;  %v270_v31 = vld [vmem:[#allocation5 + $0x398] sm:$0xff]  ;;  %v233_v32 = vld [vmem:[#allocation5 + $0x270] sm:$0xff]  ;;  %v267_v33 = vld [vmem:[#allocation5 + $0x380] sm:$0xff] }
  0x2f   :  { %207 = vmatpush.msra.mxu3 %v95_v63  ;;  %148 = vmatmul.f32.vlgmr.msra.gmra.mxu0 %v60_v62  ;;  %v234_v34 = vld [vmem:[#allocation5 + $0x278] sm:$0xff]  ;;  %v268_v35 = vld [vmem:[#allocation5 + $0x388] sm:$0xff]  ;;  %v231_v36 = vld [vmem:[#allocation5 + $0x260] sm:$0xff] }
  0x30   :  { %208 = vmatmul.f32.vlgmr.msra.gmra.mxu3 %v61_v0  ;;  %167 = vmatpush.msra.mxu1 %v94_v1  ;;  %v265_v37 = vld [vmem:[#allocation5 + $0x370] sm:$0xff]  ;;  %v232_v38 = vld [vmem:[#allocation5 + $0x268] sm:$0xff]  ;;  %v266_v39 = vld [vmem:[#allocation5 + $0x378] sm:$0xff] }
  0x31   :  { %290 = vmatpush.msrb.mxu0 %v249_v2  ;;  %168 = vmatmul.f32.vlgmr.msra.gmra.mxu1 %v61_v0  ;;  %v229_v40 = vld [vmem:[#allocation5 + $0x250] sm:$0xff]  ;;  %v263_v41 = vld [vmem:[#allocation5 + $0x360] sm:$0xff]  ;;  %v230_v42 = vld [vmem:[#allocation5 + $0x258] sm:$0xff] }
  0x32   :  { %330 = vmatpush.msrb.mxu2 %v250_v3  ;;  %310 = vmatpush.msrb.mxu1 %v281_v5  ;;  %v264_v43 = vld [vmem:[#allocation5 + $0x368] sm:$0xff]  ;;  %v227_v44 = vld [vmem:[#allocation5 + $0x240] sm:$0xff]  ;;  %v225_v46 = vld [vmem:[#allocation5 + $0x230] sm:$0xff] }
  0x33   :  { %291 = vmatpush.msrb.mxu0 %v247_v4  ;;  %350 = vmatpush.msrb.mxu3 %v282_v7  ;;  %v228_v45 = vld [vmem:[#allocation5 + $0x248] sm:$0xff]  ;;  %v261_v47 = vld [vmem:[#allocation5 + $0x350] sm:$0xff]  ;;  %v226_v48 = vld [vmem:[#allocation5 + $0x238] sm:$0xff] }
  0x34   :  { %331 = vmatpush.msrb.mxu2 %v248_v6  ;;  %311 = vmatpush.msrb.mxu1 %v279_v9  ;;  %v262_v49 = vld [vmem:[#allocation5 + $0x358] sm:$0xff]  ;;  %v223_v50 = vld [vmem:[#allocation5 + $0x220] sm:$0xff]  ;;  %v224_v52 = vld [vmem:[#allocation5 + $0x228] sm:$0xff] }
  0x35   :  { %292 = vmatpush.msrb.mxu0 %v245_v8  ;;  %351 = vmatpush.msrb.mxu3 %v280_v11  ;;  %v259_v51 = vld [vmem:[#allocation5 + $0x340] sm:$0xff]  ;;  %v260_v53 = vld [vmem:[#allocation5 + $0x348] sm:$0xff]  ;;  %v221_v54 = vld [vmem:[#allocation5 + $0x210] sm:$0xff] }
  0x36   :  { %332 = vmatpush.msrb.mxu2 %v246_v10  ;;  %312 = vmatpush.msrb.mxu1 %v277_v13  ;;  %v257_v55 = vld [vmem:[#allocation5 + $0x330] sm:$0xff]  ;;  %v222_v56 = vld [vmem:[#allocation5 + $0x218] sm:$0xff]  ;;  %v219_v58 = vld [vmem:[#allocation5 + $0x200] sm:$0xff] }
  0x37   :  { %293 = vmatpush.msrb.mxu0 %v243_v12  ;;  %352 = vmatpush.msrb.mxu3 %v278_v15  ;;  %v258_v57 = vld [vmem:[#allocation5 + $0x338] sm:$0xff]  ;;  %v255_v59 = vld [vmem:[#allocation5 + $0x320] sm:$0xff]  ;;  %v220_v60 = vld [vmem:[#allocation5 + $0x208] sm:$0xff] }
  0x38   :  { %333 = vmatpush.msrb.mxu2 %v244_v14  ;;  %313 = vmatpush.msrb.mxu1 %v275_v17  ;;  %v256_v61 = vld [vmem:[#allocation5 + $0x328] sm:$0xff]  ;;  %v253_v62 = vld [vmem:[#allocation5 + $0x310] sm:$0xff]  ;;  %v254_v63 = vld [vmem:[#allocation5 + $0x318] sm:$0xff] }
  0x39   :  { %294 = vmatpush.msrb.mxu0 %v241_v16  ;;  %353 = vmatpush.msrb.mxu3 %v276_v19  ;;  %v251_v0 = vld [vmem:[#allocation5 + $0x300] sm:$0xff]  ;;  %v252_v1 = vld [vmem:[#allocation5 + $0x308] sm:$0xff]  ;;  %v407_v2 = vld [vmem:[#allocation5 + $0x4f0] sm:$0xff] }
  0x3a   :  { %334 = vmatpush.msrb.mxu2 %v242_v18  ;;  %314 = vmatpush.msrb.mxu1 %v273_v21  ;;  %v408_v3 = vld [vmem:[#allocation5 + $0x4f8] sm:$0xff]  ;;  %v405_v4 = vld [vmem:[#allocation5 + $0x4e0] sm:$0xff]  ;;  %v406_v5 = vld [vmem:[#allocation5 + $0x4e8] sm:$0xff] }
  0x3b   :  { %295 = vmatpush.msrb.mxu0 %v239_v20  ;;  %354 = vmatpush.msrb.mxu3 %v274_v23  ;;  %v403_v6 = vld [vmem:[#allocation5 + $0x4d0] sm:$0xff]  ;;  %v404_v7 = vld [vmem:[#allocation5 + $0x4d8] sm:$0xff]  ;;  %v437_v10 = vld [vmem:[#allocation5 + $0x5e0] sm:$0xff] }
  0x3c   :  { %335 = vmatpush.msrb.mxu2 %v240_v22  ;;  %315 = vmatpush.msrb.mxu1 %v271_v25  ;;  %v439_v8 = vld [vmem:[#allocation5 + $0x5f0] sm:$0xff]  ;;  %v440_v9 = vld [vmem:[#allocation5 + $0x5f8] sm:$0xff]  ;;  %v401_v11 = vld [vmem:[#allocation5 + $0x4c0] sm:$0xff] }
  0x3d   :  { %296 = vmatpush.msrb.mxu0 %v237_v24  ;;  %355 = vmatpush.msrb.mxu3 %v272_v27  ;;  %v402_v12 = vld [vmem:[#allocation5 + $0x4c8] sm:$0xff]  ;;  %v435_v14 = vld [vmem:[#allocation5 + $0x5d0] sm:$0xff]  ;;  %v436_v15 = vld [vmem:[#allocation5 + $0x5d8] sm:$0xff] }
  0x3e   :  { %336 = vmatpush.msrb.mxu2 %v238_v26  ;;  %316 = vmatpush.msrb.mxu1 %v269_v29  ;;  %v438_v13 = vld [vmem:[#allocation5 + $0x5e8] sm:$0xff]  ;;  %v399_v16 = vld [vmem:[#allocation5 + $0x4b0] sm:$0xff]  ;;  %v400_v17 = vld [vmem:[#allocation5 + $0x4b8] sm:$0xff] }
  0x3f   :  { %297 = vmatpush.msrb.mxu0 %v235_v28  ;;  %356 = vmatpush.msrb.mxu3 %v270_v31  ;;  %v433_v18 = vld [vmem:[#allocation5 + $0x5c0] sm:$0xff]  ;;  %v434_v19 = vld [vmem:[#allocation5 + $0x5c8] sm:$0xff]  ;;  %v431_v22 = vld [vmem:[#allocation5 + $0x5b0] sm:$0xff] }
  0x40   :  { %337 = vmatpush.msrb.mxu2 %v236_v30  ;;  %317 = vmatpush.msrb.mxu1 %v267_v33  ;;  %v397_v20 = vld [vmem:[#allocation5 + $0x4a0] sm:$0xff]  ;;  %v398_v21 = vld [vmem:[#allocation5 + $0x4a8] sm:$0xff]  ;;  %v432_v23 = vld [vmem:[#allocation5 + $0x5b8] sm:$0xff] }
  0x41   :  { %298 = vmatpush.msrb.mxu0 %v233_v32  ;;  %357 = vmatpush.msrb.mxu3 %v268_v35  ;;  %v395_v24 = vld [vmem:[#allocation5 + $0x490] sm:$0xff]  ;;  %v396_v25 = vld [vmem:[#allocation5 + $0x498] sm:$0xff]  ;;  %v429_v26 = vld [vmem:[#allocation5 + $0x5a0] sm:$0xff] }
  0x42   :  { %338 = vmatpush.msrb.mxu2 %v234_v34  ;;  %318 = vmatpush.msrb.mxu1 %v265_v37  ;;  %v430_v27 = vld [vmem:[#allocation5 + $0x5a8] sm:$0xff]  ;;  %v393_v28 = vld [vmem:[#allocation5 + $0x480] sm:$0xff]  ;;  %v427_v31 = vld [vmem:[#allocation5 + $0x590] sm:$0xff] }
  0x43   :  { %299 = vmatpush.msrb.mxu0 %v231_v36  ;;  %358 = vmatpush.msrb.mxu3 %v266_v39  ;;  %v394_v29 = vld [vmem:[#allocation5 + $0x488] sm:$0xff]  ;;  %v126_v30 = vld [vmem:[#allocation7] sm:$0x3]  ;;  %v428_v32 = vld [vmem:[#allocation5 + $0x598] sm:$0xff] }
  0x44   :  { %339 = vmatpush.msrb.mxu2 %v232_v38  ;;  %319 = vmatpush.msrb.mxu1 %v263_v41  ;;  %v391_v33 = vld [vmem:[#allocation5 + $0x470] sm:$0xff]  ;;  %v392_v34 = vld [vmem:[#allocation5 + $0x478] sm:$0xff]  ;;  %v425_v35 = vld [vmem:[#allocation5 + $0x580] sm:$0xff]  ;;  %v128_v37 = vperm.slane %v126_v30, 0 }
  0x45   :  { %300 = vmatpush.msrb.mxu0 %v229_v40  ;;  %359 = vmatpush.msrb.mxu3 %v264_v43  ;;  %v426_v36 = vld [vmem:[#allocation5 + $0x588] sm:$0xff]  ;;  %v389_v38 = vld [vmem:[#allocation5 + $0x460] sm:$0xff]  ;;  %v387_v40 = vld [vmem:[#allocation5 + $0x450] sm:$0xff] }
  0x46   :  { %340 = vmatpush.msrb.mxu2 %v230_v42  ;;  %320 = vmatpush.msrb.mxu1 %v261_v47  ;;  %v390_v39 = vld [vmem:[#allocation5 + $0x468] sm:$0xff]  ;;  %v388_v41 = vld [vmem:[#allocation5 + $0x458] sm:$0xff] }
  0x47   :  { %301 = vmatpush.msrb.mxu0 %v227_v44  ;;  %360 = vmatpush.msrb.mxu3 %v262_v49 }
  0x48   :  { %341 = vmatpush.msrb.mxu2 %v228_v45  ;;  %321 = vmatpush.msrb.mxu1 %v259_v51  ;;  %v129_v45 = vperm.slane %v126_v30, 1  ;;  %v594_v30 = vld [vmem:[#allocation5 + $0x7d8] sm:$0xff] }
  0x49   :  { %302 = vmatpush.msrb.mxu0 %v225_v46  ;;  %361 = vmatpush.msrb.mxu3 %v260_v53 }
  0x4a   :  { %342 = vmatpush.msrb.mxu2 %v226_v48  ;;  %322 = vmatpush.msrb.mxu1 %v257_v55  ;;  %v385_v55 = vld [vmem:[#allocation5 + $0x440] sm:$0xff] }
  0x4b   :  { %303 = vmatpush.msrb.mxu0 %v223_v50  ;;  %362 = vmatpush.msrb.mxu3 %v258_v57  ;;  %v386_v57 = vld [vmem:[#allocation5 + $0x448] sm:$0xff] }
  0x4c   :  { %343 = vmatpush.msrb.mxu2 %v224_v52  ;;  %323 = vmatpush.msrb.mxu1 %v255_v59  ;;  %v383_v59 = vld [vmem:[#allocation5 + $0x430] sm:$0xff] }
  0x4d   :  { %304 = vmatpush.msrb.mxu0 %v221_v54  ;;  %363 = vmatpush.msrb.mxu3 %v256_v61  ;;  %v384_v61 = vld [vmem:[#allocation5 + $0x438] sm:$0xff] }
  0x4e   :  { %344 = vmatpush.msrb.mxu2 %v222_v56  ;;  %324 = vmatpush.msrb.mxu1 %v253_v62  ;;  %v423_v56 = vld [vmem:[#allocation5 + $0x570] sm:$0xff]  ;;  %v422_v62 = vld [vmem:[#allocation5 + $0x568] sm:$0xff] }
  0x4f   :  { %305 = vmatpush.msrb.mxu0 %v219_v58  ;;  %364 = vmatpush.msrb.mxu3 %v254_v63  ;;  %v424_v58 = vld [vmem:[#allocation5 + $0x578] sm:$0xff]  ;;  %v381_v63 = vld [vmem:[#allocation5 + $0x420] sm:$0xff] }
  0x50   :  { %345 = vmatpush.msrb.mxu2 %v220_v60  ;;  %325 = vmatpush.msrb.mxu1 %v251_v0  ;;  %v421_v60 = vld [vmem:[#allocation5 + $0x560] sm:$0xff]  ;;  %v419_v0 = vld [vmem:[#allocation5 + $0x550] sm:$0xff] }
  0x51   :  { %365 = vmatpush.msrb.mxu3 %v252_v1  ;;  %448 = vmatpush.msra.mxu0 %v407_v2  ;;  %v382_v1 = vld [vmem:[#allocation5 + $0x428] sm:$0xff]  ;;  %v420_v2 = vld [vmem:[#allocation5 + $0x558] sm:$0xff] }
  0x52   :  { %488 = vmatpush.msra.mxu2 %v408_v3  ;;  %468 = vmatpush.msra.mxu1 %v439_v8  ;;  %v379_v3 = vld [vmem:[#allocation5 + $0x410] sm:$0xff] }
  0x53   :  { %449 = vmatpush.msra.mxu0 %v405_v4  ;;  %508 = vmatpush.msra.mxu3 %v440_v9  ;;  %v417_v4 = vld [vmem:[#allocation5 + $0x540] sm:$0xff]  ;;  %v415_v8 = vld [vmem:[#allocation5 + $0x530] sm:$0xff]  ;;  %v378_v9 = vld [vmem:[#allocation5 + $0x408] sm:$0xff] }
  0x54   :  { %489 = vmatpush.msra.mxu2 %v406_v5  ;;  %469 = vmatpush.msra.mxu1 %v437_v10  ;;  %v380_v5 = vld [vmem:[#allocation5 + $0x418] sm:$0xff] }
  0x55   :  { %450 = vmatpush.msra.mxu0 %v403_v6  ;;  %509 = vmatpush.msra.mxu3 %v438_v13  ;;  %v418_v6 = vld [vmem:[#allocation5 + $0x548] sm:$0xff]  ;;  %v416_v10 = vld [vmem:[#allocation5 + $0x538] sm:$0xff]  ;;  %v411_v13 = vld [vmem:[#allocation5 + $0x510] sm:$0xff] }
  0x56   :  { %490 = vmatpush.msra.mxu2 %v404_v7  ;;  %470 = vmatpush.msra.mxu1 %v435_v14  ;;  %v377_v7 = vld [vmem:[#allocation5 + $0x400] sm:$0xff]  ;;  %v412_v14 = vld [vmem:[#allocation5 + $0x518] sm:$0xff] }
  0x57   :  { %451 = vmatpush.msra.mxu0 %v401_v11  ;;  %510 = vmatpush.msra.mxu3 %v436_v15  ;;  %v413_v11 = vld [vmem:[#allocation5 + $0x520] sm:$0xff] }
  0x58   :  { %491 = vmatpush.msra.mxu2 %v402_v12  ;;  %471 = vmatpush.msra.mxu1 %v433_v18  ;;  %v414_v12 = vld [vmem:[#allocation5 + $0x528] sm:$0xff]  ;;  %v409_v15 = vld [vmem:[#allocation5 + $0x500] sm:$0xff]  ;;  %v566_v18 = vld [vmem:[#allocation5 + $0x6f8] sm:$0xff] }
  0x59   :  { %452 = vmatpush.msra.mxu0 %v399_v16  ;;  %511 = vmatpush.msra.mxu3 %v434_v19  ;;  %v410_v16 = vld [vmem:[#allocation5 + $0x508] sm:$0xff]  ;;  %v563_v19 = vld [vmem:[#allocation5 + $0x6e0] sm:$0xff] }
  0x5a   :  { %492 = vmatpush.msra.mxu2 %v400_v17  ;;  %472 = vmatpush.msra.mxu1 %v431_v22  ;;  %v565_v17 = vld [vmem:[#allocation5 + $0x6f0] sm:$0xff]  ;;  %v562_v22 = vld [vmem:[#allocation5 + $0x6d8] sm:$0xff] }
  0x5b   :  { %453 = vmatpush.msra.mxu0 %v397_v20  ;;  %512 = vmatpush.msra.mxu3 %v432_v23  ;;  %v564_v20 = vld [vmem:[#allocation5 + $0x6e8] sm:$0xff]  ;;  %v597_v23 = vld [vmem:[#allocation5 + $0x7f0] sm:$0xff] }
  0x5c   :  { %493 = vmatpush.msra.mxu2 %v398_v21  ;;  %473 = vmatpush.msra.mxu1 %v429_v26  ;;  %v561_v21 = vld [vmem:[#allocation5 + $0x6d0] sm:$0xff]  ;;  %v559_v26 = vld [vmem:[#allocation5 + $0x6c0] sm:$0xff] }
  0x5d   :  { %454 = vmatpush.msra.mxu0 %v395_v24  ;;  %513 = vmatpush.msra.mxu3 %v430_v27  ;;  %v598_v24 = vld [vmem:[#allocation5 + $0x7f8] sm:$0xff]  ;;  %v560_v27 = vld [vmem:[#allocation5 + $0x6c8] sm:$0xff] }
  0x5e   :  { %494 = vmatpush.msra.mxu2 %v396_v25  ;;  %474 = vmatpush.msra.mxu1 %v427_v31  ;;  %v595_v25 = vld [vmem:[#allocation5 + $0x7e0] sm:$0xff]  ;;  %v557_v31 = vld [vmem:[#allocation5 + $0x6b0] sm:$0xff] }
  0x5f   :  { %455 = vmatpush.msra.mxu0 %v393_v28  ;;  %514 = vmatpush.msra.mxu3 %v428_v32  ;;  %v596_v28 = vld [vmem:[#allocation5 + $0x7e8] sm:$0xff]  ;;  %v558_v32 = vld [vmem:[#allocation5 + $0x6b8] sm:$0xff] }
  0x60   :  { %495 = vmatpush.msra.mxu2 %v394_v29  ;;  %475 = vmatpush.msra.mxu1 %v425_v35  ;;  %v593_v29 = vld [vmem:[#allocation5 + $0x7d0] sm:$0xff]  ;;  %v555_v35 = vld [vmem:[#allocation5 + $0x6a0] sm:$0xff] }
  0x61   :  { %456 = vmatpush.msra.mxu0 %v391_v33  ;;  %515 = vmatpush.msra.mxu3 %v426_v36  ;;  %v591_v33 = vld [vmem:[#allocation5 + $0x7c0] sm:$0xff]  ;;  %v556_v36 = vld [vmem:[#allocation5 + $0x6a8] sm:$0xff] }
  0x62   :  { %496 = vmatpush.msra.mxu2 %v392_v34  ;;  %476 = vmatpush.msra.mxu1 %v423_v56  ;;  %v592_v34 = vld [vmem:[#allocation5 + $0x7c8] sm:$0xff] }
  0x63   :  { %457 = vmatpush.msra.mxu0 %v389_v38  ;;  %516 = vmatpush.msra.mxu3 %v424_v58  ;;  %v590_v38 = vld [vmem:[#allocation5 + $0x7b8] sm:$0xff] }
  0x64   :  { %497 = vmatpush.msra.mxu2 %v390_v39  ;;  %477 = vmatpush.msra.mxu1 %v421_v60  ;;  %v553_v39 = vld [vmem:[#allocation5 + $0x690] sm:$0xff] }
  0x65   :  { %458 = vmatpush.msra.mxu0 %v387_v40  ;;  %517 = vmatpush.msra.mxu3 %v422_v62  ;;  %v554_v40 = vld [vmem:[#allocation5 + $0x698] sm:$0xff] }
  0x66   :  { %498 = vmatpush.msra.mxu2 %v388_v41  ;;  %478 = vmatpush.msra.mxu1 %v419_v0  ;;  %v587_v41 = vld [vmem:[#allocation5 + $0x7a0] sm:$0xff] }
  0x67   :  { %459 = vmatpush.msra.mxu0 %v385_v55  ;;  %518 = vmatpush.msra.mxu3 %v420_v2  ;;  %v545_v2 = vld [vmem:[#allocation5 + $0x650] sm:$0xff] }
  0x68   :  { %499 = vmatpush.msra.mxu2 %v386_v57  ;;  %479 = vmatpush.msra.mxu1 %v417_v4  ;;  %v546_v4 = vld [vmem:[#allocation5 + $0x658] sm:$0xff] }
  0x69   :  { %460 = vmatpush.msra.mxu0 %v383_v59  ;;  %519 = vmatpush.msra.mxu3 %v418_v6  ;;  %v543_v6 = vld [vmem:[#allocation5 + $0x640] sm:$0xff] }
  0x6a   :  { %500 = vmatpush.msra.mxu2 %v384_v61  ;;  %480 = vmatpush.msra.mxu1 %v415_v8  ;;  %v544_v8 = vld [vmem:[#allocation5 + $0x648] sm:$0xff] }
  0x6b   :  { %461 = vmatpush.msra.mxu0 %v381_v63  ;;  %520 = vmatpush.msra.mxu3 %v416_v10  ;;  %v541_v10 = vld [vmem:[#allocation5 + $0x630] sm:$0xff] }
  0x6c   :  { %501 = vmatpush.msra.mxu2 %v382_v1  ;;  %481 = vmatpush.msra.mxu1 %v413_v11  ;;  %v579_v11 = vld [vmem:[#allocation5 + $0x760] sm:$0xff] }
  0x6d   :  { %462 = vmatpush.msra.mxu0 %v379_v3  ;;  %521 = vmatpush.msra.mxu3 %v414_v12  ;;  %v583_v3 = vld [vmem:[#allocation5 + $0x780] sm:$0xff]  ;;  %v542_v12 = vld [vmem:[#allocation5 + $0x638] sm:$0xff] }
  0x6e   :  { %502 = vmatpush.msra.mxu2 %v380_v5  ;;  %482 = vmatpush.msra.mxu1 %v411_v13  ;;  %v584_v5 = vld [vmem:[#allocation5 + $0x788] sm:$0xff] }
  0x6f   :  { %463 = vmatpush.msra.mxu0 %v377_v7  ;;  %522 = vmatpush.msra.mxu3 %v412_v14  ;;  %v581_v7 = vld [vmem:[#allocation5 + $0x770] sm:$0xff]  ;;  %v580_v13 = vld [vmem:[#allocation5 + $0x768] sm:$0xff]  ;;  %v539_v14 = vld [vmem:[#allocation5 + $0x620] sm:$0xff] }
  0x70   :  { %503 = vmatpush.msra.mxu2 %v378_v9  ;;  %483 = vmatpush.msra.mxu1 %v409_v15  ;;  %v582_v9 = vld [vmem:[#allocation5 + $0x778] sm:$0xff]  ;;  %v577_v15 = vld [vmem:[#allocation5 + $0x750] sm:$0xff] }
  0x71   :  { %523 = vmatpush.msra.mxu3 %v410_v16  ;;  %v540_v16 = vld [vmem:[#allocation5 + $0x628] sm:$0xff] }
  0xac   :  { %v149_v42 = vpop.f32.mrf.mxu0 }
  0xad   :  { %v150_v43 = vadd.f32 %v149_v42, %v128_v37  ;;  %v589_v37 = vld [vmem:[#allocation5 + $0x7b0] sm:$0xff]  ;;  %v588_v42 = vld [vmem:[#allocation5 + $0x7a8] sm:$0xff] }
  0xae   :  { %v169_v44 = vpop.f32.mrf.mxu1 }
  0xaf   :  { %v170_v46 = vadd.f32 %v169_v44, %v150_v43  ;;  %v284_v43 = vld [vmem:[#allocation7 + $0x2] sm:$0x3] }
  0xb0   :  { %v551_v44 = vld [vmem:[#allocation5 + $0x680] sm:$0xff]  ;;  %v287_v57 = vperm.slane %v284_v43, 1 }
  0xb1   :  { %v214_v47 = vmul.f32 0.2, %v170_v46  ;;  %v189_v48 = vpop.f32.mrf.mxu2  ;;  %vm212_vm0 = vcmp.gt.f32.partialorder %v170_v46, 0.0 }
  0xb2   :  { %v190_v49 = vadd.f32 %v189_v48, %v129_v45  ;;  %v552_v45 = vld [vmem:[#allocation5 + $0x688] sm:$0xff]  ;;  %v549_v48 = vld [vmem:[#allocation5 + $0x670] sm:$0xff] }
  0xb3   :  { %v209_v50 = vpop.f32.mrf.mxu3  ;;  %v216_v51 = vsel %vm212_vm0, %v170_v46, %v214_v47  ;;  %v585_v46 = vld [vmem:[#allocation5 + $0x790] sm:$0xff]  ;;  %v586_v47 = vld [vmem:[#allocation5 + $0x798] sm:$0xff] }
  0xb4   :  { %v210_v52 = vadd.f32 %v209_v50, %v190_v49  ;;  %306 = vmatmul.f32.vlgmr.msrb.gmra.mxu0 %v216_v51  ;;  %346 = vmatmul.f32.vlgmr.msrb.gmra.mxu2 %v216_v51  ;;  %v550_v49 = vld [vmem:[#allocation5 + $0x678] sm:$0xff]  ;;  %v286_v50 = vperm.slane %v284_v43, 0 }
  0xb5   :  { %606 = vmatpush.msrb.mxu0 %v565_v17  ;;  %646 = vmatpush.msrb.mxu2 %v566_v18  ;;  %v578_v17 = vld [vmem:[#allocation5 + $0x758] sm:$0xff]  ;;  %v537_v18 = vld [vmem:[#allocation5 + $0x610] sm:$0xff] }
  0xb6   :  { %v215_v53 = vmul.f32 0.2, %v210_v52  ;;  %vm213_vm1 = vcmp.gt.f32.partialorder %v210_v52, 0.0 }
  0xb7   :  { %607 = vmatpush.msrb.mxu0 %v563_v19  ;;  %647 = vmatpush.msrb.mxu2 %v564_v20  ;;  %v575_v19 = vld [vmem:[#allocation5 + $0x740] sm:$0xff]  ;;  %v538_v20 = vld [vmem:[#allocation5 + $0x618] sm:$0xff] }
  0xb8   :  { %v217_v54 = vsel %vm213_vm1, %v210_v52, %v215_v53  ;;  %v547_v52 = vld [vmem:[#allocation5 + $0x660] sm:$0xff]  ;;  %v548_v53 = vld [vmem:[#allocation5 + $0x668] sm:$0xff] }
  0xb9   :  { %326 = vmatmul.f32.vlgmr.msrb.gmra.mxu1 %v217_v54  ;;  %366 = vmatmul.f32.vlgmr.msrb.gmra.mxu3 %v217_v54 }
  0xba   :  { %626 = vmatpush.msrb.mxu1 %v597_v23  ;;  %666 = vmatpush.msrb.mxu3 %v598_v24  ;;  %v573_v23 = vld [vmem:[#allocation5 + $0x730] sm:$0xff]  ;;  %v536_v24 = vld [vmem:[#allocation5 + $0x608] sm:$0xff] }
  0xbb   :  { %608 = vmatpush.msrb.mxu0 %v561_v21  ;;  %648 = vmatpush.msrb.mxu2 %v562_v22  ;;  %v576_v21 = vld [vmem:[#allocation5 + $0x748] sm:$0xff]  ;;  %v535_v22 = vld [vmem:[#allocation5 + $0x600] sm:$0xff] }
  0xbc   :  { %627 = vmatpush.msrb.mxu1 %v595_v25  ;;  %667 = vmatpush.msrb.mxu3 %v596_v28  ;;  %v574_v25 = vld [vmem:[#allocation5 + $0x738] sm:$0xff]  ;;  %v569_v28 = vld [vmem:[#allocation5 + $0x710] sm:$0xff] }
  0xbd   :  { %609 = vmatpush.msrb.mxu0 %v559_v26  ;;  %649 = vmatpush.msrb.mxu2 %v560_v27  ;;  %v571_v26 = vld [vmem:[#allocation5 + $0x720] sm:$0xff]  ;;  %v572_v27 = vld [vmem:[#allocation5 + $0x728] sm:$0xff] }
  0xbe   :  { %628 = vmatpush.msrb.mxu1 %v593_v29  ;;  %668 = vmatpush.msrb.mxu3 %v594_v30  ;;  %v570_v29 = vld [vmem:[#allocation5 + $0x718] sm:$0xff]  ;;  %v567_v30 = vld [vmem:[#allocation5 + $0x700] sm:$0xff] }
  0xbf   :  { %610 = vmatpush.msrb.mxu0 %v557_v31  ;;  %650 = vmatpush.msrb.mxu2 %v558_v32  ;;  %v568_v31 = vld [vmem:[#allocation5 + $0x708] sm:$0xff]  ;;  %v722_v32 = vld [vmem:[#allocation5 + $0x8f0] sm:$0xff] }
  0xc0   :  { %629 = vmatpush.msrb.mxu1 %v591_v33  ;;  %669 = vmatpush.msrb.mxu3 %v592_v34  ;;  %v723_v33 = vld [vmem:[#allocation5 + $0x8f8] sm:$0xff]  ;;  %v442_v34 = vld [vmem:[#allocation7 + $0x4] sm:$0x3] }
  0xc1   :  { %611 = vmatpush.msrb.mxu0 %v555_v35  ;;  %651 = vmatpush.msrb.mxu2 %v556_v36  ;;  %v444_v35 = vperm.slane %v442_v34, 0 }
  0xc2   :  { %630 = vmatpush.msrb.mxu1 %v589_v37  ;;  %670 = vmatpush.msrb.mxu3 %v590_v38 }
  0xc3   :  { %612 = vmatpush.msrb.mxu0 %v553_v39  ;;  %652 = vmatpush.msrb.mxu2 %v554_v40  ;;  %v445_v40 = vperm.slane %v442_v34, 1  ;;  %v730_v34 = vld [vmem:[#allocation5 + $0x930] sm:$0xff] }
  0xc4   :  { %631 = vmatpush.msrb.mxu1 %v587_v41  ;;  %671 = vmatpush.msrb.mxu3 %v588_v42 }
  0xc5   :  { %613 = vmatpush.msrb.mxu0 %v551_v44  ;;  %653 = vmatpush.msrb.mxu2 %v552_v45 }
  0xc6   :  { %632 = vmatpush.msrb.mxu1 %v585_v46  ;;  %672 = vmatpush.msrb.mxu3 %v586_v47 }
  0xc7   :  { %614 = vmatpush.msrb.mxu0 %v549_v48  ;;  %654 = vmatpush.msrb.mxu2 %v550_v49  ;;  %v720_v49 = vld [vmem:[#allocation5 + $0x8e0] sm:$0xff] }
  0xc8   :  { %633 = vmatpush.msrb.mxu1 %v583_v3  ;;  %673 = vmatpush.msrb.mxu3 %v584_v5  ;;  %v713_v3 = vld [vmem:[#allocation5 + $0x8a8] sm:$0xff]  ;;  %v710_v5 = vld [vmem:[#allocation5 + $0x890] sm:$0xff] }
  0xc9   :  { %615 = vmatpush.msrb.mxu0 %v547_v52  ;;  %655 = vmatpush.msrb.mxu2 %v548_v53  ;;  %v755_v52 = vld [vmem:[#allocation5 + $0x9f8] sm:$0xff]  ;;  %v718_v53 = vld [vmem:[#allocation5 + $0x8d0] sm:$0xff] }
  0xca   :  { %634 = vmatpush.msrb.mxu1 %v581_v7  ;;  %674 = vmatpush.msrb.mxu3 %v582_v9  ;;  %v711_v7 = vld [vmem:[#allocation5 + $0x898] sm:$0xff]  ;;  %v708_v9 = vld [vmem:[#allocation5 + $0x880] sm:$0xff] }
  0xcb   :  { %616 = vmatpush.msrb.mxu0 %v545_v2  ;;  %656 = vmatpush.msrb.mxu2 %v546_v4  ;;  %v746_v2 = vld [vmem:[#allocation5 + $0x9b0] sm:$0xff]  ;;  %v747_v4 = vld [vmem:[#allocation5 + $0x9b8] sm:$0xff] }
  0xcc   :  { %635 = vmatpush.msrb.mxu1 %v579_v11  ;;  %675 = vmatpush.msrb.mxu3 %v580_v13  ;;  %v709_v11 = vld [vmem:[#allocation5 + $0x888] sm:$0xff]  ;;  %v706_v13 = vld [vmem:[#allocation5 + $0x870] sm:$0xff] }
  0xcd   :  { %617 = vmatpush.msrb.mxu0 %v543_v6  ;;  %657 = vmatpush.msrb.mxu2 %v544_v8  ;;  %v744_v6 = vld [vmem:[#allocation5 + $0x9a0] sm:$0xff]  ;;  %v745_v8 = vld [vmem:[#allocation5 + $0x9a8] sm:$0xff] }
  0xce   :  { %636 = vmatpush.msrb.mxu1 %v577_v15  ;;  %676 = vmatpush.msrb.mxu3 %v578_v17  ;;  %v707_v15 = vld [vmem:[#allocation5 + $0x878] sm:$0xff]  ;;  %v704_v17 = vld [vmem:[#allocation5 + $0x860] sm:$0xff] }
  0xcf   :  { %618 = vmatpush.msrb.mxu0 %v541_v10  ;;  %658 = vmatpush.msrb.mxu2 %v542_v12  ;;  %v742_v10 = vld [vmem:[#allocation5 + $0x990] sm:$0xff]  ;;  %v743_v12 = vld [vmem:[#allocation5 + $0x998] sm:$0xff] }
  0xd0   :  { %637 = vmatpush.msrb.mxu1 %v575_v19  ;;  %677 = vmatpush.msrb.mxu3 %v576_v21  ;;  %v705_v19 = vld [vmem:[#allocation5 + $0x868] sm:$0xff]  ;;  %v702_v21 = vld [vmem:[#allocation5 + $0x850] sm:$0xff] }
  0xd1   :  { %619 = vmatpush.msrb.mxu0 %v539_v14  ;;  %659 = vmatpush.msrb.mxu2 %v540_v16  ;;  %v740_v14 = vld [vmem:[#allocation5 + $0x980] sm:$0xff]  ;;  %v741_v16 = vld [vmem:[#allocation5 + $0x988] sm:$0xff] }
  0xd2   :  { %638 = vmatpush.msrb.mxu1 %v573_v23  ;;  %678 = vmatpush.msrb.mxu3 %v574_v25  ;;  %v703_v23 = vld [vmem:[#allocation5 + $0x858] sm:$0xff]  ;;  %v700_v25 = vld [vmem:[#allocation5 + $0x840] sm:$0xff] }
  0xd3   :  { %620 = vmatpush.msrb.mxu0 %v537_v18  ;;  %660 = vmatpush.msrb.mxu2 %v538_v20  ;;  %v738_v18 = vld [vmem:[#allocation5 + $0x970] sm:$0xff]  ;;  %v739_v20 = vld [vmem:[#allocation5 + $0x978] sm:$0xff] }
  0xd4   :  { %639 = vmatpush.msrb.mxu1 %v571_v26  ;;  %679 = vmatpush.msrb.mxu3 %v572_v27  ;;  %v734_v26 = vld [vmem:[#allocation5 + $0x950] sm:$0xff]  ;;  %v701_v27 = vld [vmem:[#allocation5 + $0x848] sm:$0xff] }
  0xd5   :  { %621 = vmatpush.msrb.mxu0 %v535_v22  ;;  %661 = vmatpush.msrb.mxu2 %v536_v24  ;;  %v736_v22 = vld [vmem:[#allocation5 + $0x960] sm:$0xff]  ;;  %v737_v24 = vld [vmem:[#allocation5 + $0x968] sm:$0xff] }
  0xd6   :  { %640 = vmatpush.msrb.mxu1 %v569_v28  ;;  %680 = vmatpush.msrb.mxu3 %v570_v29  ;;  %v735_v28 = vld [vmem:[#allocation5 + $0x958] sm:$0xff]  ;;  %v698_v29 = vld [vmem:[#allocation5 + $0x830] sm:$0xff] }
  0xd8   :  { %641 = vmatpush.msrb.mxu1 %v567_v30  ;;  %681 = vmatpush.msrb.mxu3 %v568_v31  ;;  %v732_v30 = vld [vmem:[#allocation5 + $0x940] sm:$0xff]  ;;  %v699_v31 = vld [vmem:[#allocation5 + $0x838] sm:$0xff] }
 0x131   :  { %v307_v51 = vpop.f32.mrf.mxu0 }
 0x132   :  { %v308_v54 = vadd.f32 %v307_v51, %v286_v50  ;;  %v754_v50 = vld [vmem:[#allocation5 + $0x9f0] sm:$0xff]  ;;  %v721_v51 = vld [vmem:[#allocation5 + $0x8e8] sm:$0xff] }
 0x136   :  { %v327_v55 = vpop.f32.mrf.mxu1 }
 0x137   :  { %v328_v56 = vadd.f32 %v327_v55, %v308_v54  ;;  %v347_v58 = vpop.f32.mrf.mxu2  ;;  %v752_v54 = vld [vmem:[#allocation5 + $0x9e0] sm:$0xff]  ;;  %v719_v55 = vld [vmem:[#allocation5 + $0x8d8] sm:$0xff] }
 0x138   :  { %v348_v60 = vadd.f32 %v347_v58, %v287_v57  ;;  %v716_v57 = vld [vmem:[#allocation5 + $0x8c0] sm:$0xff]  ;;  %v750_v58 = vld [vmem:[#allocation5 + $0x9d0] sm:$0xff] }
 0x139   :  { %vm370_vm2 = vcmp.gt.f32.partialorder %v328_v56, 0.0  ;;  %v372_v59 = vmul.f32 0.2, %v328_v56 }
 0x13b   :  { %v374_v61 = vsel %vm370_vm2, %v328_v56, %v372_v59  ;;  %v753_v56 = vld [vmem:[#allocation5 + $0x9e8] sm:$0xff] }
 0x13c   :  { %v367_v62 = vpop.f32.mrf.mxu3  ;;  %464 = vmatmul.f32.vlgmr.msra.gmra.mxu0 %v374_v61  ;;  %504 = vmatmul.f32.vlgmr.msra.gmra.mxu2 %v374_v61  ;;  %v717_v59 = vld [vmem:[#allocation5 + $0x8c8] sm:$0xff]  ;;  %v714_v61 = vld [vmem:[#allocation5 + $0x8b0] sm:$0xff] }
 0x13d   :  { %v368_v63 = vadd.f32 %v367_v62, %v348_v60  ;;  %763 = vmatpush.msra.mxu0 %v722_v32  ;;  %803 = vmatpush.msra.mxu2 %v723_v33  ;;  %v751_v60 = vld [vmem:[#allocation5 + $0x9d8] sm:$0xff]  ;;  %v748_v62 = vld [vmem:[#allocation5 + $0x9c0] sm:$0xff]  ;;  %v733_v32 = vld [vmem:[#allocation5 + $0x948] sm:$0xff] }
 0x13e   :  { %v696_v33 = vld [vmem:[#allocation5 + $0x820] sm:$0xff] }
 0x13f   :  { %vm371_vm3 = vcmp.gt.f32.partialorder %v368_v63, 0.0  ;;  %v373_v0 = vmul.f32 0.2, %v368_v63  ;;  %764 = vmatpush.msra.mxu0 %v720_v49  ;;  %804 = vmatpush.msra.mxu2 %v721_v51  ;;  %v881_v49 = vld [vmem:[#allocation5 + $0xaf8] sm:$0xff]  ;;  %v1386_v51 = vmov 0.0  }
 0x141   :  { %v375_v1 = vsel %vm371_vm3, %v368_v63, %v373_v0  ;;  %765 = vmatpush.msra.mxu0 %v718_v53  ;;  %805 = vmatpush.msra.mxu2 %v719_v55  ;;  %v715_v63 = vld [vmem:[#allocation5 + $0x8b8] sm:$0xff]  ;;  %v749_v0 = vld [vmem:[#allocation5 + $0x9c8] sm:$0xff]  ;;  %v912_v55 = vld [vmem:[#allocation5 + $0xbf0] sm:$0xff] }
 0x142   :  { %484 = vmatmul.f32.vlgmr.msra.gmra.mxu1 %v375_v1  ;;  %524 = vmatmul.f32.vlgmr.msra.gmra.mxu3 %v375_v1  ;;  %v712_v1 = vld [vmem:[#allocation5 + $0x8a0] sm:$0xff] }
 0x143   :  { %783 = vmatpush.msra.mxu1 %v754_v50  ;;  %823 = vmatpush.msra.mxu3 %v755_v52  ;;  %v878_v50 = vld [vmem:[#allocation5 + $0xae0] sm:$0xff]  ;;  %v879_v52 = vld [vmem:[#allocation5 + $0xae8] sm:$0xff] }
 0x144   :  { %766 = vmatpush.msra.mxu0 %v716_v57  ;;  %806 = vmatpush.msra.mxu2 %v717_v59  ;;  %v910_v59 = vld [vmem:[#allocation5 + $0xbe0] sm:$0xff] }
 0x145   :  { %784 = vmatpush.msra.mxu1 %v752_v54  ;;  %824 = vmatpush.msra.mxu3 %v753_v56  ;;  %v876_v54 = vld [vmem:[#allocation5 + $0xad0] sm:$0xff]  ;;  %v913_v56 = vld [vmem:[#allocation5 + $0xbf8] sm:$0xff] }
 0x146   :  { %767 = vmatpush.msra.mxu0 %v714_v61  ;;  %807 = vmatpush.msra.mxu2 %v715_v63  ;;  %v911_v61 = vld [vmem:[#allocation5 + $0xbe8] sm:$0xff] }
 0x147   :  { %785 = vmatpush.msra.mxu1 %v750_v58  ;;  %825 = vmatpush.msra.mxu3 %v751_v60  ;;  %v877_v58 = vld [vmem:[#allocation5 + $0xad8] sm:$0xff]  ;;  %v874_v60 = vld [vmem:[#allocation5 + $0xac0] sm:$0xff]  ;;  %v875_v63 = vld [vmem:[#allocation5 + $0xac8] sm:$0xff] }
 0x148   :  { %768 = vmatpush.msra.mxu0 %v712_v1  ;;  %808 = vmatpush.msra.mxu2 %v713_v3  ;;  %v906_v3 = vld [vmem:[#allocation5 + $0xbc0] sm:$0xff] }
 0x149   :  { %786 = vmatpush.msra.mxu1 %v748_v62  ;;  %826 = vmatpush.msra.mxu3 %v749_v0  ;;  %v908_v62 = vld [vmem:[#allocation5 + $0xbd0] sm:$0xff]  ;;  %v909_v0 = vld [vmem:[#allocation5 + $0xbd8] sm:$0xff] }
 0x14a   :  { %769 = vmatpush.msra.mxu0 %v710_v5  ;;  %809 = vmatpush.msra.mxu2 %v711_v7  ;;  %v873_v5 = vld [vmem:[#allocation5 + $0xab8] sm:$0xff] }
 0x14b   :  { %787 = vmatpush.msra.mxu1 %v746_v2  ;;  %827 = vmatpush.msra.mxu3 %v747_v4  ;;  %v872_v2 = vld [vmem:[#allocation5 + $0xab0] sm:$0xff] }
 0x14c   :  { %770 = vmatpush.msra.mxu0 %v708_v9  ;;  %810 = vmatpush.msra.mxu2 %v709_v11  ;;  %v870_v9 = vld [vmem:[#allocation5 + $0xaa0] sm:$0xff] }
 0x14d   :  { %788 = vmatpush.msra.mxu1 %v744_v6  ;;  %828 = vmatpush.msra.mxu3 %v745_v8  ;;  %v907_v6 = vld [vmem:[#allocation5 + $0xbc8] sm:$0xff] }
 0x14e   :  { %771 = vmatpush.msra.mxu0 %v706_v13  ;;  %811 = vmatpush.msra.mxu2 %v707_v15  ;;  %v905_v13 = vld [vmem:[#allocation5 + $0xbb8] sm:$0xff]  ;;  %v902_v15 = vld [vmem:[#allocation5 + $0xba0] sm:$0xff] }
 0x14f   :  { %789 = vmatpush.msra.mxu1 %v742_v10  ;;  %829 = vmatpush.msra.mxu3 %v743_v12  ;;  %v904_v10 = vld [vmem:[#allocation5 + $0xbb0] sm:$0xff]  ;;  %v871_v12 = vld [vmem:[#allocation5 + $0xaa8] sm:$0xff] }
 0x150   :  { %772 = vmatpush.msra.mxu0 %v704_v17  ;;  %812 = vmatpush.msra.mxu2 %v705_v19  ;;  %v903_v17 = vld [vmem:[#allocation5 + $0xba8] sm:$0xff]  ;;  %v866_v19 = vld [vmem:[#allocation5 + $0xa80] sm:$0xff] }
 0x151   :  { %790 = vmatpush.msra.mxu1 %v740_v14  ;;  %830 = vmatpush.msra.mxu3 %v741_v16  ;;  %v868_v14 = vld [vmem:[#allocation5 + $0xa90] sm:$0xff]  ;;  %v869_v16 = vld [vmem:[#allocation5 + $0xa98] sm:$0xff] }
 0x152   :  { %773 = vmatpush.msra.mxu0 %v702_v21  ;;  %813 = vmatpush.msra.mxu2 %v703_v23  ;;  %v901_v23 = vld [vmem:[#allocation5 + $0xb98] sm:$0xff] }
 0x153   :  { %791 = vmatpush.msra.mxu1 %v738_v18  ;;  %831 = vmatpush.msra.mxu3 %v739_v20  ;;  %v900_v20 = vld [vmem:[#allocation5 + $0xb90] sm:$0xff] }
 0x154   :  { %774 = vmatpush.msra.mxu0 %v700_v25  ;;  %814 = vmatpush.msra.mxu2 %v701_v27  ;;  %v864_v25 = vld [vmem:[#allocation5 + $0xa70] sm:$0xff]  ;;  %v865_v27 = vld [vmem:[#allocation5 + $0xa78] sm:$0xff] }
 0x155   :  { %792 = vmatpush.msra.mxu1 %v736_v22  ;;  %832 = vmatpush.msra.mxu3 %v737_v24  ;;  %v867_v22 = vld [vmem:[#allocation5 + $0xa88] sm:$0xff] }
 0x156   :  { %775 = vmatpush.msra.mxu0 %v698_v29  ;;  %815 = vmatpush.msra.mxu2 %v699_v31  ;;  %v896_v31 = vld [vmem:[#allocation5 + $0xb70] sm:$0xff] }
 0x157   :  { %793 = vmatpush.msra.mxu1 %v734_v26  ;;  %833 = vmatpush.msra.mxu3 %v735_v28  ;;  %v898_v26 = vld [vmem:[#allocation5 + $0xb80] sm:$0xff]  ;;  %v899_v28 = vld [vmem:[#allocation5 + $0xb88] sm:$0xff] }
 0x158   :  { %776 = vmatpush.msra.mxu0 %v696_v33  ;;  %v897_v33 = vld [vmem:[#allocation5 + $0xb78] sm:$0xff] }
 0x159   :  { %794 = vmatpush.msra.mxu1 %v732_v30  ;;  %834 = vmatpush.msra.mxu3 %v733_v32  ;;  %v862_v30 = vld [vmem:[#allocation5 + $0xa60] sm:$0xff]  ;;  %v863_v32 = vld [vmem:[#allocation5 + $0xa68] sm:$0xff] }
 0x15b   :  { %795 = vmatpush.msra.mxu1 %v730_v34 }
 0x1b9   :  { %v465_v36 = vpop.f32.mrf.mxu0 }
 0x1ba   :  { %v466_v37 = vadd.f32 %v465_v36, %v444_v35  ;;  %v697_v35 = vld [vmem:[#allocation5 + $0x828] sm:$0xff]  ;;  %v731_v36 = vld [vmem:[#allocation5 + $0x938] sm:$0xff] }
 0x1bb   :  { %816 = vmatpush.msra.mxu2 %v697_v35  ;;  %835 = vmatpush.msra.mxu3 %v731_v36  ;;  %v860_v35 = vld [vmem:[#allocation5 + $0xa50] sm:$0xff]  ;;  %v861_v36 = vld [vmem:[#allocation5 + $0xa58] sm:$0xff] }
 0x1bf   :  { %v485_v38 = vpop.f32.mrf.mxu1  ;;  %v505_v41 = vpop.f32.mrf.mxu2 }
 0x1c0   :  { %v486_v39 = vadd.f32 %v485_v38, %v466_v37  ;;  %v506_v43 = vadd.f32 %v505_v41, %v445_v40  ;;  %v694_v37 = vld [vmem:[#allocation5 + $0x810] sm:$0xff]  ;;  %v728_v38 = vld [vmem:[#allocation5 + $0x920] sm:$0xff]  ;;  %v729_v40 = vld [vmem:[#allocation5 + $0x928] sm:$0xff] }
 0x1c1   :  { %v692_v41 = vld [vmem:[#allocation5 + $0x800] sm:$0xff]  ;;  %777 = vmatpush.msra.mxu0 %v694_v37  ;;  %796 = vmatpush.msra.mxu1 %v728_v38  ;;  %v859_v38 = vld [vmem:[#allocation5 + $0xa48] sm:$0xff] }
 0x1c2   :  { %vm528_vm4 = vcmp.gt.f32.partialorder %v486_v39, 0.0  ;;  %v530_v42 = vmul.f32 0.2, %v486_v39  ;;  %836 = vmatpush.msra.mxu3 %v729_v40  ;;  %v858_v37 = vld [vmem:[#allocation5 + $0xa40] sm:$0xff]  ;;  %v1276_v40 = vld [vmem:[#allocation2 + $0x8] sm:$0xff] }
 0x1c3   :  { %778 = vmatpush.msra.mxu0 %v692_v41 }
 0x1c4   :  { %v532_v44 = vsel %vm528_vm4, %v486_v39, %v530_v42  ;;  %v695_v39 = vld [vmem:[#allocation5 + $0x818] sm:$0xff]  ;;  %v726_v42 = vld [vmem:[#allocation5 + $0x910] sm:$0xff] }
 0x1c5   :  { %v525_v45 = vpop.f32.mrf.mxu3  ;;  %622 = vmatmul.f32.vlgmr.msrb.gmra.mxu0 %v532_v44  ;;  %662 = vmatmul.f32.vlgmr.msrb.gmra.mxu2 %v532_v44  ;;  %v727_v44 = vld [vmem:[#allocation5 + $0x918] sm:$0xff] }
 0x1c6   :  { %v526_v46 = vadd.f32 %v525_v45, %v506_v43  ;;  %v693_v43 = vld [vmem:[#allocation5 + $0x808] sm:$0xff]  ;;  %817 = vmatpush.msra.mxu2 %v695_v39  ;;  %v1417_v45 = vld [vmem:[#allocation7 + $0x6] sm:$0x3]  ;;  %797 = vmatpush.msra.mxu1 %v726_v42 }
 0x1c7   :  { %837 = vmatpush.msra.mxu3 %v727_v44  ;;  %v602_v53 = vperm.slane %v1417_v45, 0  ;;  %v603_v8 = vperm.slane %v1417_v45, 1  ;;  %v894_v44 = vld [vmem:[#allocation5 + $0xb60] sm:$0xff]  ;;  %v857_v45 = vld [vmem:[#allocation5 + $0xa38] sm:$0xff] }
 0x1c8   :  { %vm529_vm5 = vcmp.gt.f32.partialorder %v526_v46, 0.0  ;;  %v531_v47 = vmul.f32 0.2, %v526_v46  ;;  %818 = vmatpush.msra.mxu2 %v693_v43  ;;  %v856_v43 = vld [vmem:[#allocation5 + $0xa30] sm:$0xff] }
 0x1ca   :  { %v533_v48 = vsel %vm529_vm5, %v526_v46, %v531_v47  ;;  %v724_v46 = vld [vmem:[#allocation5 + $0x900] sm:$0xff]  ;;  %v725_v47 = vld [vmem:[#allocation5 + $0x908] sm:$0xff]  ;;  %961 = vmatpush.msrb.mxu2 %v881_v49 }
 0x1cb   :  { %642 = vmatmul.f32.vlgmr.msrb.gmra.mxu1 %v533_v48  ;;  %682 = vmatmul.f32.vlgmr.msrb.gmra.mxu3 %v533_v48  ;;  %v880_v48 = vld [vmem:[#allocation5 + $0xaf0] sm:$0xff]  ;;  %v855_v49 = vld [vmem:[#allocation5 + $0xa28] sm:$0xff] }
 0x1cc   :  { %798 = vmatpush.msra.mxu1 %v724_v46  ;;  %921 = vmatpush.msrb.mxu0 %v880_v48  ;;  %v895_v46 = vld [vmem:[#allocation5 + $0xb68] sm:$0xff]  ;;  %v892_v48 = vld [vmem:[#allocation5 + $0xb50] sm:$0xff] }
 0x1cd   :  { %838 = vmatpush.msra.mxu3 %v725_v47  ;;  %962 = vmatpush.msrb.mxu2 %v879_v52  ;;  %v854_v47 = vld [vmem:[#allocation5 + $0xa20] sm:$0xff] }
 0x1ce   :  { %922 = vmatpush.msrb.mxu0 %v878_v50  ;;  %941 = vmatpush.msrb.mxu1 %v912_v55  ;;  %v893_v50 = vld [vmem:[#allocation5 + $0xb58] sm:$0xff]  ;;  %v890_v52 = vld [vmem:[#allocation5 + $0xb40] sm:$0xff] }
 0x1cf   :  { %981 = vmatpush.msrb.mxu3 %v913_v56  ;;  %963 = vmatpush.msrb.mxu2 %v877_v58  ;;  %v850_v55 = vld [vmem:[#allocation5 + $0xa00] sm:$0xff]  ;;  %v888_v56 = vld [vmem:[#allocation5 + $0xb30] sm:$0xff]  ;;  %v889_v58 = vld [vmem:[#allocation5 + $0xb38] sm:$0xff] }
 0x1d0   :  { %923 = vmatpush.msrb.mxu0 %v876_v54  ;;  %942 = vmatpush.msrb.mxu1 %v910_v59  ;;  %v891_v54 = vld [vmem:[#allocation5 + $0xb48] sm:$0xff]  ;;  %v886_v59 = vld [vmem:[#allocation5 + $0xb20] sm:$0xff] }
 0x1d1   :  { %982 = vmatpush.msrb.mxu3 %v911_v61  ;;  %964 = vmatpush.msrb.mxu2 %v875_v63  ;;  %v884_v61 = vld [vmem:[#allocation5 + $0xb10] sm:$0xff]  ;;  %v882_v63 = vld [vmem:[#allocation5 + $0xb00] sm:$0xff] }
 0x1d2   :  { %924 = vmatpush.msrb.mxu0 %v874_v60  ;;  %943 = vmatpush.msrb.mxu1 %v908_v62  ;;  %v887_v60 = vld [vmem:[#allocation5 + $0xb28] sm:$0xff]  ;;  %v885_v62 = vld [vmem:[#allocation5 + $0xb18] sm:$0xff] }
 0x1d3   :  { %799 = vmatmul.f32.vlgmr.msra.gmra.mxu1 %v1386_v51  ;;  %839 = vmatmul.f32.vlgmr.msra.gmra.mxu3 %v1386_v51  ;;  %v852_v51 = vld [vmem:[#allocation5 + $0xa10] sm:$0xff] }
 0x1d4   :  { %983 = vmatpush.msrb.mxu3 %v909_v0  ;;  %925 = vmatpush.msrb.mxu0 %v872_v2  ;;  %v883_v0 = vld [vmem:[#allocation5 + $0xb08] sm:$0xff]  ;;  %v1039_v2 = vld [vmem:[#allocation5 + $0xcf8] sm:$0xff] }
 0x1d5   :  { %944 = vmatpush.msrb.mxu1 %v906_v3  ;;  %965 = vmatpush.msrb.mxu2 %v873_v5  ;;  %v1036_v3 = vld [vmem:[#allocation5 + $0xce0] sm:$0xff]  ;;  %v1034_v5 = vld [vmem:[#allocation5 + $0xcd0] sm:$0xff] }
 0x1d6   :  { %984 = vmatpush.msrb.mxu3 %v907_v6  ;;  %926 = vmatpush.msrb.mxu0 %v870_v9  ;;  %v1035_v6 = vld [vmem:[#allocation5 + $0xcd8] sm:$0xff]  ;;  %v1068_v9 = vld [vmem:[#allocation5 + $0xde0] sm:$0xff] }
 0x1d7   :  { %945 = vmatpush.msrb.mxu1 %v904_v10  ;;  %966 = vmatpush.msrb.mxu2 %v871_v12  ;;  %v1032_v10 = vld [vmem:[#allocation5 + $0xcc0] sm:$0xff]  ;;  %v1069_v12 = vld [vmem:[#allocation5 + $0xde8] sm:$0xff] }
 0x1d8   :  { %985 = vmatpush.msrb.mxu3 %v905_v13  ;;  %927 = vmatpush.msrb.mxu0 %v868_v14  ;;  %v1066_v13 = vld [vmem:[#allocation5 + $0xdd0] sm:$0xff]  ;;  %v1067_v14 = vld [vmem:[#allocation5 + $0xdd8] sm:$0xff] }
 0x1d9   :  { %946 = vmatpush.msrb.mxu1 %v902_v15  ;;  %967 = vmatpush.msrb.mxu2 %v869_v16  ;;  %v1030_v15 = vld [vmem:[#allocation5 + $0xcb0] sm:$0xff]  ;;  %v1031_v16 = vld [vmem:[#allocation5 + $0xcb8] sm:$0xff] }
 0x1da   :  { %986 = vmatpush.msrb.mxu3 %v903_v17  ;;  %928 = vmatpush.msrb.mxu0 %v866_v19  ;;  %v1064_v17 = vld [vmem:[#allocation5 + $0xdc0] sm:$0xff] }
 0x1db   :  { %947 = vmatpush.msrb.mxu1 %v900_v20  ;;  %968 = vmatpush.msrb.mxu2 %v867_v22  ;;  %v1028_v19 = vld [vmem:[#allocation5 + $0xca0] sm:$0xff]  ;;  %v1029_v20 = vld [vmem:[#allocation5 + $0xca8] sm:$0xff]  ;;  %v1063_v22 = vld [vmem:[#allocation5 + $0xdb8] sm:$0xff] }
 0x1dc   :  { %987 = vmatpush.msrb.mxu3 %v901_v23  ;;  %929 = vmatpush.msrb.mxu0 %v864_v25  ;;  %v1026_v23 = vld [vmem:[#allocation5 + $0xc90] sm:$0xff]  ;;  %v1060_v25 = vld [vmem:[#allocation5 + $0xda0] sm:$0xff] }
 0x1dd   :  { %948 = vmatpush.msrb.mxu1 %v898_v26  ;;  %969 = vmatpush.msrb.mxu2 %v865_v27  ;;  %v1061_v26 = vld [vmem:[#allocation5 + $0xda8] sm:$0xff] }
 0x1de   :  { %988 = vmatpush.msrb.mxu3 %v899_v28  ;;  %930 = vmatpush.msrb.mxu0 %v862_v30  ;;  %v757_v27 = vld [vmem:[#allocation7 + $0x8] sm:$0x3]  ;;  %v1024_v28 = vld [vmem:[#allocation5 + $0xc80] sm:$0xff]  ;;  %v1058_v30 = vld [vmem:[#allocation5 + $0xd90] sm:$0xff] }
 0x1df   :  { %949 = vmatpush.msrb.mxu1 %v896_v31  ;;  %970 = vmatpush.msrb.mxu2 %v863_v32  ;;  %v1059_v31 = vld [vmem:[#allocation5 + $0xd98] sm:$0xff]  ;;  %v1022_v32 = vld [vmem:[#allocation5 + $0xc70] sm:$0xff] }
 0x1e0   :  { %989 = vmatpush.msrb.mxu3 %v897_v33  ;;  %931 = vmatpush.msrb.mxu0 %v860_v35  ;;  %v1023_v33 = vld [vmem:[#allocation5 + $0xc78] sm:$0xff]  ;;  %v1020_v35 = vld [vmem:[#allocation5 + $0xc60] sm:$0xff] }
 0x1e1   :  { %971 = vmatpush.msrb.mxu2 %v861_v36  ;;  %950 = vmatpush.msrb.mxu1 %v894_v44  ;;  %v1021_v36 = vld [vmem:[#allocation5 + $0xc68] sm:$0xff] }
 0x1e2   :  { %932 = vmatpush.msrb.mxu0 %v858_v37  ;;  %990 = vmatpush.msrb.mxu3 %v895_v46 }
 0x1e3   :  { %972 = vmatpush.msrb.mxu2 %v859_v38  ;;  %951 = vmatpush.msrb.mxu1 %v892_v48 }
 0x1e4   :  { %933 = vmatpush.msrb.mxu0 %v856_v43  ;;  %991 = vmatpush.msrb.mxu3 %v893_v50  ;;  %v1018_v50 = vld [vmem:[#allocation5 + $0xc50] sm:$0xff] }
 0x1e5   :  { %973 = vmatpush.msrb.mxu2 %v857_v45  ;;  %952 = vmatpush.msrb.mxu1 %v890_v52  ;;  %v1019_v52 = vld [vmem:[#allocation5 + $0xc58] sm:$0xff] }
 0x1e6   :  { %934 = vmatpush.msrb.mxu0 %v854_v47  ;;  %992 = vmatpush.msrb.mxu3 %v891_v54  ;;  %v1016_v54 = vld [vmem:[#allocation5 + $0xc40] sm:$0xff] }
 0x1e7   :  { %974 = vmatpush.msrb.mxu2 %v855_v49  ;;  %953 = vmatpush.msrb.mxu1 %v888_v56  ;;  %v1017_v56 = vld [vmem:[#allocation5 + $0xc48] sm:$0xff] }
 0x1e8   :  { %935 = vmatpush.msrb.mxu0 %v852_v51  ;;  %993 = vmatpush.msrb.mxu3 %v889_v58  ;;  %v1056_v51 = vld [vmem:[#allocation5 + $0xd80] sm:$0xff]  ;;  %v1014_v58 = vld [vmem:[#allocation5 + $0xc30] sm:$0xff] }
 0x1e9   :  { %954 = vmatpush.msrb.mxu1 %v886_v59  ;;  %v1052_v59 = vld [vmem:[#allocation5 + $0xd60] sm:$0xff] }
 0x1ea   :  { %936 = vmatpush.msrb.mxu0 %v850_v55  ;;  %994 = vmatpush.msrb.mxu3 %v887_v60  ;;  %v1054_v55 = vld [vmem:[#allocation5 + $0xd70] sm:$0xff]  ;;  %v1015_v60 = vld [vmem:[#allocation5 + $0xc38] sm:$0xff] }
 0x1eb   :  { %955 = vmatpush.msrb.mxu1 %v884_v61  ;;  %v1053_v61 = vld [vmem:[#allocation5 + $0xd68] sm:$0xff] }
 0x1ec   :  { %995 = vmatpush.msrb.mxu3 %v885_v62  ;;  %v1012_v62 = vld [vmem:[#allocation5 + $0xc20] sm:$0xff] }
 0x1ed   :  { %956 = vmatpush.msrb.mxu1 %v882_v63  ;;  %v1050_v63 = vld [vmem:[#allocation5 + $0xd50] sm:$0xff] }
 0x1ee   :  { %996 = vmatpush.msrb.mxu3 %v883_v0  ;;  %v1013_v0 = vld [vmem:[#allocation5 + $0xc28] sm:$0xff] }
 0x242   :  { %v623_v57 = vpop.f32.mrf.mxu0 }
 0x243   :  { %v624_v1 = vadd.f32 %v623_v57, %v602_v53  ;;  %v853_v53 = vld [vmem:[#allocation5 + $0xa18] sm:$0xff]  ;;  %v851_v57 = vld [vmem:[#allocation5 + $0xa08] sm:$0xff] }
 0x244   :  { %975 = vmatpush.msrb.mxu2 %v853_v53  ;;  %v1057_v53 = vld [vmem:[#allocation5 + $0xd88] sm:$0xff] }
 0x246   :  { %976 = vmatpush.msrb.mxu2 %v851_v57  ;;  %v1055_v57 = vld [vmem:[#allocation5 + $0xd78] sm:$0xff] }
 0x248   :  { %v643_v4 = vpop.f32.mrf.mxu1  ;;  %v663_v11 = vpop.f32.mrf.mxu2 }
 0x249   :  { %v1420_v7 = vadd.f32 %v643_v4, %v624_v1  ;;  %v664_v18 = vadd.f32 %v663_v11, %v603_v8  ;;  %v1038_v1 = vld [vmem:[#allocation5 + $0xcf0] sm:$0xff]  ;;  %v1037_v4 = vld [vmem:[#allocation5 + $0xce8] sm:$0xff]  ;;  %v1071_v8 = vld [vmem:[#allocation5 + $0xdf8] sm:$0xff] }
 0x24a   :  { %v1033_v11 = vld [vmem:[#allocation5 + $0xcc8] sm:$0xff]  ;;  %1139 = vmatpush.msra.mxu3 %v1071_v8 }
 0x24b   :  { %1245 = vst [vmem:[#allocation8 + $0x10] sm:$0xff] %v1420_v7  ;;  %v1009_v8 = vld [vmem:[#allocation5 + $0xc08] sm:$0xff] }
 0x24c   :  { %1140 = vmatpush.msra.mxu3 %v1069_v12  ;;  %v1042_v12 = vld [vmem:[#allocation5 + $0xd10] sm:$0xff] }
 0x24e   :  { %v683_v21 = vpop.f32.mrf.mxu3  ;;  %1141 = vmatpush.msra.mxu3 %v1067_v14  ;;  %v1040_v14 = vld [vmem:[#allocation5 + $0xd00] sm:$0xff] }
 0x24f   :  { %v684_v24 = vadd.f32 %v683_v21, %v664_v18  ;;  %v1065_v18 = vld [vmem:[#allocation5 + $0xdc8] sm:$0xff]  ;;  %v1062_v21 = vld [vmem:[#allocation5 + $0xdb0] sm:$0xff] }
 0x250   :  { %1142 = vmatpush.msra.mxu3 %v1065_v18  ;;  %v800_v38 = vpop.f32.mrf.mxu1  ;;  %v1197_v18 = vld [vmem:[#allocation5 + $0xff0] sm:$0xff] }
 0x251   :  { %v686_v29 = vmul.f32 0.5, %v684_v24  ;;  %1246 = vst [vmem:[#allocation8 + $0x18] sm:$0xff] %v684_v24  ;;  %v1027_v24 = vld [vmem:[#allocation5 + $0xc98] sm:$0xff] }
 0x252   :  { %1143 = vmatpush.msra.mxu3 %v1063_v22  ;;  %v1178_v22 = vld [vmem:[#allocation5 + $0xec0] sm:$0xff] }
 0x253   :  { %v687_v34 = vmul.f32 1.442695, %v686_v29  ;;  %v1025_v29 = vld [vmem:[#allocation5 + $0xc88] sm:$0xff] }
 0x254   :  { %1144 = vmatpush.msra.mxu3 %v1061_v26  ;;  %v1176_v26 = vld [vmem:[#allocation5 + $0xea0] sm:$0xff] }
 0x255   :  { %1274 = vpow2.f32 %v687_v34  ;;  %v759_v34 = vperm.slane %v757_v27, 0 }
 0x256   :  { %1145 = vmatpush.msra.mxu3 %v1059_v31  ;;  %v840_v44 = vpop.f32.mrf.mxu3  ;;  %v1174_v31 = vld [vmem:[#allocation5 + $0xe80] sm:$0xff] }
 0x258   :  { %1146 = vmatpush.msra.mxu3 %v1057_v53  ;;  %v1188_v53 = vld [vmem:[#allocation5 + $0xf60] sm:$0xff] }
 0x25a   :  { %1147 = vmatpush.msra.mxu3 %v1055_v57  ;;  %v1186_v57 = vld [vmem:[#allocation5 + $0xf40] sm:$0xff] }
 0x25b   :  { %v1275_v39 = vpop.eup %1274 }
 0x25c   :  { %v689_v41 = vmul.f32 %v1276_v40, %v1275_v39  ;;  %1148 = vmatpush.msra.mxu3 %v1053_v61  ;;  %v1183_v61 = vld [vmem:[#allocation5 + $0xf10] sm:$0xff] }
 0x25e   :  { %v690_v42 = vadd.f32 %v689_v41, %v1420_v7  ;;  %v1070_v7 = vld [vmem:[#allocation5 + $0xdf0] sm:$0xff]  ;;  %v760_v41 = vperm.slane %v757_v27, 1  ;;  %v1192_v27 = vld [vmem:[#allocation5 + $0xfa0] sm:$0xff] }
 0x25f   :  { %1099 = vmatpush.msra.mxu1 %v1070_v7  ;;  %v1046_v7 = vld [vmem:[#allocation5 + $0xd30] sm:$0xff] }
 0x260   :  { %779 = vmatmul.f32.vlgmr.msra.gmra.mxu0 %v690_v42  ;;  %1244 = vst [vmem:[#allocation8 + $0x8] sm:$0xff] %v690_v42  ;;  %819 = vmatmul.f32.vlgmr.msra.gmra.mxu2 %v690_v42 }
 0x261   :  { %1079 = vmatpush.msra.mxu0 %v1038_v1  ;;  %1119 = vmatpush.msra.mxu2 %v1039_v2  ;;  %v1051_v1 = vld [vmem:[#allocation5 + $0xd58] sm:$0xff]  ;;  %v1010_v2 = vld [vmem:[#allocation5 + $0xc10] sm:$0xff] }
 0x262   :  { %1100 = vmatpush.msra.mxu1 %v1068_v9  ;;  %1149 = vmatpush.msra.mxu3 %v1051_v1  ;;  %v1047_v9 = vld [vmem:[#allocation5 + $0xd38] sm:$0xff] }
 0x263   :  { %1080 = vmatpush.msra.mxu0 %v1036_v3  ;;  %1120 = vmatpush.msra.mxu2 %v1037_v4  ;;  %v1048_v3 = vld [vmem:[#allocation5 + $0xd40] sm:$0xff]  ;;  %v1011_v4 = vld [vmem:[#allocation5 + $0xc18] sm:$0xff] }
 0x264   :  { %1101 = vmatpush.msra.mxu1 %v1066_v13  ;;  %v1043_v13 = vld [vmem:[#allocation5 + $0xd18] sm:$0xff] }
 0x265   :  { %1081 = vmatpush.msra.mxu0 %v1034_v5  ;;  %1121 = vmatpush.msra.mxu2 %v1035_v6  ;;  %v1049_v5 = vld [vmem:[#allocation5 + $0xd48] sm:$0xff]  ;;  %v1008_v6 = vld [vmem:[#allocation5 + $0xc00] sm:$0xff] }
 0x266   :  { %1102 = vmatpush.msra.mxu1 %v1064_v17  ;;  %1150 = vmatpush.msra.mxu3 %v1049_v5  ;;  %v1180_v17 = vld [vmem:[#allocation5 + $0xee0] sm:$0xff] }
 0x267   :  { %1082 = vmatpush.msra.mxu0 %v1032_v10  ;;  %1122 = vmatpush.msra.mxu2 %v1033_v11  ;;  %v1044_v10 = vld [vmem:[#allocation5 + $0xd20] sm:$0xff]  ;;  %v1045_v11 = vld [vmem:[#allocation5 + $0xd28] sm:$0xff] }
 0x268   :  { %1103 = vmatpush.msra.mxu1 %v1062_v21  ;;  %1151 = vmatpush.msra.mxu3 %v1047_v9  ;;  %v1195_v21 = vld [vmem:[#allocation5 + $0xfd0] sm:$0xff] }
 0x269   :  { %1083 = vmatpush.msra.mxu0 %v1030_v15  ;;  %1123 = vmatpush.msra.mxu2 %v1031_v16  ;;  %v1041_v15 = vld [vmem:[#allocation5 + $0xd08] sm:$0xff]  ;;  %v1181_v16 = vld [vmem:[#allocation5 + $0xef0] sm:$0xff] }
 0x26a   :  { %1104 = vmatpush.msra.mxu1 %v1060_v25  ;;  %1152 = vmatpush.msra.mxu3 %v1045_v11  ;;  %v1193_v25 = vld [vmem:[#allocation5 + $0xfb0] sm:$0xff] }
 0x26b   :  { %1084 = vmatpush.msra.mxu0 %v1028_v19  ;;  %1124 = vmatpush.msra.mxu2 %v1029_v20  ;;  %v1179_v19 = vld [vmem:[#allocation5 + $0xed0] sm:$0xff]  ;;  %v1196_v20 = vld [vmem:[#allocation5 + $0xfe0] sm:$0xff] }
 0x26c   :  { %1105 = vmatpush.msra.mxu1 %v1058_v30  ;;  %1153 = vmatpush.msra.mxu3 %v1043_v13  ;;  %v915_v30 = vld [vmem:[#allocation7 + $0xa] sm:$0x3] }
 0x26d   :  { %1085 = vmatpush.msra.mxu0 %v1026_v23  ;;  %1125 = vmatpush.msra.mxu2 %v1027_v24  ;;  %v1194_v23 = vld [vmem:[#allocation5 + $0xfc0] sm:$0xff]  ;;  %v1177_v24 = vld [vmem:[#allocation5 + $0xeb0] sm:$0xff] }
 0x26e   :  { %1106 = vmatpush.msra.mxu1 %v1056_v51  ;;  %1154 = vmatpush.msra.mxu3 %v1041_v15  ;;  %v1189_v51 = vld [vmem:[#allocation5 + $0xf70] sm:$0xff] }
 0x26f   :  { %1086 = vmatpush.msra.mxu0 %v1024_v28  ;;  %1126 = vmatpush.msra.mxu2 %v1025_v29  ;;  %v1175_v28 = vld [vmem:[#allocation5 + $0xe90] sm:$0xff] }
 0x270   :  { %1107 = vmatpush.msra.mxu1 %v1054_v55  ;;  %v1191_v29 = vld [vmem:[#allocation5 + $0xf90] sm:$0xff] }
 0x271   :  { %1087 = vmatpush.msra.mxu0 %v1022_v32  ;;  %1127 = vmatpush.msra.mxu2 %v1023_v33  ;;  %v1173_v32 = vld [vmem:[#allocation5 + $0xe70] sm:$0xff]  ;;  %v917_v33 = vperm.slane %v915_v30, 0 }
 0x272   :  { %1108 = vmatpush.msra.mxu1 %v1052_v59  ;;  %v1187_v55 = vld [vmem:[#allocation5 + $0xf50] sm:$0xff] }
 0x273   :  { %1088 = vmatpush.msra.mxu0 %v1020_v35  ;;  %1128 = vmatpush.msra.mxu2 %v1021_v36  ;;  %v1172_v35 = vld [vmem:[#allocation5 + $0xe60] sm:$0xff]  ;;  %v1185_v59 = vld [vmem:[#allocation5 + $0xf30] sm:$0xff] }
 0x274   :  { %1109 = vmatpush.msra.mxu1 %v1050_v63  ;;  %v1073_v63 = vld [vmem:[#allocation7 + $0xc] sm:$0x3] }
 0x275   :  { %1089 = vmatpush.msra.mxu0 %v1018_v50  ;;  %1129 = vmatpush.msra.mxu2 %v1019_v52  ;;  %v1170_v50 = vld [vmem:[#allocation5 + $0xe40] sm:$0xff]  ;;  %v1169_v52 = vld [vmem:[#allocation5 + $0xe30] sm:$0xff]  ;;  %v1076_v5 = vperm.slane %v1073_v63, 1 }
 0x276   :  { %1110 = vmatpush.msra.mxu1 %v1048_v3 }
 0x277   :  { %1090 = vmatpush.msra.mxu0 %v1016_v54  ;;  %1130 = vmatpush.msra.mxu2 %v1017_v56  ;;  %v1168_v54 = vld [vmem:[#allocation5 + $0xe20] sm:$0xff]  ;;  %v1167_v56 = vld [vmem:[#allocation5 + $0xe10] sm:$0xff] }
 0x278   :  { %1111 = vmatpush.msra.mxu1 %v1046_v7 }
 0x279   :  { %1091 = vmatpush.msra.mxu0 %v1014_v58  ;;  %1131 = vmatpush.msra.mxu2 %v1015_v60  ;;  %v1166_v58 = vld [vmem:[#allocation5 + $0xe00] sm:$0xff] }
 0x27a   :  { %1112 = vmatpush.msra.mxu1 %v1044_v10  ;;  %v1184_v60 = vld [vmem:[#allocation5 + $0xf20] sm:$0xff] }
 0x27b   :  { %1092 = vmatpush.msra.mxu0 %v1012_v62  ;;  %1132 = vmatpush.msra.mxu2 %v1013_v0  ;;  %v1182_v62 = vld [vmem:[#allocation5 + $0xf00] sm:$0xff]  ;;  %v1075_v0 = vperm.slane %v1073_v63, 0 }
 0x27c   :  { %1113 = vmatpush.msra.mxu1 %v1042_v12 }
 0x27d   :  { %1093 = vmatpush.msra.mxu0 %v1010_v2  ;;  %1133 = vmatpush.msra.mxu2 %v1011_v4 }
 0x27e   :  { %1114 = vmatpush.msra.mxu1 %v1040_v14  ;;  %v1199_v14 = vld [vmem:[#allocation7 + $0xe] sm:$0x3] }
 0x27f   :  { %1094 = vmatpush.msra.mxu0 %v1008_v6  ;;  %1134 = vmatpush.msra.mxu2 %v1009_v8  ;;  %v1201_v15 = vperm.slane %v1199_v14, 0 }
 0x2dd   :  { %v780_v37 = vpop.f32.mrf.mxu0 }
 0x2de   :  { %v781_v39 = vadd.f32 %v780_v37, %v759_v34 }
 0x2e0   :  { %v801_v40 = vadd.f32 %v800_v38, %v781_v39  ;;  %v918_v39 = vperm.slane %v915_v30, 1 }
 0x2e2   :  { %vm843_vm6 = vcmp.gt.f32.partialorder %v801_v40, 0.0  ;;  %v845_v42 = vmul.f32 0.2, %v801_v40 }
 0x2e3   :  { %v820_v43 = vpop.f32.mrf.mxu2 }
 0x2e4   :  { %v821_v45 = vadd.f32 %v820_v43, %v760_v41  ;;  %v847_v46 = vsel %vm843_vm6, %v801_v40, %v845_v42 }
 0x2e5   :  { %937 = vmatmul.f32.vlgmr.msrb.gmra.mxu0 %v847_v46  ;;  %977 = vmatmul.f32.vlgmr.msrb.gmra.mxu2 %v847_v46 }
 0x2e6   :  { %v841_v47 = vadd.f32 %v840_v44, %v821_v45  ;;  %1203 = vmatpush.msrb.mxu0 %v1181_v16 }
 0x2e8   :  { %vm844_vm7 = vcmp.gt.f32.partialorder %v841_v47, 0.0  ;;  %v846_v48 = vmul.f32 0.2, %v841_v47  ;;  %1204 = vmatpush.msrb.mxu0 %v1180_v17 }
 0x2ea   :  { %v848_v49 = vsel %vm844_vm7, %v841_v47, %v846_v48  ;;  %1205 = vmatpush.msrb.mxu0 %v1179_v19  ;;  %v1171_v48 = vld [vmem:[#allocation5 + $0xe50] sm:$0xff] }
 0x2eb   :  { %957 = vmatmul.f32.vlgmr.msrb.gmra.mxu1 %v848_v49  ;;  %997 = vmatmul.f32.vlgmr.msrb.gmra.mxu3 %v848_v49  ;;  %v1190_v49 = vld [vmem:[#allocation5 + $0xf80] sm:$0xff] }
 0x2ec   :  { %1223 = vmatpush.msrb.mxu1 %v1197_v18  ;;  %1206 = vmatpush.msrb.mxu0 %v1178_v22 }
 0x2ee   :  { %1224 = vmatpush.msrb.mxu1 %v1196_v20  ;;  %1207 = vmatpush.msrb.mxu0 %v1177_v24 }
 0x2f0   :  { %1225 = vmatpush.msrb.mxu1 %v1195_v21  ;;  %1208 = vmatpush.msrb.mxu0 %v1176_v26 }
 0x2f2   :  { %1226 = vmatpush.msrb.mxu1 %v1194_v23  ;;  %1209 = vmatpush.msrb.mxu0 %v1175_v28 }
 0x2f4   :  { %1227 = vmatpush.msrb.mxu1 %v1193_v25  ;;  %1210 = vmatpush.msrb.mxu0 %v1174_v31 }
 0x2f6   :  { %1228 = vmatpush.msrb.mxu1 %v1192_v27  ;;  %1211 = vmatpush.msrb.mxu0 %v1173_v32 }
 0x2f8   :  { %1229 = vmatpush.msrb.mxu1 %v1191_v29  ;;  %1212 = vmatpush.msrb.mxu0 %v1172_v35 }
 0x2fa   :  { %1213 = vmatpush.msrb.mxu0 %v1171_v48  ;;  %1230 = vmatpush.msrb.mxu1 %v1190_v49 }
 0x2fc   :  { %1214 = vmatpush.msrb.mxu0 %v1170_v50  ;;  %1231 = vmatpush.msrb.mxu1 %v1189_v51 }
 0x2fe   :  { %1215 = vmatpush.msrb.mxu0 %v1169_v52  ;;  %1232 = vmatpush.msrb.mxu1 %v1188_v53 }
 0x300   :  { %1216 = vmatpush.msrb.mxu0 %v1168_v54  ;;  %1233 = vmatpush.msrb.mxu1 %v1187_v55 }
 0x302   :  { %1217 = vmatpush.msrb.mxu0 %v1167_v56  ;;  %1234 = vmatpush.msrb.mxu1 %v1186_v57 }
 0x304   :  { %1218 = vmatpush.msrb.mxu0 %v1166_v58  ;;  %1235 = vmatpush.msrb.mxu1 %v1185_v59 }
 0x306   :  { %1236 = vmatpush.msrb.mxu1 %v1184_v60 }
 0x308   :  { %1237 = vmatpush.msrb.mxu1 %v1183_v61 }
 0x30a   :  { %1238 = vmatpush.msrb.mxu1 %v1182_v62 }
 0x362   :  { %v938_v34 = vpop.f32.mrf.mxu0 }
 0x363   :  { %v939_v36 = vadd.f32 %v938_v34, %v917_v33 }
 0x368   :  { %v958_v37 = vpop.f32.mrf.mxu1  ;;  %v978_v40 = vpop.f32.mrf.mxu2 }
 0x369   :  { %v959_v38 = vadd.f32 %v958_v37, %v939_v36  ;;  %v979_v42 = vadd.f32 %v978_v40, %v918_v39 }
 0x36b   :  { %vm1001_vm8 = vcmp.gt.f32.partialorder %v959_v38, 0.0  ;;  %v1003_v41 = vmul.f32 0.2, %v959_v38 }
 0x36d   :  { %v1005_v43 = vsel %vm1001_vm8, %v959_v38, %v1003_v41 }
 0x36e   :  { %v998_v44 = vpop.f32.mrf.mxu3  ;;  %1095 = vmatmul.f32.vlgmr.msra.gmra.mxu0 %v1005_v43  ;;  %1135 = vmatmul.f32.vlgmr.msra.gmra.mxu2 %v1005_v43 }
 0x36f   :  { %v999_v45 = vadd.f32 %v998_v44, %v979_v42 }
 0x371   :  { %vm1002_vm9 = vcmp.gt.f32.partialorder %v999_v45, 0.0  ;;  %v1004_v46 = vmul.f32 0.2, %v999_v45 }
 0x373   :  { %v1006_v47 = vsel %vm1002_vm9, %v999_v45, %v1004_v46 }
 0x374   :  { %1115 = vmatmul.f32.vlgmr.msra.gmra.mxu1 %v1006_v47  ;;  %1155 = vmatmul.f32.vlgmr.msra.gmra.mxu3 %v1006_v47 }
 0x3eb   :  { %v1096_v1 = vpop.f32.mrf.mxu0 }
 0x3ec   :  { %v1097_v2 = vadd.f32 %v1096_v1, %v1075_v0 }
 0x3f1   :  { %v1116_v3 = vpop.f32.mrf.mxu1  ;;  %v1136_v6 = vpop.f32.mrf.mxu2 }
 0x3f2   :  { %v1117_v4 = vadd.f32 %v1116_v3, %v1097_v2  ;;  %v1137_v8 = vadd.f32 %v1136_v6, %v1076_v5 }
 0x3f4   :  { %vm1159_vm10 = vcmp.gt.f32.partialorder %v1117_v4, 0.0  ;;  %v1161_v7 = vmul.f32 0.2, %v1117_v4 }
 0x3f6   :  { %v1163_v9 = vsel %vm1159_vm10, %v1117_v4, %v1161_v7 }
 0x3f7   :  { %v1156_v10 = vpop.f32.mrf.mxu3  ;;  %1219 = vmatmul.f32.vlgmr.msrb.gmra.mxu0 %v1163_v9 }
 0x3f8   :  { %v1157_v11 = vadd.f32 %v1156_v10, %v1137_v8 }
 0x3fa   :  { %vm1160_vm11 = vcmp.gt.f32.partialorder %v1157_v11, 0.0  ;;  %v1162_v12 = vmul.f32 0.2, %v1157_v11 }
 0x3fc   :  { %v1164_v13 = vsel %vm1160_vm11, %v1157_v11, %v1162_v12 }
 0x3fd   :  { %1239 = vmatmul.f32.vlgmr.msrb.gmra.mxu1 %v1164_v13 }
 0x474   :  { %v1220_v16 = vpop.f32.mrf.mxu0 }
 0x475   :  { %v1221_v17 = vadd.f32 %v1220_v16, %v1201_v15 }
 0x47a   :  { %v1240_v18 = vpop.f32.mrf.mxu1 }
 0x47b   :  { %v1241_v19 = vadd.f32 %v1240_v18, %v1221_v17 }
 0x47d   :  { %1243 = vst [vmem:[#allocation8] sm:$0xff] %v1241_v19 }
 0x47e   :  { %1257 = dma.vmem_to_hbm [thread:$0]  %s1253_s2, 512, %s1255_s5, [#allocation4]  }
 0x47f   :  { %1377 = dma.done.wait [#allocation4], 512  }
 0x480   :  { %1378 = vsyncadd [#allocation4], 4294966784 }
 0x481   :  { %1262 = vsyncpa [#allocation3], 1 }
 0x482   :  { %1263 = vsyncpa [#allocation6], 1 }
 0x483   :  { %1264 = vsyncpa [#allocation4], 1 }

</bundles_post_ra>
